<compile_context>
chip_gen: v6e
topology: v6e:2x2x1
jax: 0.10.0
libtpu: 0.0.40
codegen_flags: <defaults>
</compile_context>

<pallas_src>
import functools

import jax
import jax.numpy as jnp
from jax.experimental import pallas as pl
from jax.experimental.pallas import tpu as pltpu

# ----------------------------- config (small synthetic ViT/CLIP) -----------------------------
IMG = 16          # image height/width
CHANNELS = 3      # image channels
PATCH = 8         # patch size  -> 2x2 = 4 patches
WIDTH = 32        # visual transformer width
WIDTH_T = 32      # text transformer width
HEADS = 4         # attention heads (both towers)
LAYERS = 2        # transformer blocks per tower
EMBED_DIM = 32    # joint embedding dim
VOCAB = 64        # text vocab size
CONTEXT = 8       # text context length

N_PATCHES = (IMG // PATCH) ** 2
SEQ_RAW = N_PATCHES + 1          # CLS + patches = 5
SEQ_V = 8                        # ViT sequence padded to a full 8-sublane tile
NEG_INF = -1e9
VMEM_LIMIT = 64 * 1024 * 1024


def _vmem_specs(n):
    return [pl.BlockSpec(memory_space=pltpu.MemorySpace.VMEM)] * n


# ----------------------------- in-kernel building blocks (values, not refs) -----------------------------
def _ln(x, g, b):
    """LayerNorm over the last dim (eps=1e-5, matches torch default). x: f32 [M, D]."""
    mu = jnp.mean(x, axis=-1, keepdims=True)
    xc = x - mu
    var = jnp.mean(xc * xc, axis=-1, keepdims=True)
    return xc * jax.lax.rsqrt(var + 1e-5) * g + b


def _l2_normalize(x):
    """F.normalize (L2, eps=1e-12) over the last dim."""
    return x * jax.lax.rsqrt(jnp.maximum(jnp.sum(x * x, axis=-1, keepdims=True), 1e-24))


def _resblock(x, p, mask, *, heads, batch, seq):
    """Pre-LN transformer block, batched over all sequences. x: [batch*seq, D] f32."""
    bs, d = x.shape
    dh = d // heads
    scale = 1.0 / float(dh) ** 0.5

    # --- attention: one wide QKV matmul for the whole batch ---
    h = _ln(x, p['ln1_g'], p['ln1_b'])
    qkv = jnp.dot(h, p['qkv_w'], preferred_element_type=jnp.float32) + p['qkv_b']    # [bs, 3d]

    # Per-head scores/softmax batched over images via 3-D dot_generals; the head outputs
    # are lane-concatenated so the output projection is ONE K=d matmul.
    # TODO(synk): at real scale fold heads into the batch dim ([batch*heads, seq, dh]).
    head_outs = []
    for hd in range(heads):
        lo = hd * dh
        qh = qkv[:, lo:lo + dh].reshape(batch, seq, dh)
        kh = qkv[:, d + lo:d + lo + dh].reshape(batch, seq, dh)
        vh = qkv[:, 2 * d + lo:2 * d + lo + dh].reshape(batch, seq, dh)
        s = jnp.einsum('bqd,bkd->bqk', qh, kh,
                       preferred_element_type=jnp.float32) * scale                   # [b, S, S]
        if mask is not None:
            s = s + mask                                    # [S, S] broadcasts over batch
        s = s - jnp.max(s, axis=-1, keepdims=True)
        e = jnp.exp(s)
        pa = e * pl.reciprocal(jnp.sum(e, axis=-1, keepdims=True), approx=True)      # EUP recip
        oh = jnp.einsum('bqk,bkd->bqd', pa, vh, preferred_element_type=jnp.float32)  # [b, S, dh]
        head_outs.append(oh.reshape(bs, dh))
    attn = jnp.concatenate(head_outs, axis=-1)                                       # [bs, d]
    x = x + jnp.dot(attn, p['out_w'], preferred_element_type=jnp.float32) + p['out_b']

    # --- MLP (QuickGELU, as in CLIP) ---
    h2 = _ln(x, p['ln2_g'], p['ln2_b'])
    m = jnp.dot(h2, p['fc_w'], preferred_element_type=jnp.float32) + p['fc_b']
    m = m * jax.nn.sigmoid(1.702 * m)
    m = jnp.dot(m, p['proj_w'], preferred_element_type=jnp.float32) + p['proj_b']
    return x + m


def _layer_params(l, ln1_g, ln1_b, qkv_w, qkv_b, out_w, out_b,
                  ln2_g, ln2_b, fc_w, fc_b, proj_w, proj_b):
    """Load layer l's weights once from the stacked [LAYERS, ...] refs."""
    return dict(
        ln1_g=ln1_g[l], ln1_b=ln1_b[l], qkv_w=qkv_w[l], qkv_b=qkv_b[l],
        out_w=out_w[l], out_b=out_b[l], ln2_g=ln2_g[l], ln2_b=ln2_b[l],
        fc_w=fc_w[l], fc_b=fc_b[l], proj_w=proj_w[l], proj_b=proj_b[l],
    )


# ----------------------------- fused tower kernels -----------------------------
def _vit_reward_kernel(patches_ref, conv_w_ref, base_ref, kmask_ref,
                       ln_pre_g_ref, ln_pre_b_ref,
                       ln1_g_ref, ln1_b_ref, qkv_w_ref, qkv_b_ref, out_w_ref, out_b_ref,
                       ln2_g_ref, ln2_b_ref, fc_w_ref, fc_b_ref, proj_w_ref, proj_b_ref,
                       ln_post_g_ref, ln_post_b_ref, v_proj_ref, txt_ref, o_ref,
                       *, layers, heads, batch, seq):
    """Fused visual tower + reward.
       patches_ref: [batch*seq, C*P*P] im2col patches (per-image row 0 = CLS slot = 0,
                    rows >= SEQ_RAW are sublane padding).
       base_ref:    [seq, W] positional embedding (+ class embedding on row 0, 0 on pad rows).
       kmask_ref:   [seq, seq] additive key mask (-inf on pad key columns).
       txt_ref:     [1, E] L2-normalized text feature.
       o_ref:       [1, batch] rewards, written lane-dense in one store."""
    width = base_ref.shape[-1]

    # patch "conv" (im2col matmul) for the whole batch, + cls/pos, then ln_pre.
    x = jnp.dot(patches_ref[...], conv_w_ref[...], preferred_element_type=jnp.float32)
    x = (x.reshape(batch, seq, width) + base_ref[...]).reshape(batch * seq, width)
    x = _ln(x, ln_pre_g_ref[...], ln_pre_b_ref[...])

    kmask = kmask_ref[...]
    for l in range(layers):
        p = _layer_params(l, ln1_g_ref, ln1_b_ref, qkv_w_ref, qkv_b_ref, out_w_ref, out_b_ref,
                          ln2_g_ref, ln2_b_ref, fc_w_ref, fc_b_ref, proj_w_ref, proj_b_ref)
        x = _resblock(x, p, kmask, heads=heads, batch=batch, seq=seq)

    # CLS token per image -> ln_post -> projection -> image features [batch, E].
    cls = x.reshape(batch, seq, width)[:, 0:1, :].reshape(batch, width)
    cls = _ln(cls, ln_post_g_ref[...], ln_post_b_ref[...])
    img = jnp.dot(cls, v_proj_ref[...], preferred_element_type=jnp.float32)

    # fused reward: cosine(txt, img_b) for every image; single [1, batch] store.
    img_n = _l2_normalize(img)
    o_ref[...] = jax.lax.dot_general(txt_ref[...], img_n,
                                     dimension_numbers=(((1,), (1,)), ((), ())),
                                     preferred_element_type=jnp.float32)


def _text_tower_kernel(x0_ref, mask_ref, eot_ref,
                       ln1_g_ref, ln1_b_ref, qkv_w_ref, qkv_b_ref, out_w_ref, out_b_ref,
                       ln2_g_ref, ln2_b_ref, fc_w_ref, fc_b_ref, proj_w_ref, proj_b_ref,
                       ln_final_g_ref, ln_final_b_ref, text_proj_ref, o_ref,
                       *, layers, heads, batch, seq):
    """x0_ref: [batch*seq, W] token+pos embeddings; mask_ref: [seq, seq] additive causal;
       eot_ref: [batch, seq] one-hot EOT selector; o_ref: [batch, E] L2-normalized features."""
    width = x0_ref.shape[-1]
    x = x0_ref[...]
    mask = mask_ref[...]
    for l in range(layers):
        p = _layer_params(l, ln1_g_ref, ln1_b_ref, qkv_w_ref, qkv_b_ref, out_w_ref, out_b_ref,
                          ln2_g_ref, ln2_b_ref, fc_w_ref, fc_b_ref, proj_w_ref, proj_b_ref)
        x = _resblock(x, p, mask, heads=heads, batch=batch, seq=seq)

    xf = _ln(x, ln_final_g_ref[...], ln_final_b_ref[...]).reshape(batch, seq, width)
    feat = jnp.sum(xf * eot_ref[...][:, :, None], axis=1)                 # EOT gather (VPU)
    feat = jnp.dot(feat, text_proj_ref[...], preferred_element_type=jnp.float32)
    o_ref[...] = _l2_normalize(feat)                                      # single lane-dense store


# ----------------------------- wrappers (one pallas_call per tower) -----------------------------
def encode_text(tokens, p):
    """tokens: [Nt, T] int32 -> [Nt, EMBED_DIM] L2-normalized text features."""
    nt, t = tokens.shape
    x0 = (jnp.take(p['tok_emb'], tokens, axis=0) + p['t_pos_emb'][None]
          ).astype(jnp.float32).reshape(nt * t, WIDTH_T)
    mask = jnp.triu(jnp.full((t, t), NEG_INF, jnp.float32), k=1)              # causal
    eot = jax.nn.one_hot(jnp.argmax(tokens, axis=-1), t, dtype=jnp.float32)   # EOT = max token id

    tb = p['t_blocks']
    args = (x0, mask, eot,
            tb['ln1_g'], tb['ln1_b'], tb['qkv_w'], tb['qkv_b'], tb['out_w'], tb['out_b'],
            tb['ln2_g'], tb['ln2_b'], tb['fc_w'], tb['fc_b'], tb['proj_w'], tb['proj_b'],
            p['ln_final_g'], p['ln_final_b'], p['text_proj'])
    kern = functools.partial(_text_tower_kernel, layers=LAYERS, heads=HEADS, batch=nt, seq=t)
    return pl.pallas_call(
        kern,
        out_shape=jax.ShapeDtypeStruct((nt, EMBED_DIM), jnp.float32),
        in_specs=_vmem_specs(len(args)),
        out_specs=pl.BlockSpec(memory_space=pltpu.MemorySpace.VMEM),
        compiler_params=pltpu.CompilerParams(vmem_limit_bytes=VMEM_LIMIT),
    )(*args)


def image_rewards(imgs, txt_n, p):
    """imgs: NCHW [B, C, H, W]; txt_n: [1, E] normalized text feature -> [B] cosine rewards."""
    n, c, hgt, wdt = imgs.shape
    gh, gw = hgt // PATCH, wdt // PATCH
    # im2col, matching Conv2d(C, WIDTH, kernel=PATCH, stride=PATCH, bias=False)
    x = imgs.reshape(n, c, gh, PATCH, gw, PATCH).transpose(0, 2, 4, 1, 3, 5)
    patches = x.reshape(n, gh * gw, c * PATCH * PATCH).astype(jnp.float32)
    # slot 0 = CLS (zeros; its embedding comes from `base`), pad the sequence to SEQ_V sublanes
    patches_aug = jnp.zeros((n, SEQ_V, patches.shape[-1]), jnp.float32)
    patches_aug = patches_aug.at[:, 1:SEQ_RAW, :].set(patches)
    patches_flat = patches_aug.reshape(n * SEQ_V, -1)

    conv_w = p['conv_w'].reshape(WIDTH, -1).T                                  # [C*P*P, WIDTH]
    base = jnp.zeros((SEQ_V, WIDTH), jnp.float32).at[:SEQ_RAW].set(p['v_pos_emb'])
    base = base.at[0].add(p['cls_emb'])
    # additive key mask so padded sequence positions never receive attention weight
    kmask = jnp.broadcast_to(
        jnp.where(jnp.arange(SEQ_V)[None, :] < SEQ_RAW, 0.0, NEG_INF).astype(jnp.float32),
        (SEQ_V, SEQ_V))

    vb = p['v_blocks']
    args = (patches_flat, conv_w, base, kmask, p['ln_pre_g'], p['ln_pre_b'],
            vb['ln1_g'], vb['ln1_b'], vb['qkv_w'], vb['qkv_b'], vb['out_w'], vb['out_b'],
            vb['ln2_g'], vb['ln2_b'], vb['fc_w'], vb['fc_b'], vb['proj_w'], vb['proj_b'],
            p['ln_post_g'], p['ln_post_b'], p['v_proj'], txt_n)
    kern = functools.partial(_vit_reward_kernel, layers=LAYERS, heads=HEADS, batch=n, seq=SEQ_V)
    rewards = pl.pallas_call(
        kern,
        out_shape=jax.ShapeDtypeStruct((1, n), jnp.float32),
        in_specs=_vmem_specs(len(args)),
        out_specs=pl.BlockSpec(memory_space=pltpu.MemorySpace.VMEM),
        compiler_params=pltpu.CompilerParams(vmem_limit_bytes=VMEM_LIMIT),
    )(*args)
    return rewards[0]


def clip_forward(prompt_tokens, generations, params):
    """Mirrors CLIP.forward(prompt, generations_list): per-image cosine rewards."""
    txt_n = encode_text(prompt_tokens, params)            # [1, E], already F.normalize'd
    rewards = image_rewards(generations, txt_n, params)   # [B]
    # torch also computes rank/indices via two sorts but returns only `rewards`; keep semantics.
    return rewards


# ----------------------------- deterministic parameter init -----------------------------
def init_params(key):
    keys = iter(jax.random.split(key, 64))

    def nrm(shape, scale=0.02):
        return (scale * jax.random.normal(next(keys), shape)).astype(jnp.float32)

    def blocks(d, L):
        # per-layer weights stacked along a leading LAYERS axis; biases / LN params
        # pre-shaped [L, 1, n] so the kernel can broadcast without reshapes.
        return dict(
            ln1_g=jnp.ones((L, 1, d), jnp.float32), ln1_b=jnp.zeros((L, 1, d), jnp.float32),
            qkv_w=nrm((L, d, 3 * d)), qkv_b=jnp.zeros((L, 1, 3 * d), jnp.float32),
            out_w=nrm((L, d, d)), out_b=jnp.zeros((L, 1, d), jnp.float32),
            ln2_g=jnp.ones((L, 1, d), jnp.float32), ln2_b=jnp.zeros((L, 1, d), jnp.float32),
            fc_w=nrm((L, d, 4 * d)), fc_b=jnp.zeros((L, 1, 4 * d), jnp.float32),
            proj_w=nrm((L, 4 * d, d)), proj_b=jnp.zeros((L, 1, d), jnp.float32),
        )

    return dict(
        # visual tower
        conv_w=nrm((WIDTH, CHANNELS, PATCH, PATCH)),
        cls_emb=nrm((WIDTH,)),
        v_pos_emb=nrm((SEQ_RAW, WIDTH)),
        ln_pre_g=jnp.ones((1, WIDTH), jnp.float32), ln_pre_b=jnp.zeros((1, WIDTH), jnp.float32),
        v_blocks=blocks(WIDTH, LAYERS),
        ln_post_g=jnp.ones((1, WIDTH), jnp.float32), ln_post_b=jnp.zeros((1, WIDTH), jnp.float32),
        v_proj=nrm((WIDTH, EMBED_DIM)),
        # text tower
        tok_emb=nrm((VOCAB, WIDTH_T)),
        t_pos_emb=nrm((CONTEXT, WIDTH_T)),
        t_blocks=blocks(WIDTH_T, LAYERS),
        ln_final_g=jnp.ones((1, WIDTH_T), jnp.float32),
        ln_final_b=jnp.zeros((1, WIDTH_T), jnp.float32),
        text_proj=nrm((WIDTH_T, EMBED_DIM)),
    )


# ----------------------------- main -----------------------------
if __name__ == "__main__":
    key = jax.random.PRNGKey(0)
    k_param, k_tok, k_img = jax.random.split(key, 3)

    params = init_params(k_param)

    # prompt: one tokenized text sequence; generations_list: batch of images (NCHW)
    prompt = jax.random.randint(k_tok, (1, CONTEXT), 0, VOCAB, dtype=jnp.int32)
    generations = jax.random.normal(k_img, (2, CHANNELS, IMG, IMG), dtype=jnp.float32)

    fwd = jax.jit(clip_forward)
    rewards = jax.block_until_ready(fwd(prompt, generations, params))
    _ = rewards.tolist()   # module returns a python list of per-image rewards

    assert rewards.shape == (generations.shape[0],)
    assert bool(jnp.all(jnp.isfinite(rewards)))
    print("KERNEL_OK")
</pallas_src>

<mosaic_0001>
module attributes {stable_mosaic.version = 11 : i64} {
  func.func @_text_tower_kernel(%arg0: memref<8x32xf32, #tpu.memory_space<vmem>>, %arg1: memref<8x8xf32, #tpu.memory_space<vmem>>, %arg2: memref<1x8xf32, #tpu.memory_space<vmem>>, %arg3: memref<2x1x32xf32, #tpu.memory_space<vmem>>, %arg4: memref<2x1x32xf32, #tpu.memory_space<vmem>>, %arg5: memref<2x32x96xf32, #tpu.memory_space<vmem>>, %arg6: memref<2x1x96xf32, #tpu.memory_space<vmem>>, %arg7: memref<2x32x32xf32, #tpu.memory_space<vmem>>, %arg8: memref<2x1x32xf32, #tpu.memory_space<vmem>>, %arg9: memref<2x1x32xf32, #tpu.memory_space<vmem>>, %arg10: memref<2x1x32xf32, #tpu.memory_space<vmem>>, %arg11: memref<2x32x128xf32, #tpu.memory_space<vmem>>, %arg12: memref<2x1x128xf32, #tpu.memory_space<vmem>>, %arg13: memref<2x128x32xf32, #tpu.memory_space<vmem>>, %arg14: memref<2x1x32xf32, #tpu.memory_space<vmem>>, %arg15: memref<1x32xf32, #tpu.memory_space<vmem>>, %arg16: memref<1x32xf32, #tpu.memory_space<vmem>>, %arg17: memref<32x32xf32, #tpu.memory_space<vmem>>, %arg18: memref<1x32xf32, #tpu.memory_space<vmem>>) attributes {dimension_semantics = [], scalar_prefetch = 0 : i64, scratch_operands = 0 : i64, tpu.core_type = #tpu.core_type<tc>} {
    %c0 = arith.constant 0 : index
    %c0_0 = arith.constant 0 : index
    %0 = vector.load %arg0[%c0, %c0_0] : memref<8x32xf32, #tpu.memory_space<vmem>>, vector<8x32xf32>
    %c0_1 = arith.constant 0 : index
    %c0_2 = arith.constant 0 : index
    %1 = vector.load %arg1[%c0_1, %c0_2] : memref<8x8xf32, #tpu.memory_space<vmem>>, vector<8x8xf32>
    %c0_3 = arith.constant 0 : index
    %c0_4 = arith.constant 0 : index
    %c0_5 = arith.constant 0 : index
    %2 = vector.load %arg3[%c0_3, %c0_4, %c0_5] : memref<2x1x32xf32, #tpu.memory_space<vmem>>, vector<1x1x32xf32>
    %3 = vector.shape_cast %2 : vector<1x1x32xf32> to vector<1x32xf32>
    %c0_6 = arith.constant 0 : index
    %c0_7 = arith.constant 0 : index
    %c0_8 = arith.constant 0 : index
    %4 = vector.load %arg4[%c0_6, %c0_7, %c0_8] : memref<2x1x32xf32, #tpu.memory_space<vmem>>, vector<1x1x32xf32>
    %5 = vector.shape_cast %4 : vector<1x1x32xf32> to vector<1x32xf32>
    %c0_9 = arith.constant 0 : index
    %c0_10 = arith.constant 0 : index
    %c0_11 = arith.constant 0 : index
    %6 = vector.load %arg5[%c0_9, %c0_10, %c0_11] : memref<2x32x96xf32, #tpu.memory_space<vmem>>, vector<1x32x96xf32>
    %7 = vector.shape_cast %6 : vector<1x32x96xf32> to vector<32x96xf32>
    %c0_12 = arith.constant 0 : index
    %c0_13 = arith.constant 0 : index
    %c0_14 = arith.constant 0 : index
    %8 = vector.load %arg6[%c0_12, %c0_13, %c0_14] : memref<2x1x96xf32, #tpu.memory_space<vmem>>, vector<1x1x96xf32>
    %9 = vector.shape_cast %8 : vector<1x1x96xf32> to vector<1x96xf32>
    %c0_15 = arith.constant 0 : index
    %c0_16 = arith.constant 0 : index
    %c0_17 = arith.constant 0 : index
    %10 = vector.load %arg7[%c0_15, %c0_16, %c0_17] : memref<2x32x32xf32, #tpu.memory_space<vmem>>, vector<1x32x32xf32>
    %11 = vector.shape_cast %10 : vector<1x32x32xf32> to vector<32x32xf32>
    %c0_18 = arith.constant 0 : index
    %c0_19 = arith.constant 0 : index
    %c0_20 = arith.constant 0 : index
    %12 = vector.load %arg8[%c0_18, %c0_19, %c0_20] : memref<2x1x32xf32, #tpu.memory_space<vmem>>, vector<1x1x32xf32>
    %13 = vector.shape_cast %12 : vector<1x1x32xf32> to vector<1x32xf32>
    %c0_21 = arith.constant 0 : index
    %c0_22 = arith.constant 0 : index
    %c0_23 = arith.constant 0 : index
    %14 = vector.load %arg9[%c0_21, %c0_22, %c0_23] : memref<2x1x32xf32, #tpu.memory_space<vmem>>, vector<1x1x32xf32>
    %15 = vector.shape_cast %14 : vector<1x1x32xf32> to vector<1x32xf32>
    %c0_24 = arith.constant 0 : index
    %c0_25 = arith.constant 0 : index
    %c0_26 = arith.constant 0 : index
    %16 = vector.load %arg10[%c0_24, %c0_25, %c0_26] : memref<2x1x32xf32, #tpu.memory_space<vmem>>, vector<1x1x32xf32>
    %17 = vector.shape_cast %16 : vector<1x1x32xf32> to vector<1x32xf32>
    %c0_27 = arith.constant 0 : index
    %c0_28 = arith.constant 0 : index
    %c0_29 = arith.constant 0 : index
    %18 = vector.load %arg11[%c0_27, %c0_28, %c0_29] : memref<2x32x128xf32, #tpu.memory_space<vmem>>, vector<1x32x128xf32>
    %19 = vector.shape_cast %18 : vector<1x32x128xf32> to vector<32x128xf32>
    %c0_30 = arith.constant 0 : index
    %c0_31 = arith.constant 0 : index
    %c0_32 = arith.constant 0 : index
    %20 = vector.load %arg12[%c0_30, %c0_31, %c0_32] : memref<2x1x128xf32, #tpu.memory_space<vmem>>, vector<1x1x128xf32>
    %21 = vector.shape_cast %20 : vector<1x1x128xf32> to vector<1x128xf32>
    %c0_33 = arith.constant 0 : index
    %c0_34 = arith.constant 0 : index
    %c0_35 = arith.constant 0 : index
    %22 = vector.load %arg13[%c0_33, %c0_34, %c0_35] : memref<2x128x32xf32, #tpu.memory_space<vmem>>, vector<1x128x32xf32>
    %23 = vector.shape_cast %22 : vector<1x128x32xf32> to vector<128x32xf32>
    %c0_36 = arith.constant 0 : index
    %c0_37 = arith.constant 0 : index
    %c0_38 = arith.constant 0 : index
    %24 = vector.load %arg14[%c0_36, %c0_37, %c0_38] : memref<2x1x32xf32, #tpu.memory_space<vmem>>, vector<1x1x32xf32>
    %25 = vector.shape_cast %24 : vector<1x1x32xf32> to vector<1x32xf32>
    %cst = arith.constant dense<0.000000e+00> : vector<8xf32>
    %26 = vector.multi_reduction <add>, %0, %cst [1] : vector<8x32xf32> to vector<8xf32>
    %27 = vector.shape_cast %26 : vector<8xf32> to vector<8x1xf32>
    %cst_39 = arith.constant 3.200000e+01 : f32
    %28 = vector.broadcast %cst_39 : f32 to vector<8x1xf32>
    %29 = arith.divf %27, %28 : vector<8x1xf32>
    %30 = vector.broadcast %29 : vector<8x1xf32> to vector<8x32xf32>
    %31 = arith.subf %0, %30 : vector<8x32xf32>
    %32 = arith.mulf %31, %31 : vector<8x32xf32>
    %cst_40 = arith.constant dense<0.000000e+00> : vector<8xf32>
    %33 = vector.multi_reduction <add>, %32, %cst_40 [1] : vector<8x32xf32> to vector<8xf32>
    %34 = vector.shape_cast %33 : vector<8xf32> to vector<8x1xf32>
    %cst_41 = arith.constant 3.200000e+01 : f32
    %35 = vector.broadcast %cst_41 : f32 to vector<8x1xf32>
    %36 = arith.divf %34, %35 : vector<8x1xf32>
    %cst_42 = arith.constant 9.99999974E-6 : f32
    %37 = vector.broadcast %cst_42 : f32 to vector<8x1xf32>
    %38 = arith.addf %36, %37 : vector<8x1xf32>
    %39 = math.rsqrt %38 : vector<8x1xf32>
    %40 = vector.broadcast %39 : vector<8x1xf32> to vector<8x32xf32>
    %41 = arith.mulf %31, %40 : vector<8x32xf32>
    %42 = vector.broadcast %3 : vector<1x32xf32> to vector<8x32xf32>
    %43 = arith.mulf %41, %42 : vector<8x32xf32>
    %44 = vector.broadcast %5 : vector<1x32xf32> to vector<8x32xf32>
    %45 = arith.addf %43, %44 : vector<8x32xf32>
    %cst_43 = arith.constant dense<0.000000e+00> : vector<8x96xf32>
    %46 = tpu.matmul %45, %7, %cst_43 {dimension_numbers = #tpu.dot_dimension_numbers<[1], [0], [0], [1], [0, 0, 1, 1], [], []>} : vector<8x32xf32>, vector<32x96xf32>, vector<8x96xf32> -> vector<8x96xf32>
    %47 = vector.broadcast %9 : vector<1x96xf32> to vector<8x96xf32>
    %48 = arith.addf %46, %47 : vector<8x96xf32>
    %49 = vector.extract_strided_slice %48 {offsets = [0, 0], sizes = [8, 8], strides = [1, 1]} : vector<8x96xf32> to vector<8x8xf32>
    %50 = vector.shape_cast %49 : vector<8x8xf32> to vector<1x8x8xf32>
    %51 = vector.extract_strided_slice %48 {offsets = [0, 32], sizes = [8, 8], strides = [1, 1]} : vector<8x96xf32> to vector<8x8xf32>
    %52 = vector.shape_cast %51 : vector<8x8xf32> to vector<1x8x8xf32>
    %53 = vector.extract_strided_slice %48 {offsets = [0, 64], sizes = [8, 8], strides = [1, 1]} : vector<8x96xf32> to vector<8x8xf32>
    %54 = vector.shape_cast %53 : vector<8x8xf32> to vector<1x8x8xf32>
    "tpu.trace_start"() <{level = 10 : i32, message = "bqd,bkd->bqk"}> : () -> ()
    %cst_44 = arith.constant dense<0.000000e+00> : vector<1x8x8xf32>
    %55 = tpu.matmul %50, %52, %cst_44 {dimension_numbers = #tpu.dot_dimension_numbers<[2], [2], [1], [1], [0, 0, 0, 1, 1, 1], [0], [0]>} : vector<1x8x8xf32>, vector<1x8x8xf32>, vector<1x8x8xf32> -> vector<1x8x8xf32>
    "tpu.trace_stop"() : () -> ()
    %cst_45 = arith.constant 0.353553385 : f32
    %56 = vector.broadcast %cst_45 : f32 to vector<1x8x8xf32>
    %57 = arith.mulf %55, %56 : vector<1x8x8xf32>
    %58 = vector.shape_cast %1 : vector<8x8xf32> to vector<1x8x8xf32>
    %59 = arith.addf %57, %58 : vector<1x8x8xf32>
    %cst_46 = arith.constant dense<0xFF800000> : vector<1x8xf32>
    %60 = vector.multi_reduction <maximumf>, %59, %cst_46 [2] : vector<1x8x8xf32> to vector<1x8xf32>
    %61 = vector.shape_cast %60 : vector<1x8xf32> to vector<1x8x1xf32>
    %62 = vector.broadcast %61 : vector<1x8x1xf32> to vector<1x8x8xf32>
    %63 = arith.subf %59, %62 : vector<1x8x8xf32>
    %64 = math.exp %63 : vector<1x8x8xf32>
    %cst_47 = arith.constant dense<0.000000e+00> : vector<1x8xf32>
    %65 = vector.multi_reduction <add>, %64, %cst_47 [2] : vector<1x8x8xf32> to vector<1x8xf32>
    %66 = vector.shape_cast %65 : vector<1x8xf32> to vector<1x8x1xf32>
    %67 = tpu.reciprocal %66 {approx = true} : vector<1x8x1xf32> -> vector<1x8x1xf32>
    %68 = vector.broadcast %67 : vector<1x8x1xf32> to vector<1x8x8xf32>
    %69 = arith.mulf %64, %68 : vector<1x8x8xf32>
    "tpu.trace_start"() <{level = 10 : i32, message = "bqk,bkd->bqd"}> : () -> ()
    %cst_48 = arith.constant dense<0.000000e+00> : vector<1x8x8xf32>
    %70 = tpu.matmul %69, %54, %cst_48 {dimension_numbers = #tpu.dot_dimension_numbers<[2], [1], [1], [2], [0, 0, 0, 1, 1, 2], [0], [0]>} : vector<1x8x8xf32>, vector<1x8x8xf32>, vector<1x8x8xf32> -> vector<1x8x8xf32>
    "tpu.trace_stop"() : () -> ()
    %71 = vector.shape_cast %70 : vector<1x8x8xf32> to vector<8x8xf32>
    %72 = vector.extract_strided_slice %48 {offsets = [0, 8], sizes = [8, 8], strides = [1, 1]} : vector<8x96xf32> to vector<8x8xf32>
    %73 = vector.shape_cast %72 : vector<8x8xf32> to vector<1x8x8xf32>
    %74 = vector.extract_strided_slice %48 {offsets = [0, 40], sizes = [8, 8], strides = [1, 1]} : vector<8x96xf32> to vector<8x8xf32>
    %75 = vector.shape_cast %74 : vector<8x8xf32> to vector<1x8x8xf32>
    %76 = vector.extract_strided_slice %48 {offsets = [0, 72], sizes = [8, 8], strides = [1, 1]} : vector<8x96xf32> to vector<8x8xf32>
    %77 = vector.shape_cast %76 : vector<8x8xf32> to vector<1x8x8xf32>
    "tpu.trace_start"() <{level = 10 : i32, message = "bqd,bkd->bqk"}> : () -> ()
    %cst_49 = arith.constant dense<0.000000e+00> : vector<1x8x8xf32>
    %78 = tpu.matmul %73, %75, %cst_49 {dimension_numbers = #tpu.dot_dimension_numbers<[2], [2], [1], [1], [0, 0, 0, 1, 1, 1], [0], [0]>} : vector<1x8x8xf32>, vector<1x8x8xf32>, vector<1x8x8xf32> -> vector<1x8x8xf32>
    "tpu.trace_stop"() : () -> ()
    %cst_50 = arith.constant 0.353553385 : f32
    %79 = vector.broadcast %cst_50 : f32 to vector<1x8x8xf32>
    %80 = arith.mulf %78, %79 : vector<1x8x8xf32>
    %81 = vector.shape_cast %1 : vector<8x8xf32> to vector<1x8x8xf32>
    %82 = arith.addf %80, %81 : vector<1x8x8xf32>
    %cst_51 = arith.constant dense<0xFF800000> : vector<1x8xf32>
    %83 = vector.multi_reduction <maximumf>, %82, %cst_51 [2] : vector<1x8x8xf32> to vector<1x8xf32>
    %84 = vector.shape_cast %83 : vector<1x8xf32> to vector<1x8x1xf32>
    %85 = vector.broadcast %84 : vector<1x8x1xf32> to vector<1x8x8xf32>
    %86 = arith.subf %82, %85 : vector<1x8x8xf32>
    %87 = math.exp %86 : vector<1x8x8xf32>
    %cst_52 = arith.constant dense<0.000000e+00> : vector<1x8xf32>
    %88 = vector.multi_reduction <add>, %87, %cst_52 [2] : vector<1x8x8xf32> to vector<1x8xf32>
    %89 = vector.shape_cast %88 : vector<1x8xf32> to vector<1x8x1xf32>
    %90 = tpu.reciprocal %89 {approx = true} : vector<1x8x1xf32> -> vector<1x8x1xf32>
    %91 = vector.broadcast %90 : vector<1x8x1xf32> to vector<1x8x8xf32>
    %92 = arith.mulf %87, %91 : vector<1x8x8xf32>
    "tpu.trace_start"() <{level = 10 : i32, message = "bqk,bkd->bqd"}> : () -> ()
    %cst_53 = arith.constant dense<0.000000e+00> : vector<1x8x8xf32>
    %93 = tpu.matmul %92, %77, %cst_53 {dimension_numbers = #tpu.dot_dimension_numbers<[2], [1], [1], [2], [0, 0, 0, 1, 1, 2], [0], [0]>} : vector<1x8x8xf32>, vector<1x8x8xf32>, vector<1x8x8xf32> -> vector<1x8x8xf32>
    "tpu.trace_stop"() : () -> ()
    %94 = vector.shape_cast %93 : vector<1x8x8xf32> to vector<8x8xf32>
    %95 = vector.extract_strided_slice %48 {offsets = [0, 16], sizes = [8, 8], strides = [1, 1]} : vector<8x96xf32> to vector<8x8xf32>
    %96 = vector.shape_cast %95 : vector<8x8xf32> to vector<1x8x8xf32>
    %97 = vector.extract_strided_slice %48 {offsets = [0, 48], sizes = [8, 8], strides = [1, 1]} : vector<8x96xf32> to vector<8x8xf32>
    %98 = vector.shape_cast %97 : vector<8x8xf32> to vector<1x8x8xf32>
    %99 = vector.extract_strided_slice %48 {offsets = [0, 80], sizes = [8, 8], strides = [1, 1]} : vector<8x96xf32> to vector<8x8xf32>
    %100 = vector.shape_cast %99 : vector<8x8xf32> to vector<1x8x8xf32>
    "tpu.trace_start"() <{level = 10 : i32, message = "bqd,bkd->bqk"}> : () -> ()
    %cst_54 = arith.constant dense<0.000000e+00> : vector<1x8x8xf32>
    %101 = tpu.matmul %96, %98, %cst_54 {dimension_numbers = #tpu.dot_dimension_numbers<[2], [2], [1], [1], [0, 0, 0, 1, 1, 1], [0], [0]>} : vector<1x8x8xf32>, vector<1x8x8xf32>, vector<1x8x8xf32> -> vector<1x8x8xf32>
    "tpu.trace_stop"() : () -> ()
    %cst_55 = arith.constant 0.353553385 : f32
    %102 = vector.broadcast %cst_55 : f32 to vector<1x8x8xf32>
    %103 = arith.mulf %101, %102 : vector<1x8x8xf32>
    %104 = vector.shape_cast %1 : vector<8x8xf32> to vector<1x8x8xf32>
    %105 = arith.addf %103, %104 : vector<1x8x8xf32>
    %cst_56 = arith.constant dense<0xFF800000> : vector<1x8xf32>
    %106 = vector.multi_reduction <maximumf>, %105, %cst_56 [2] : vector<1x8x8xf32> to vector<1x8xf32>
    %107 = vector.shape_cast %106 : vector<1x8xf32> to vector<1x8x1xf32>
    %108 = vector.broadcast %107 : vector<1x8x1xf32> to vector<1x8x8xf32>
    %109 = arith.subf %105, %108 : vector<1x8x8xf32>
    %110 = math.exp %109 : vector<1x8x8xf32>
    %cst_57 = arith.constant dense<0.000000e+00> : vector<1x8xf32>
    %111 = vector.multi_reduction <add>, %110, %cst_57 [2] : vector<1x8x8xf32> to vector<1x8xf32>
    %112 = vector.shape_cast %111 : vector<1x8xf32> to vector<1x8x1xf32>
    %113 = tpu.reciprocal %112 {approx = true} : vector<1x8x1xf32> -> vector<1x8x1xf32>
    %114 = vector.broadcast %113 : vector<1x8x1xf32> to vector<1x8x8xf32>
    %115 = arith.mulf %110, %114 : vector<1x8x8xf32>
    "tpu.trace_start"() <{level = 10 : i32, message = "bqk,bkd->bqd"}> : () -> ()
    %cst_58 = arith.constant dense<0.000000e+00> : vector<1x8x8xf32>
    %116 = tpu.matmul %115, %100, %cst_58 {dimension_numbers = #tpu.dot_dimension_numbers<[2], [1], [1], [2], [0, 0, 0, 1, 1, 2], [0], [0]>} : vector<1x8x8xf32>, vector<1x8x8xf32>, vector<1x8x8xf32> -> vector<1x8x8xf32>
    "tpu.trace_stop"() : () -> ()
    %117 = vector.shape_cast %116 : vector<1x8x8xf32> to vector<8x8xf32>
    %118 = vector.extract_strided_slice %48 {offsets = [0, 24], sizes = [8, 8], strides = [1, 1]} : vector<8x96xf32> to vector<8x8xf32>
    %119 = vector.shape_cast %118 : vector<8x8xf32> to vector<1x8x8xf32>
    %120 = vector.extract_strided_slice %48 {offsets = [0, 56], sizes = [8, 8], strides = [1, 1]} : vector<8x96xf32> to vector<8x8xf32>
    %121 = vector.shape_cast %120 : vector<8x8xf32> to vector<1x8x8xf32>
    %122 = vector.extract_strided_slice %48 {offsets = [0, 88], sizes = [8, 8], strides = [1, 1]} : vector<8x96xf32> to vector<8x8xf32>
    %123 = vector.shape_cast %122 : vector<8x8xf32> to vector<1x8x8xf32>
    "tpu.trace_start"() <{level = 10 : i32, message = "bqd,bkd->bqk"}> : () -> ()
    %cst_59 = arith.constant dense<0.000000e+00> : vector<1x8x8xf32>
    %124 = tpu.matmul %119, %121, %cst_59 {dimension_numbers = #tpu.dot_dimension_numbers<[2], [2], [1], [1], [0, 0, 0, 1, 1, 1], [0], [0]>} : vector<1x8x8xf32>, vector<1x8x8xf32>, vector<1x8x8xf32> -> vector<1x8x8xf32>
    "tpu.trace_stop"() : () -> ()
    %cst_60 = arith.constant 0.353553385 : f32
    %125 = vector.broadcast %cst_60 : f32 to vector<1x8x8xf32>
    %126 = arith.mulf %124, %125 : vector<1x8x8xf32>
    %127 = vector.shape_cast %1 : vector<8x8xf32> to vector<1x8x8xf32>
    %128 = arith.addf %126, %127 : vector<1x8x8xf32>
    %cst_61 = arith.constant dense<0xFF800000> : vector<1x8xf32>
    %129 = vector.multi_reduction <maximumf>, %128, %cst_61 [2] : vector<1x8x8xf32> to vector<1x8xf32>
    %130 = vector.shape_cast %129 : vector<1x8xf32> to vector<1x8x1xf32>
    %131 = vector.broadcast %130 : vector<1x8x1xf32> to vector<1x8x8xf32>
    %132 = arith.subf %128, %131 : vector<1x8x8xf32>
    %133 = math.exp %132 : vector<1x8x8xf32>
    %cst_62 = arith.constant dense<0.000000e+00> : vector<1x8xf32>
    %134 = vector.multi_reduction <add>, %133, %cst_62 [2] : vector<1x8x8xf32> to vector<1x8xf32>
    %135 = vector.shape_cast %134 : vector<1x8xf32> to vector<1x8x1xf32>
    %136 = tpu.reciprocal %135 {approx = true} : vector<1x8x1xf32> -> vector<1x8x1xf32>
    %137 = vector.broadcast %136 : vector<1x8x1xf32> to vector<1x8x8xf32>
    %138 = arith.mulf %133, %137 : vector<1x8x8xf32>
    "tpu.trace_start"() <{level = 10 : i32, message = "bqk,bkd->bqd"}> : () -> ()
    %cst_63 = arith.constant dense<0.000000e+00> : vector<1x8x8xf32>
    %139 = tpu.matmul %138, %123, %cst_63 {dimension_numbers = #tpu.dot_dimension_numbers<[2], [1], [1], [2], [0, 0, 0, 1, 1, 2], [0], [0]>} : vector<1x8x8xf32>, vector<1x8x8xf32>, vector<1x8x8xf32> -> vector<1x8x8xf32>
    "tpu.trace_stop"() : () -> ()
    %140 = vector.shape_cast %139 : vector<1x8x8xf32> to vector<8x8xf32>
    %141 = tpu.concatenate %71, %94, %117, %140 in 1 : vector<8x8xf32>, vector<8x8xf32>, vector<8x8xf32>, vector<8x8xf32> -> vector<8x32xf32>
    %cst_64 = arith.constant dense<0.000000e+00> : vector<8x32xf32>
    %142 = tpu.matmul %141, %11, %cst_64 {dimension_numbers = #tpu.dot_dimension_numbers<[1], [0], [0], [1], [0, 0, 1, 1], [], []>} : vector<8x32xf32>, vector<32x32xf32>, vector<8x32xf32> -> vector<8x32xf32>
    %143 = arith.addf %0, %142 : vector<8x32xf32>
    %144 = vector.broadcast %13 : vector<1x32xf32> to vector<8x32xf32>
    %145 = arith.addf %143, %144 : vector<8x32xf32>
    %cst_65 = arith.constant dense<0.000000e+00> : vector<8xf32>
    %146 = vector.multi_reduction <add>, %145, %cst_65 [1] : vector<8x32xf32> to vector<8xf32>
    %147 = vector.shape_cast %146 : vector<8xf32> to vector<8x1xf32>
    %cst_66 = arith.constant 3.200000e+01 : f32
    %148 = vector.broadcast %cst_66 : f32 to vector<8x1xf32>
    %149 = arith.divf %147, %148 : vector<8x1xf32>
    %150 = vector.broadcast %149 : vector<8x1xf32> to vector<8x32xf32>
    %151 = arith.subf %145, %150 : vector<8x32xf32>
    %152 = arith.mulf %151, %151 : vector<8x32xf32>
    %cst_67 = arith.constant dense<0.000000e+00> : vector<8xf32>
    %153 = vector.multi_reduction <add>, %152, %cst_67 [1] : vector<8x32xf32> to vector<8xf32>
    %154 = vector.shape_cast %153 : vector<8xf32> to vector<8x1xf32>
    %cst_68 = arith.constant 3.200000e+01 : f32
    %155 = vector.broadcast %cst_68 : f32 to vector<8x1xf32>
    %156 = arith.divf %154, %155 : vector<8x1xf32>
    %cst_69 = arith.constant 9.99999974E-6 : f32
    %157 = vector.broadcast %cst_69 : f32 to vector<8x1xf32>
    %158 = arith.addf %156, %157 : vector<8x1xf32>
    %159 = math.rsqrt %158 : vector<8x1xf32>
    %160 = vector.broadcast %159 : vector<8x1xf32> to vector<8x32xf32>
    %161 = arith.mulf %151, %160 : vector<8x32xf32>
    %162 = vector.broadcast %15 : vector<1x32xf32> to vector<8x32xf32>
    %163 = arith.mulf %161, %162 : vector<8x32xf32>
    %164 = vector.broadcast %17 : vector<1x32xf32> to vector<8x32xf32>
    %165 = arith.addf %163, %164 : vector<8x32xf32>
    %cst_70 = arith.constant dense<0.000000e+00> : vector<8x128xf32>
    %166 = tpu.matmul %165, %19, %cst_70 {dimension_numbers = #tpu.dot_dimension_numbers<[1], [0], [0], [1], [0, 0, 1, 1], [], []>} : vector<8x32xf32>, vector<32x128xf32>, vector<8x128xf32> -> vector<8x128xf32>
    %167 = vector.broadcast %21 : vector<1x128xf32> to vector<8x128xf32>
    %168 = arith.addf %166, %167 : vector<8x128xf32>
    %cst_71 = arith.constant 1.702000e+00 : f32
    %169 = vector.broadcast %cst_71 : f32 to vector<8x128xf32>
    %170 = arith.mulf %169, %168 : vector<8x128xf32>
    %171 = arith.negf %170 : vector<8x128xf32>
    %172 = math.exp %171 : vector<8x128xf32>
    %cst_72 = arith.constant 1.000000e+00 : f32
    %173 = vector.broadcast %cst_72 : f32 to vector<8x128xf32>
    %174 = arith.addf %173, %172 : vector<8x128xf32>
    %175 = arith.divf %173, %174 : vector<8x128xf32>
    %176 = arith.mulf %168, %175 : vector<8x128xf32>
    %cst_73 = arith.constant dense<0.000000e+00> : vector<8x32xf32>
    %177 = tpu.matmul %176, %23, %cst_73 {dimension_numbers = #tpu.dot_dimension_numbers<[1], [0], [0], [1], [0, 0, 1, 1], [], []>} : vector<8x128xf32>, vector<128x32xf32>, vector<8x32xf32> -> vector<8x32xf32>
    %178 = vector.broadcast %25 : vector<1x32xf32> to vector<8x32xf32>
    %179 = arith.addf %177, %178 : vector<8x32xf32>
    %180 = arith.addf %145, %179 : vector<8x32xf32>
    %c1 = arith.constant 1 : index
    %c0_74 = arith.constant 0 : index
    %c0_75 = arith.constant 0 : index
    %181 = vector.load %arg3[%c1, %c0_74, %c0_75] : memref<2x1x32xf32, #tpu.memory_space<vmem>>, vector<1x1x32xf32>
    %182 = vector.shape_cast %181 : vector<1x1x32xf32> to vector<1x32xf32>
    %c1_76 = arith.constant 1 : index
    %c0_77 = arith.constant 0 : index
    %c0_78 = arith.constant 0 : index
    %183 = vector.load %arg4[%c1_76, %c0_77, %c0_78] : memref<2x1x32xf32, #tpu.memory_space<vmem>>, vector<1x1x32xf32>
    %184 = vector.shape_cast %183 : vector<1x1x32xf32> to vector<1x32xf32>
    %c1_79 = arith.constant 1 : index
    %c0_80 = arith.constant 0 : index
    %c0_81 = arith.constant 0 : index
    %185 = vector.load %arg5[%c1_79, %c0_80, %c0_81] : memref<2x32x96xf32, #tpu.memory_space<vmem>>, vector<1x32x96xf32>
    %186 = vector.shape_cast %185 : vector<1x32x96xf32> to vector<32x96xf32>
    %c1_82 = arith.constant 1 : index
    %c0_83 = arith.constant 0 : index
    %c0_84 = arith.constant 0 : index
    %187 = vector.load %arg6[%c1_82, %c0_83, %c0_84] : memref<2x1x96xf32, #tpu.memory_space<vmem>>, vector<1x1x96xf32>
    %188 = vector.shape_cast %187 : vector<1x1x96xf32> to vector<1x96xf32>
    %c1_85 = arith.constant 1 : index
    %c0_86 = arith.constant 0 : index
    %c0_87 = arith.constant 0 : index
    %189 = vector.load %arg7[%c1_85, %c0_86, %c0_87] : memref<2x32x32xf32, #tpu.memory_space<vmem>>, vector<1x32x32xf32>
    %190 = vector.shape_cast %189 : vector<1x32x32xf32> to vector<32x32xf32>
    %c1_88 = arith.constant 1 : index
    %c0_89 = arith.constant 0 : index
    %c0_90 = arith.constant 0 : index
    %191 = vector.load %arg8[%c1_88, %c0_89, %c0_90] : memref<2x1x32xf32, #tpu.memory_space<vmem>>, vector<1x1x32xf32>
    %192 = vector.shape_cast %191 : vector<1x1x32xf32> to vector<1x32xf32>
    %c1_91 = arith.constant 1 : index
    %c0_92 = arith.constant 0 : index
    %c0_93 = arith.constant 0 : index
    %193 = vector.load %arg9[%c1_91, %c0_92, %c0_93] : memref<2x1x32xf32, #tpu.memory_space<vmem>>, vector<1x1x32xf32>
    %194 = vector.shape_cast %193 : vector<1x1x32xf32> to vector<1x32xf32>
    %c1_94 = arith.constant 1 : index
    %c0_95 = arith.constant 0 : index
    %c0_96 = arith.constant 0 : index
    %195 = vector.load %arg10[%c1_94, %c0_95, %c0_96] : memref<2x1x32xf32, #tpu.memory_space<vmem>>, vector<1x1x32xf32>
    %196 = vector.shape_cast %195 : vector<1x1x32xf32> to vector<1x32xf32>
    %c1_97 = arith.constant 1 : index
    %c0_98 = arith.constant 0 : index
    %c0_99 = arith.constant 0 : index
    %197 = vector.load %arg11[%c1_97, %c0_98, %c0_99] : memref<2x32x128xf32, #tpu.memory_space<vmem>>, vector<1x32x128xf32>
    %198 = vector.shape_cast %197 : vector<1x32x128xf32> to vector<32x128xf32>
    %c1_100 = arith.constant 1 : index
    %c0_101 = arith.constant 0 : index
    %c0_102 = arith.constant 0 : index
    %199 = vector.load %arg12[%c1_100, %c0_101, %c0_102] : memref<2x1x128xf32, #tpu.memory_space<vmem>>, vector<1x1x128xf32>
    %200 = vector.shape_cast %199 : vector<1x1x128xf32> to vector<1x128xf32>
    %c1_103 = arith.constant 1 : index
    %c0_104 = arith.constant 0 : index
    %c0_105 = arith.constant 0 : index
    %201 = vector.load %arg13[%c1_103, %c0_104, %c0_105] : memref<2x128x32xf32, #tpu.memory_space<vmem>>, vector<1x128x32xf32>
    %202 = vector.shape_cast %201 : vector<1x128x32xf32> to vector<128x32xf32>
    %c1_106 = arith.constant 1 : index
    %c0_107 = arith.constant 0 : index
    %c0_108 = arith.constant 0 : index
    %203 = vector.load %arg14[%c1_106, %c0_107, %c0_108] : memref<2x1x32xf32, #tpu.memory_space<vmem>>, vector<1x1x32xf32>
    %204 = vector.shape_cast %203 : vector<1x1x32xf32> to vector<1x32xf32>
    %cst_109 = arith.constant dense<0.000000e+00> : vector<8xf32>
    %205 = vector.multi_reduction <add>, %180, %cst_109 [1] : vector<8x32xf32> to vector<8xf32>
    %206 = vector.shape_cast %205 : vector<8xf32> to vector<8x1xf32>
    %cst_110 = arith.constant 3.200000e+01 : f32
    %207 = vector.broadcast %cst_110 : f32 to vector<8x1xf32>
    %208 = arith.divf %206, %207 : vector<8x1xf32>
    %209 = vector.broadcast %208 : vector<8x1xf32> to vector<8x32xf32>
    %210 = arith.subf %180, %209 : vector<8x32xf32>
    %211 = arith.mulf %210, %210 : vector<8x32xf32>
    %cst_111 = arith.constant dense<0.000000e+00> : vector<8xf32>
    %212 = vector.multi_reduction <add>, %211, %cst_111 [1] : vector<8x32xf32> to vector<8xf32>
    %213 = vector.shape_cast %212 : vector<8xf32> to vector<8x1xf32>
    %cst_112 = arith.constant 3.200000e+01 : f32
    %214 = vector.broadcast %cst_112 : f32 to vector<8x1xf32>
    %215 = arith.divf %213, %214 : vector<8x1xf32>
    %cst_113 = arith.constant 9.99999974E-6 : f32
    %216 = vector.broadcast %cst_113 : f32 to vector<8x1xf32>
    %217 = arith.addf %215, %216 : vector<8x1xf32>
    %218 = math.rsqrt %217 : vector<8x1xf32>
    %219 = vector.broadcast %218 : vector<8x1xf32> to vector<8x32xf32>
    %220 = arith.mulf %210, %219 : vector<8x32xf32>
    %221 = vector.broadcast %182 : vector<1x32xf32> to vector<8x32xf32>
    %222 = arith.mulf %220, %221 : vector<8x32xf32>
    %223 = vector.broadcast %184 : vector<1x32xf32> to vector<8x32xf32>
    %224 = arith.addf %222, %223 : vector<8x32xf32>
    %cst_114 = arith.constant dense<0.000000e+00> : vector<8x96xf32>
    %225 = tpu.matmul %224, %186, %cst_114 {dimension_numbers = #tpu.dot_dimension_numbers<[1], [0], [0], [1], [0, 0, 1, 1], [], []>} : vector<8x32xf32>, vector<32x96xf32>, vector<8x96xf32> -> vector<8x96xf32>
    %226 = vector.broadcast %188 : vector<1x96xf32> to vector<8x96xf32>
    %227 = arith.addf %225, %226 : vector<8x96xf32>
    %228 = vector.extract_strided_slice %227 {offsets = [0, 0], sizes = [8, 8], strides = [1, 1]} : vector<8x96xf32> to vector<8x8xf32>
    %229 = vector.shape_cast %228 : vector<8x8xf32> to vector<1x8x8xf32>
    %230 = vector.extract_strided_slice %227 {offsets = [0, 32], sizes = [8, 8], strides = [1, 1]} : vector<8x96xf32> to vector<8x8xf32>
    %231 = vector.shape_cast %230 : vector<8x8xf32> to vector<1x8x8xf32>
    %232 = vector.extract_strided_slice %227 {offsets = [0, 64], sizes = [8, 8], strides = [1, 1]} : vector<8x96xf32> to vector<8x8xf32>
    %233 = vector.shape_cast %232 : vector<8x8xf32> to vector<1x8x8xf32>
    "tpu.trace_start"() <{level = 10 : i32, message = "bqd,bkd->bqk"}> : () -> ()
    %cst_115 = arith.constant dense<0.000000e+00> : vector<1x8x8xf32>
    %234 = tpu.matmul %229, %231, %cst_115 {dimension_numbers = #tpu.dot_dimension_numbers<[2], [2], [1], [1], [0, 0, 0, 1, 1, 1], [0], [0]>} : vector<1x8x8xf32>, vector<1x8x8xf32>, vector<1x8x8xf32> -> vector<1x8x8xf32>
    "tpu.trace_stop"() : () -> ()
    %cst_116 = arith.constant 0.353553385 : f32
    %235 = vector.broadcast %cst_116 : f32 to vector<1x8x8xf32>
    %236 = arith.mulf %234, %235 : vector<1x8x8xf32>
    %237 = vector.shape_cast %1 : vector<8x8xf32> to vector<1x8x8xf32>
    %238 = arith.addf %236, %237 : vector<1x8x8xf32>
    %cst_117 = arith.constant dense<0xFF800000> : vector<1x8xf32>
    %239 = vector.multi_reduction <maximumf>, %238, %cst_117 [2] : vector<1x8x8xf32> to vector<1x8xf32>
    %240 = vector.shape_cast %239 : vector<1x8xf32> to vector<1x8x1xf32>
    %241 = vector.broadcast %240 : vector<1x8x1xf32> to vector<1x8x8xf32>
    %242 = arith.subf %238, %241 : vector<1x8x8xf32>
    %243 = math.exp %242 : vector<1x8x8xf32>
    %cst_118 = arith.constant dense<0.000000e+00> : vector<1x8xf32>
    %244 = vector.multi_reduction <add>, %243, %cst_118 [2] : vector<1x8x8xf32> to vector<1x8xf32>
    %245 = vector.shape_cast %244 : vector<1x8xf32> to vector<1x8x1xf32>
    %246 = tpu.reciprocal %245 {approx = true} : vector<1x8x1xf32> -> vector<1x8x1xf32>
    %247 = vector.broadcast %246 : vector<1x8x1xf32> to vector<1x8x8xf32>
    %248 = arith.mulf %243, %247 : vector<1x8x8xf32>
    "tpu.trace_start"() <{level = 10 : i32, message = "bqk,bkd->bqd"}> : () -> ()
    %cst_119 = arith.constant dense<0.000000e+00> : vector<1x8x8xf32>
    %249 = tpu.matmul %248, %233, %cst_119 {dimension_numbers = #tpu.dot_dimension_numbers<[2], [1], [1], [2], [0, 0, 0, 1, 1, 2], [0], [0]>} : vector<1x8x8xf32>, vector<1x8x8xf32>, vector<1x8x8xf32> -> vector<1x8x8xf32>
    "tpu.trace_stop"() : () -> ()
    %250 = vector.shape_cast %249 : vector<1x8x8xf32> to vector<8x8xf32>
    %251 = vector.extract_strided_slice %227 {offsets = [0, 8], sizes = [8, 8], strides = [1, 1]} : vector<8x96xf32> to vector<8x8xf32>
    %252 = vector.shape_cast %251 : vector<8x8xf32> to vector<1x8x8xf32>
    %253 = vector.extract_strided_slice %227 {offsets = [0, 40], sizes = [8, 8], strides = [1, 1]} : vector<8x96xf32> to vector<8x8xf32>
    %254 = vector.shape_cast %253 : vector<8x8xf32> to vector<1x8x8xf32>
    %255 = vector.extract_strided_slice %227 {offsets = [0, 72], sizes = [8, 8], strides = [1, 1]} : vector<8x96xf32> to vector<8x8xf32>
    %256 = vector.shape_cast %255 : vector<8x8xf32> to vector<1x8x8xf32>
    "tpu.trace_start"() <{level = 10 : i32, message = "bqd,bkd->bqk"}> : () -> ()
    %cst_120 = arith.constant dense<0.000000e+00> : vector<1x8x8xf32>
    %257 = tpu.matmul %252, %254, %cst_120 {dimension_numbers = #tpu.dot_dimension_numbers<[2], [2], [1], [1], [0, 0, 0, 1, 1, 1], [0], [0]>} : vector<1x8x8xf32>, vector<1x8x8xf32>, vector<1x8x8xf32> -> vector<1x8x8xf32>
    "tpu.trace_stop"() : () -> ()
    %cst_121 = arith.constant 0.353553385 : f32
    %258 = vector.broadcast %cst_121 : f32 to vector<1x8x8xf32>
    %259 = arith.mulf %257, %258 : vector<1x8x8xf32>
    %260 = vector.shape_cast %1 : vector<8x8xf32> to vector<1x8x8xf32>
    %261 = arith.addf %259, %260 : vector<1x8x8xf32>
    %cst_122 = arith.constant dense<0xFF800000> : vector<1x8xf32>
    %262 = vector.multi_reduction <maximumf>, %261, %cst_122 [2] : vector<1x8x8xf32> to vector<1x8xf32>
    %263 = vector.shape_cast %262 : vector<1x8xf32> to vector<1x8x1xf32>
    %264 = vector.broadcast %263 : vector<1x8x1xf32> to vector<1x8x8xf32>
    %265 = arith.subf %261, %264 : vector<1x8x8xf32>
    %266 = math.exp %265 : vector<1x8x8xf32>
    %cst_123 = arith.constant dense<0.000000e+00> : vector<1x8xf32>
    %267 = vector.multi_reduction <add>, %266, %cst_123 [2] : vector<1x8x8xf32> to vector<1x8xf32>
    %268 = vector.shape_cast %267 : vector<1x8xf32> to vector<1x8x1xf32>
    %269 = tpu.reciprocal %268 {approx = true} : vector<1x8x1xf32> -> vector<1x8x1xf32>
    %270 = vector.broadcast %269 : vector<1x8x1xf32> to vector<1x8x8xf32>
    %271 = arith.mulf %266, %270 : vector<1x8x8xf32>
    "tpu.trace_start"() <{level = 10 : i32, message = "bqk,bkd->bqd"}> : () -> ()
    %cst_124 = arith.constant dense<0.000000e+00> : vector<1x8x8xf32>
    %272 = tpu.matmul %271, %256, %cst_124 {dimension_numbers = #tpu.dot_dimension_numbers<[2], [1], [1], [2], [0, 0, 0, 1, 1, 2], [0], [0]>} : vector<1x8x8xf32>, vector<1x8x8xf32>, vector<1x8x8xf32> -> vector<1x8x8xf32>
    "tpu.trace_stop"() : () -> ()
    %273 = vector.shape_cast %272 : vector<1x8x8xf32> to vector<8x8xf32>
    %274 = vector.extract_strided_slice %227 {offsets = [0, 16], sizes = [8, 8], strides = [1, 1]} : vector<8x96xf32> to vector<8x8xf32>
    %275 = vector.shape_cast %274 : vector<8x8xf32> to vector<1x8x8xf32>
    %276 = vector.extract_strided_slice %227 {offsets = [0, 48], sizes = [8, 8], strides = [1, 1]} : vector<8x96xf32> to vector<8x8xf32>
    %277 = vector.shape_cast %276 : vector<8x8xf32> to vector<1x8x8xf32>
    %278 = vector.extract_strided_slice %227 {offsets = [0, 80], sizes = [8, 8], strides = [1, 1]} : vector<8x96xf32> to vector<8x8xf32>
    %279 = vector.shape_cast %278 : vector<8x8xf32> to vector<1x8x8xf32>
    "tpu.trace_start"() <{level = 10 : i32, message = "bqd,bkd->bqk"}> : () -> ()
    %cst_125 = arith.constant dense<0.000000e+00> : vector<1x8x8xf32>
    %280 = tpu.matmul %275, %277, %cst_125 {dimension_numbers = #tpu.dot_dimension_numbers<[2], [2], [1], [1], [0, 0, 0, 1, 1, 1], [0], [0]>} : vector<1x8x8xf32>, vector<1x8x8xf32>, vector<1x8x8xf32> -> vector<1x8x8xf32>
    "tpu.trace_stop"() : () -> ()
    %cst_126 = arith.constant 0.353553385 : f32
    %281 = vector.broadcast %cst_126 : f32 to vector<1x8x8xf32>
    %282 = arith.mulf %280, %281 : vector<1x8x8xf32>
    %283 = vector.shape_cast %1 : vector<8x8xf32> to vector<1x8x8xf32>
    %284 = arith.addf %282, %283 : vector<1x8x8xf32>
    %cst_127 = arith.constant dense<0xFF800000> : vector<1x8xf32>
    %285 = vector.multi_reduction <maximumf>, %284, %cst_127 [2] : vector<1x8x8xf32> to vector<1x8xf32>
    %286 = vector.shape_cast %285 : vector<1x8xf32> to vector<1x8x1xf32>
    %287 = vector.broadcast %286 : vector<1x8x1xf32> to vector<1x8x8xf32>
    %288 = arith.subf %284, %287 : vector<1x8x8xf32>
    %289 = math.exp %288 : vector<1x8x8xf32>
    %cst_128 = arith.constant dense<0.000000e+00> : vector<1x8xf32>
    %290 = vector.multi_reduction <add>, %289, %cst_128 [2] : vector<1x8x8xf32> to vector<1x8xf32>
    %291 = vector.shape_cast %290 : vector<1x8xf32> to vector<1x8x1xf32>
    %292 = tpu.reciprocal %291 {approx = true} : vector<1x8x1xf32> -> vector<1x8x1xf32>
    %293 = vector.broadcast %292 : vector<1x8x1xf32> to vector<1x8x8xf32>
    %294 = arith.mulf %289, %293 : vector<1x8x8xf32>
    "tpu.trace_start"() <{level = 10 : i32, message = "bqk,bkd->bqd"}> : () -> ()
    %cst_129 = arith.constant dense<0.000000e+00> : vector<1x8x8xf32>
    %295 = tpu.matmul %294, %279, %cst_129 {dimension_numbers = #tpu.dot_dimension_numbers<[2], [1], [1], [2], [0, 0, 0, 1, 1, 2], [0], [0]>} : vector<1x8x8xf32>, vector<1x8x8xf32>, vector<1x8x8xf32> -> vector<1x8x8xf32>
    "tpu.trace_stop"() : () -> ()
    %296 = vector.shape_cast %295 : vector<1x8x8xf32> to vector<8x8xf32>
    %297 = vector.extract_strided_slice %227 {offsets = [0, 24], sizes = [8, 8], strides = [1, 1]} : vector<8x96xf32> to vector<8x8xf32>
    %298 = vector.shape_cast %297 : vector<8x8xf32> to vector<1x8x8xf32>
    %299 = vector.extract_strided_slice %227 {offsets = [0, 56], sizes = [8, 8], strides = [1, 1]} : vector<8x96xf32> to vector<8x8xf32>
    %300 = vector.shape_cast %299 : vector<8x8xf32> to vector<1x8x8xf32>
    %301 = vector.extract_strided_slice %227 {offsets = [0, 88], sizes = [8, 8], strides = [1, 1]} : vector<8x96xf32> to vector<8x8xf32>
    %302 = vector.shape_cast %301 : vector<8x8xf32> to vector<1x8x8xf32>
    "tpu.trace_start"() <{level = 10 : i32, message = "bqd,bkd->bqk"}> : () -> ()
    %cst_130 = arith.constant dense<0.000000e+00> : vector<1x8x8xf32>
    %303 = tpu.matmul %298, %300, %cst_130 {dimension_numbers = #tpu.dot_dimension_numbers<[2], [2], [1], [1], [0, 0, 0, 1, 1, 1], [0], [0]>} : vector<1x8x8xf32>, vector<1x8x8xf32>, vector<1x8x8xf32> -> vector<1x8x8xf32>
    "tpu.trace_stop"() : () -> ()
    %cst_131 = arith.constant 0.353553385 : f32
    %304 = vector.broadcast %cst_131 : f32 to vector<1x8x8xf32>
    %305 = arith.mulf %303, %304 : vector<1x8x8xf32>
    %306 = vector.shape_cast %1 : vector<8x8xf32> to vector<1x8x8xf32>
    %307 = arith.addf %305, %306 : vector<1x8x8xf32>
    %cst_132 = arith.constant dense<0xFF800000> : vector<1x8xf32>
    %308 = vector.multi_reduction <maximumf>, %307, %cst_132 [2] : vector<1x8x8xf32> to vector<1x8xf32>
    %309 = vector.shape_cast %308 : vector<1x8xf32> to vector<1x8x1xf32>
    %310 = vector.broadcast %309 : vector<1x8x1xf32> to vector<1x8x8xf32>
    %311 = arith.subf %307, %310 : vector<1x8x8xf32>
    %312 = math.exp %311 : vector<1x8x8xf32>
    %cst_133 = arith.constant dense<0.000000e+00> : vector<1x8xf32>
    %313 = vector.multi_reduction <add>, %312, %cst_133 [2] : vector<1x8x8xf32> to vector<1x8xf32>
    %314 = vector.shape_cast %313 : vector<1x8xf32> to vector<1x8x1xf32>
    %315 = tpu.reciprocal %314 {approx = true} : vector<1x8x1xf32> -> vector<1x8x1xf32>
    %316 = vector.broadcast %315 : vector<1x8x1xf32> to vector<1x8x8xf32>
    %317 = arith.mulf %312, %316 : vector<1x8x8xf32>
    "tpu.trace_start"() <{level = 10 : i32, message = "bqk,bkd->bqd"}> : () -> ()
    %cst_134 = arith.constant dense<0.000000e+00> : vector<1x8x8xf32>
    %318 = tpu.matmul %317, %302, %cst_134 {dimension_numbers = #tpu.dot_dimension_numbers<[2], [1], [1], [2], [0, 0, 0, 1, 1, 2], [0], [0]>} : vector<1x8x8xf32>, vector<1x8x8xf32>, vector<1x8x8xf32> -> vector<1x8x8xf32>
    "tpu.trace_stop"() : () -> ()
    %319 = vector.shape_cast %318 : vector<1x8x8xf32> to vector<8x8xf32>
    %320 = tpu.concatenate %250, %273, %296, %319 in 1 : vector<8x8xf32>, vector<8x8xf32>, vector<8x8xf32>, vector<8x8xf32> -> vector<8x32xf32>
    %cst_135 = arith.constant dense<0.000000e+00> : vector<8x32xf32>
    %321 = tpu.matmul %320, %190, %cst_135 {dimension_numbers = #tpu.dot_dimension_numbers<[1], [0], [0], [1], [0, 0, 1, 1], [], []>} : vector<8x32xf32>, vector<32x32xf32>, vector<8x32xf32> -> vector<8x32xf32>
    %322 = arith.addf %180, %321 : vector<8x32xf32>
    %323 = vector.broadcast %192 : vector<1x32xf32> to vector<8x32xf32>
    %324 = arith.addf %322, %323 : vector<8x32xf32>
    %cst_136 = arith.constant dense<0.000000e+00> : vector<8xf32>
    %325 = vector.multi_reduction <add>, %324, %cst_136 [1] : vector<8x32xf32> to vector<8xf32>
    %326 = vector.shape_cast %325 : vector<8xf32> to vector<8x1xf32>
    %cst_137 = arith.constant 3.200000e+01 : f32
    %327 = vector.broadcast %cst_137 : f32 to vector<8x1xf32>
    %328 = arith.divf %326, %327 : vector<8x1xf32>
    %329 = vector.broadcast %328 : vector<8x1xf32> to vector<8x32xf32>
    %330 = arith.subf %324, %329 : vector<8x32xf32>
    %331 = arith.mulf %330, %330 : vector<8x32xf32>
    %cst_138 = arith.constant dense<0.000000e+00> : vector<8xf32>
    %332 = vector.multi_reduction <add>, %331, %cst_138 [1] : vector<8x32xf32> to vector<8xf32>
    %333 = vector.shape_cast %332 : vector<8xf32> to vector<8x1xf32>
    %cst_139 = arith.constant 3.200000e+01 : f32
    %334 = vector.broadcast %cst_139 : f32 to vector<8x1xf32>
    %335 = arith.divf %333, %334 : vector<8x1xf32>
    %cst_140 = arith.constant 9.99999974E-6 : f32
    %336 = vector.broadcast %cst_140 : f32 to vector<8x1xf32>
    %337 = arith.addf %335, %336 : vector<8x1xf32>
    %338 = math.rsqrt %337 : vector<8x1xf32>
    %339 = vector.broadcast %338 : vector<8x1xf32> to vector<8x32xf32>
    %340 = arith.mulf %330, %339 : vector<8x32xf32>
    %341 = vector.broadcast %194 : vector<1x32xf32> to vector<8x32xf32>
    %342 = arith.mulf %340, %341 : vector<8x32xf32>
    %343 = vector.broadcast %196 : vector<1x32xf32> to vector<8x32xf32>
    %344 = arith.addf %342, %343 : vector<8x32xf32>
    %cst_141 = arith.constant dense<0.000000e+00> : vector<8x128xf32>
    %345 = tpu.matmul %344, %198, %cst_141 {dimension_numbers = #tpu.dot_dimension_numbers<[1], [0], [0], [1], [0, 0, 1, 1], [], []>} : vector<8x32xf32>, vector<32x128xf32>, vector<8x128xf32> -> vector<8x128xf32>
    %346 = vector.broadcast %200 : vector<1x128xf32> to vector<8x128xf32>
    %347 = arith.addf %345, %346 : vector<8x128xf32>
    %cst_142 = arith.constant 1.702000e+00 : f32
    %348 = vector.broadcast %cst_142 : f32 to vector<8x128xf32>
    %349 = arith.mulf %348, %347 : vector<8x128xf32>
    %350 = arith.negf %349 : vector<8x128xf32>
    %351 = math.exp %350 : vector<8x128xf32>
    %cst_143 = arith.constant 1.000000e+00 : f32
    %352 = vector.broadcast %cst_143 : f32 to vector<8x128xf32>
    %353 = arith.addf %352, %351 : vector<8x128xf32>
    %354 = arith.divf %352, %353 : vector<8x128xf32>
    %355 = arith.mulf %347, %354 : vector<8x128xf32>
    %cst_144 = arith.constant dense<0.000000e+00> : vector<8x32xf32>
    %356 = tpu.matmul %355, %202, %cst_144 {dimension_numbers = #tpu.dot_dimension_numbers<[1], [0], [0], [1], [0, 0, 1, 1], [], []>} : vector<8x128xf32>, vector<128x32xf32>, vector<8x32xf32> -> vector<8x32xf32>
    %357 = vector.broadcast %204 : vector<1x32xf32> to vector<8x32xf32>
    %358 = arith.addf %356, %357 : vector<8x32xf32>
    %359 = arith.addf %324, %358 : vector<8x32xf32>
    %c0_145 = arith.constant 0 : index
    %c0_146 = arith.constant 0 : index
    %360 = vector.load %arg15[%c0_145, %c0_146] : memref<1x32xf32, #tpu.memory_space<vmem>>, vector<1x32xf32>
    %c0_147 = arith.constant 0 : index
    %c0_148 = arith.constant 0 : index
    %361 = vector.load %arg16[%c0_147, %c0_148] : memref<1x32xf32, #tpu.memory_space<vmem>>, vector<1x32xf32>
    %cst_149 = arith.constant dense<0.000000e+00> : vector<8xf32>
    %362 = vector.multi_reduction <add>, %359, %cst_149 [1] : vector<8x32xf32> to vector<8xf32>
    %363 = vector.shape_cast %362 : vector<8xf32> to vector<8x1xf32>
    %cst_150 = arith.constant 3.200000e+01 : f32
    %364 = vector.broadcast %cst_150 : f32 to vector<8x1xf32>
    %365 = arith.divf %363, %364 : vector<8x1xf32>
    %366 = vector.broadcast %365 : vector<8x1xf32> to vector<8x32xf32>
    %367 = arith.subf %359, %366 : vector<8x32xf32>
    %368 = arith.mulf %367, %367 : vector<8x32xf32>
    %cst_151 = arith.constant dense<0.000000e+00> : vector<8xf32>
    %369 = vector.multi_reduction <add>, %368, %cst_151 [1] : vector<8x32xf32> to vector<8xf32>
    %370 = vector.shape_cast %369 : vector<8xf32> to vector<8x1xf32>
    %cst_152 = arith.constant 3.200000e+01 : f32
    %371 = vector.broadcast %cst_152 : f32 to vector<8x1xf32>
    %372 = arith.divf %370, %371 : vector<8x1xf32>
    %cst_153 = arith.constant 9.99999974E-6 : f32
    %373 = vector.broadcast %cst_153 : f32 to vector<8x1xf32>
    %374 = arith.addf %372, %373 : vector<8x1xf32>
    %375 = math.rsqrt %374 : vector<8x1xf32>
    %376 = vector.broadcast %375 : vector<8x1xf32> to vector<8x32xf32>
    %377 = arith.mulf %367, %376 : vector<8x32xf32>
    %378 = vector.broadcast %360 : vector<1x32xf32> to vector<8x32xf32>
    %379 = arith.mulf %377, %378 : vector<8x32xf32>
    %380 = vector.broadcast %361 : vector<1x32xf32> to vector<8x32xf32>
    %381 = arith.addf %379, %380 : vector<8x32xf32>
    %382 = vector.shape_cast %381 : vector<8x32xf32> to vector<1x8x32xf32>
    %c0_154 = arith.constant 0 : index
    %c0_155 = arith.constant 0 : index
    %383 = vector.load %arg2[%c0_154, %c0_155] : memref<1x8xf32, #tpu.memory_space<vmem>>, vector<1x8xf32>
    %384 = vector.shape_cast %383 : vector<1x8xf32> to vector<1x8x1xf32>
    %385 = vector.broadcast %384 : vector<1x8x1xf32> to vector<1x8x32xf32>
    %386 = arith.mulf %382, %385 : vector<1x8x32xf32>
    %cst_156 = arith.constant dense<0.000000e+00> : vector<1x32xf32>
    %387 = vector.multi_reduction <add>, %386, %cst_156 [1] : vector<1x8x32xf32> to vector<1x32xf32>
    %c0_157 = arith.constant 0 : index
    %c0_158 = arith.constant 0 : index
    %388 = vector.load %arg17[%c0_157, %c0_158] : memref<32x32xf32, #tpu.memory_space<vmem>>, vector<32x32xf32>
    %cst_159 = arith.constant dense<0.000000e+00> : vector<1x32xf32>
    %389 = tpu.matmul %387, %388, %cst_159 {dimension_numbers = #tpu.dot_dimension_numbers<[1], [0], [0], [1], [0, 0, 1, 1], [], []>} : vector<1x32xf32>, vector<32x32xf32>, vector<1x32xf32> -> vector<1x32xf32>
    %390 = arith.mulf %389, %389 : vector<1x32xf32>
    %cst_160 = arith.constant dense<0.000000e+00> : vector<1xf32>
    %391 = vector.multi_reduction <add>, %390, %cst_160 [1] : vector<1x32xf32> to vector<1xf32>
    %392 = vector.shape_cast %391 : vector<1xf32> to vector<1x1xf32>
    %cst_161 = arith.constant 1.000000e-24 : f32
    %393 = vector.broadcast %cst_161 : f32 to vector<1x1xf32>
    %394 = arith.maximumf %392, %393 : vector<1x1xf32>
    %395 = math.rsqrt %394 : vector<1x1xf32>
    %396 = vector.broadcast %395 : vector<1x1xf32> to vector<1x32xf32>
    %397 = arith.mulf %389, %396 : vector<1x32xf32>
    %c0_162 = arith.constant 0 : index
    %c0_163 = arith.constant 0 : index
    %398 = vector.load %arg18[%c0_162, %c0_163] : memref<1x32xf32, #tpu.memory_space<vmem>>, vector<1x32xf32>
    tpu.vector_store %arg18[%c0_162, %c0_163], %397 {strides = array<i32>} : memref<1x32xf32, #tpu.memory_space<vmem>>, vector<1x32xf32>,
    return
  }
}

module attributes {stable_mosaic.version = 11 : i64} {
  func.func @_vit_reward_kernel(%arg0: memref<16x192xf32, #tpu.memory_space<vmem>>, %arg1: memref<192x32xf32, #tpu.memory_space<vmem>>, %arg2: memref<8x32xf32, #tpu.memory_space<vmem>>, %arg3: memref<8x8xf32, #tpu.memory_space<vmem>>, %arg4: memref<1x32xf32, #tpu.memory_space<vmem>>, %arg5: memref<1x32xf32, #tpu.memory_space<vmem>>, %arg6: memref<2x1x32xf32, #tpu.memory_space<vmem>>, %arg7: memref<2x1x32xf32, #tpu.memory_space<vmem>>, %arg8: memref<2x32x96xf32, #tpu.memory_space<vmem>>, %arg9: memref<2x1x96xf32, #tpu.memory_space<vmem>>, %arg10: memref<2x32x32xf32, #tpu.memory_space<vmem>>, %arg11: memref<2x1x32xf32, #tpu.memory_space<vmem>>, %arg12: memref<2x1x32xf32, #tpu.memory_space<vmem>>, %arg13: memref<2x1x32xf32, #tpu.memory_space<vmem>>, %arg14: memref<2x32x128xf32, #tpu.memory_space<vmem>>, %arg15: memref<2x1x128xf32, #tpu.memory_space<vmem>>, %arg16: memref<2x128x32xf32, #tpu.memory_space<vmem>>, %arg17: memref<2x1x32xf32, #tpu.memory_space<vmem>>, %arg18: memref<1x32xf32, #tpu.memory_space<vmem>>, %arg19: memref<1x32xf32, #tpu.memory_space<vmem>>, %arg20: memref<32x32xf32, #tpu.memory_space<vmem>>, %arg21: memref<1x32xf32, #tpu.memory_space<vmem>>, %arg22: memref<1x2xf32, #tpu.memory_space<vmem>>) attributes {dimension_semantics = [], scalar_prefetch = 0 : i64, scratch_operands = 0 : i64, tpu.core_type = #tpu.core_type<tc>} {
    %c0 = arith.constant 0 : index
    %c0_0 = arith.constant 0 : index
    %0 = vector.load %arg0[%c0, %c0_0] : memref<16x192xf32, #tpu.memory_space<vmem>>, vector<16x192xf32>
    %c0_1 = arith.constant 0 : index
    %c0_2 = arith.constant 0 : index
    %1 = vector.load %arg1[%c0_1, %c0_2] : memref<192x32xf32, #tpu.memory_space<vmem>>, vector<192x32xf32>
    %cst = arith.constant dense<0.000000e+00> : vector<16x32xf32>
    %2 = tpu.matmul %0, %1, %cst {dimension_numbers = #tpu.dot_dimension_numbers<[1], [0], [0], [1], [0, 0, 1, 1], [], []>} : vector<16x192xf32>, vector<192x32xf32>, vector<16x32xf32> -> vector<16x32xf32>
    %3 = vector.shape_cast %2 : vector<16x32xf32> to vector<2x8x32xf32>
    %c0_3 = arith.constant 0 : index
    %c0_4 = arith.constant 0 : index
    %4 = vector.load %arg2[%c0_3, %c0_4] : memref<8x32xf32, #tpu.memory_space<vmem>>, vector<8x32xf32>
    %5 = vector.shape_cast %4 : vector<8x32xf32> to vector<1x8x32xf32>
    %6 = vector.broadcast %5 : vector<1x8x32xf32> to vector<2x8x32xf32>
    %7 = arith.addf %3, %6 : vector<2x8x32xf32>
    %8 = vector.shape_cast %7 : vector<2x8x32xf32> to vector<16x32xf32>
    %c0_5 = arith.constant 0 : index
    %c0_6 = arith.constant 0 : index
    %9 = vector.load %arg4[%c0_5, %c0_6] : memref<1x32xf32, #tpu.memory_space<vmem>>, vector<1x32xf32>
    %c0_7 = arith.constant 0 : index
    %c0_8 = arith.constant 0 : index
    %10 = vector.load %arg5[%c0_7, %c0_8] : memref<1x32xf32, #tpu.memory_space<vmem>>, vector<1x32xf32>
    %cst_9 = arith.constant dense<0.000000e+00> : vector<16xf32>
    %11 = vector.multi_reduction <add>, %8, %cst_9 [1] : vector<16x32xf32> to vector<16xf32>
    %12 = vector.shape_cast %11 : vector<16xf32> to vector<16x1xf32>
    %cst_10 = arith.constant 3.200000e+01 : f32
    %13 = vector.broadcast %cst_10 : f32 to vector<16x1xf32>
    %14 = arith.divf %12, %13 : vector<16x1xf32>
    %15 = vector.broadcast %14 : vector<16x1xf32> to vector<16x32xf32>
    %16 = arith.subf %8, %15 : vector<16x32xf32>
    %17 = arith.mulf %16, %16 : vector<16x32xf32>
    %cst_11 = arith.constant dense<0.000000e+00> : vector<16xf32>
    %18 = vector.multi_reduction <add>, %17, %cst_11 [1] : vector<16x32xf32> to vector<16xf32>
    %19 = vector.shape_cast %18 : vector<16xf32> to vector<16x1xf32>
    %cst_12 = arith.constant 3.200000e+01 : f32
    %20 = vector.broadcast %cst_12 : f32 to vector<16x1xf32>
    %21 = arith.divf %19, %20 : vector<16x1xf32>
    %cst_13 = arith.constant 9.99999974E-6 : f32
    %22 = vector.broadcast %cst_13 : f32 to vector<16x1xf32>
    %23 = arith.addf %21, %22 : vector<16x1xf32>
    %24 = math.rsqrt %23 : vector<16x1xf32>
    %25 = vector.broadcast %24 : vector<16x1xf32> to vector<16x32xf32>
    %26 = arith.mulf %16, %25 : vector<16x32xf32>
    %27 = vector.broadcast %9 : vector<1x32xf32> to vector<16x32xf32>
    %28 = arith.mulf %26, %27 : vector<16x32xf32>
    %29 = vector.broadcast %10 : vector<1x32xf32> to vector<16x32xf32>
    %30 = arith.addf %28, %29 : vector<16x32xf32>
    %c0_14 = arith.constant 0 : index
    %c0_15 = arith.constant 0 : index
    %31 = vector.load %arg3[%c0_14, %c0_15] : memref<8x8xf32, #tpu.memory_space<vmem>>, vector<8x8xf32>
    %c0_16 = arith.constant 0 : index
    %c0_17 = arith.constant 0 : index
    %c0_18 = arith.constant 0 : index
    %32 = vector.load %arg6[%c0_16, %c0_17, %c0_18] : memref<2x1x32xf32, #tpu.memory_space<vmem>>, vector<1x1x32xf32>
    %33 = vector.shape_cast %32 : vector<1x1x32xf32> to vector<1x32xf32>
    %c0_19 = arith.constant 0 : index
    %c0_20 = arith.constant 0 : index
    %c0_21 = arith.constant 0 : index
    %34 = vector.load %arg7[%c0_19, %c0_20, %c0_21] : memref<2x1x32xf32, #tpu.memory_space<vmem>>, vector<1x1x32xf32>
    %35 = vector.shape_cast %34 : vector<1x1x32xf32> to vector<1x32xf32>
    %c0_22 = arith.constant 0 : index
    %c0_23 = arith.constant 0 : index
    %c0_24 = arith.constant 0 : index
    %36 = vector.load %arg8[%c0_22, %c0_23, %c0_24] : memref<2x32x96xf32, #tpu.memory_space<vmem>>, vector<1x32x96xf32>
    %37 = vector.shape_cast %36 : vector<1x32x96xf32> to vector<32x96xf32>
    %c0_25 = arith.constant 0 : index
    %c0_26 = arith.constant 0 : index
    %c0_27 = arith.constant 0 : index
    %38 = vector.load %arg9[%c0_25, %c0_26, %c0_27] : memref<2x1x96xf32, #tpu.memory_space<vmem>>, vector<1x1x96xf32>
    %39 = vector.shape_cast %38 : vector<1x1x96xf32> to vector<1x96xf32>
    %c0_28 = arith.constant 0 : index
    %c0_29 = arith.constant 0 : index
    %c0_30 = arith.constant 0 : index
    %40 = vector.load %arg10[%c0_28, %c0_29, %c0_30] : memref<2x32x32xf32, #tpu.memory_space<vmem>>, vector<1x32x32xf32>
    %41 = vector.shape_cast %40 : vector<1x32x32xf32> to vector<32x32xf32>
    %c0_31 = arith.constant 0 : index
    %c0_32 = arith.constant 0 : index
    %c0_33 = arith.constant 0 : index
    %42 = vector.load %arg11[%c0_31, %c0_32, %c0_33] : memref<2x1x32xf32, #tpu.memory_space<vmem>>, vector<1x1x32xf32>
    %43 = vector.shape_cast %42 : vector<1x1x32xf32> to vector<1x32xf32>
    %c0_34 = arith.constant 0 : index
    %c0_35 = arith.constant 0 : index
    %c0_36 = arith.constant 0 : index
    %44 = vector.load %arg12[%c0_34, %c0_35, %c0_36] : memref<2x1x32xf32, #tpu.memory_space<vmem>>, vector<1x1x32xf32>
    %45 = vector.shape_cast %44 : vector<1x1x32xf32> to vector<1x32xf32>
    %c0_37 = arith.constant 0 : index
    %c0_38 = arith.constant 0 : index
    %c0_39 = arith.constant 0 : index
    %46 = vector.load %arg13[%c0_37, %c0_38, %c0_39] : memref<2x1x32xf32, #tpu.memory_space<vmem>>, vector<1x1x32xf32>
    %47 = vector.shape_cast %46 : vector<1x1x32xf32> to vector<1x32xf32>
    %c0_40 = arith.constant 0 : index
    %c0_41 = arith.constant 0 : index
    %c0_42 = arith.constant 0 : index
    %48 = vector.load %arg14[%c0_40, %c0_41, %c0_42] : memref<2x32x128xf32, #tpu.memory_space<vmem>>, vector<1x32x128xf32>
    %49 = vector.shape_cast %48 : vector<1x32x128xf32> to vector<32x128xf32>
    %c0_43 = arith.constant 0 : index
    %c0_44 = arith.constant 0 : index
    %c0_45 = arith.constant 0 : index
    %50 = vector.load %arg15[%c0_43, %c0_44, %c0_45] : memref<2x1x128xf32, #tpu.memory_space<vmem>>, vector<1x1x128xf32>
    %51 = vector.shape_cast %50 : vector<1x1x128xf32> to vector<1x128xf32>
    %c0_46 = arith.constant 0 : index
    %c0_47 = arith.constant 0 : index
    %c0_48 = arith.constant 0 : index
    %52 = vector.load %arg16[%c0_46, %c0_47, %c0_48] : memref<2x128x32xf32, #tpu.memory_space<vmem>>, vector<1x128x32xf32>
    %53 = vector.shape_cast %52 : vector<1x128x32xf32> to vector<128x32xf32>
    %c0_49 = arith.constant 0 : index
    %c0_50 = arith.constant 0 : index
    %c0_51 = arith.constant 0 : index
    %54 = vector.load %arg17[%c0_49, %c0_50, %c0_51] : memref<2x1x32xf32, #tpu.memory_space<vmem>>, vector<1x1x32xf32>
    %55 = vector.shape_cast %54 : vector<1x1x32xf32> to vector<1x32xf32>
    %cst_52 = arith.constant dense<0.000000e+00> : vector<16xf32>
    %56 = vector.multi_reduction <add>, %30, %cst_52 [1] : vector<16x32xf32> to vector<16xf32>
    %57 = vector.shape_cast %56 : vector<16xf32> to vector<16x1xf32>
    %cst_53 = arith.constant 3.200000e+01 : f32
    %58 = vector.broadcast %cst_53 : f32 to vector<16x1xf32>
    %59 = arith.divf %57, %58 : vector<16x1xf32>
    %60 = vector.broadcast %59 : vector<16x1xf32> to vector<16x32xf32>
    %61 = arith.subf %30, %60 : vector<16x32xf32>
    %62 = arith.mulf %61, %61 : vector<16x32xf32>
    %cst_54 = arith.constant dense<0.000000e+00> : vector<16xf32>
    %63 = vector.multi_reduction <add>, %62, %cst_54 [1] : vector<16x32xf32> to vector<16xf32>
    %64 = vector.shape_cast %63 : vector<16xf32> to vector<16x1xf32>
    %cst_55 = arith.constant 3.200000e+01 : f32
    %65 = vector.broadcast %cst_55 : f32 to vector<16x1xf32>
    %66 = arith.divf %64, %65 : vector<16x1xf32>
    %cst_56 = arith.constant 9.99999974E-6 : f32
    %67 = vector.broadcast %cst_56 : f32 to vector<16x1xf32>
    %68 = arith.addf %66, %67 : vector<16x1xf32>
    %69 = math.rsqrt %68 : vector<16x1xf32>
    %70 = vector.broadcast %69 : vector<16x1xf32> to vector<16x32xf32>
    %71 = arith.mulf %61, %70 : vector<16x32xf32>
    %72 = vector.broadcast %33 : vector<1x32xf32> to vector<16x32xf32>
    %73 = arith.mulf %71, %72 : vector<16x32xf32>
    %74 = vector.broadcast %35 : vector<1x32xf32> to vector<16x32xf32>
    %75 = arith.addf %73, %74 : vector<16x32xf32>
    %cst_57 = arith.constant dense<0.000000e+00> : vector<16x96xf32>
    %76 = tpu.matmul %75, %37, %cst_57 {dimension_numbers = #tpu.dot_dimension_numbers<[1], [0], [0], [1], [0, 0, 1, 1], [], []>} : vector<16x32xf32>, vector<32x96xf32>, vector<16x96xf32> -> vector<16x96xf32>
    %77 = vector.broadcast %39 : vector<1x96xf32> to vector<16x96xf32>
    %78 = arith.addf %76, %77 : vector<16x96xf32>
    %79 = vector.extract_strided_slice %78 {offsets = [0, 0], sizes = [16, 8], strides = [1, 1]} : vector<16x96xf32> to vector<16x8xf32>
    %80 = vector.shape_cast %79 : vector<16x8xf32> to vector<2x8x8xf32>
    %81 = vector.extract_strided_slice %78 {offsets = [0, 32], sizes = [16, 8], strides = [1, 1]} : vector<16x96xf32> to vector<16x8xf32>
    %82 = vector.shape_cast %81 : vector<16x8xf32> to vector<2x8x8xf32>
    %83 = vector.extract_strided_slice %78 {offsets = [0, 64], sizes = [16, 8], strides = [1, 1]} : vector<16x96xf32> to vector<16x8xf32>
    %84 = vector.shape_cast %83 : vector<16x8xf32> to vector<2x8x8xf32>
    "tpu.trace_start"() <{level = 10 : i32, message = "bqd,bkd->bqk"}> : () -> ()
    %cst_58 = arith.constant dense<0.000000e+00> : vector<2x8x8xf32>
    %85 = tpu.matmul %80, %82, %cst_58 {dimension_numbers = #tpu.dot_dimension_numbers<[2], [2], [1], [1], [0, 0, 0, 1, 1, 1], [0], [0]>} : vector<2x8x8xf32>, vector<2x8x8xf32>, vector<2x8x8xf32> -> vector<2x8x8xf32>
    "tpu.trace_stop"() : () -> ()
    %cst_59 = arith.constant 0.353553385 : f32
    %86 = vector.broadcast %cst_59 : f32 to vector<2x8x8xf32>
    %87 = arith.mulf %85, %86 : vector<2x8x8xf32>
    %88 = vector.shape_cast %31 : vector<8x8xf32> to vector<1x8x8xf32>
    %89 = vector.broadcast %88 : vector<1x8x8xf32> to vector<2x8x8xf32>
    %90 = arith.addf %87, %89 : vector<2x8x8xf32>
    %cst_60 = arith.constant dense<0xFF800000> : vector<2x8xf32>
    %91 = vector.multi_reduction <maximumf>, %90, %cst_60 [2] : vector<2x8x8xf32> to vector<2x8xf32>
    %92 = vector.shape_cast %91 : vector<2x8xf32> to vector<2x8x1xf32>
    %93 = vector.broadcast %92 : vector<2x8x1xf32> to vector<2x8x8xf32>
    %94 = arith.subf %90, %93 : vector<2x8x8xf32>
    %95 = math.exp %94 : vector<2x8x8xf32>
    %cst_61 = arith.constant dense<0.000000e+00> : vector<2x8xf32>
    %96 = vector.multi_reduction <add>, %95, %cst_61 [2] : vector<2x8x8xf32> to vector<2x8xf32>
    %97 = vector.shape_cast %96 : vector<2x8xf32> to vector<2x8x1xf32>
    %98 = tpu.reciprocal %97 {approx = true} : vector<2x8x1xf32> -> vector<2x8x1xf32>
    %99 = vector.broadcast %98 : vector<2x8x1xf32> to vector<2x8x8xf32>
    %100 = arith.mulf %95, %99 : vector<2x8x8xf32>
    "tpu.trace_start"() <{level = 10 : i32, message = "bqk,bkd->bqd"}> : () -> ()
    %cst_62 = arith.constant dense<0.000000e+00> : vector<2x8x8xf32>
    %101 = tpu.matmul %100, %84, %cst_62 {dimension_numbers = #tpu.dot_dimension_numbers<[2], [1], [1], [2], [0, 0, 0, 1, 1, 2], [0], [0]>} : vector<2x8x8xf32>, vector<2x8x8xf32>, vector<2x8x8xf32> -> vector<2x8x8xf32>
    "tpu.trace_stop"() : () -> ()
    %102 = vector.shape_cast %101 : vector<2x8x8xf32> to vector<16x8xf32>
    %103 = vector.extract_strided_slice %78 {offsets = [0, 8], sizes = [16, 8], strides = [1, 1]} : vector<16x96xf32> to vector<16x8xf32>
    %104 = vector.shape_cast %103 : vector<16x8xf32> to vector<2x8x8xf32>
    %105 = vector.extract_strided_slice %78 {offsets = [0, 40], sizes = [16, 8], strides = [1, 1]} : vector<16x96xf32> to vector<16x8xf32>
    %106 = vector.shape_cast %105 : vector<16x8xf32> to vector<2x8x8xf32>
    %107 = vector.extract_strided_slice %78 {offsets = [0, 72], sizes = [16, 8], strides = [1, 1]} : vector<16x96xf32> to vector<16x8xf32>
    %108 = vector.shape_cast %107 : vector<16x8xf32> to vector<2x8x8xf32>
    "tpu.trace_start"() <{level = 10 : i32, message = "bqd,bkd->bqk"}> : () -> ()
    %cst_63 = arith.constant dense<0.000000e+00> : vector<2x8x8xf32>
    %109 = tpu.matmul %104, %106, %cst_63 {dimension_numbers = #tpu.dot_dimension_numbers<[2], [2], [1], [1], [0, 0, 0, 1, 1, 1], [0], [0]>} : vector<2x8x8xf32>, vector<2x8x8xf32>, vector<2x8x8xf32> -> vector<2x8x8xf32>
    "tpu.trace_stop"() : () -> ()
    %cst_64 = arith.constant 0.353553385 : f32
    %110 = vector.broadcast %cst_64 : f32 to vector<2x8x8xf32>
    %111 = arith.mulf %109, %110 : vector<2x8x8xf32>
    %112 = vector.shape_cast %31 : vector<8x8xf32> to vector<1x8x8xf32>
    %113 = vector.broadcast %112 : vector<1x8x8xf32> to vector<2x8x8xf32>
    %114 = arith.addf %111, %113 : vector<2x8x8xf32>
    %cst_65 = arith.constant dense<0xFF800000> : vector<2x8xf32>
    %115 = vector.multi_reduction <maximumf>, %114, %cst_65 [2] : vector<2x8x8xf32> to vector<2x8xf32>
    %116 = vector.shape_cast %115 : vector<2x8xf32> to vector<2x8x1xf32>
    %117 = vector.broadcast %116 : vector<2x8x1xf32> to vector<2x8x8xf32>
    %118 = arith.subf %114, %117 : vector<2x8x8xf32>
    %119 = math.exp %118 : vector<2x8x8xf32>
    %cst_66 = arith.constant dense<0.000000e+00> : vector<2x8xf32>
    %120 = vector.multi_reduction <add>, %119, %cst_66 [2] : vector<2x8x8xf32> to vector<2x8xf32>
    %121 = vector.shape_cast %120 : vector<2x8xf32> to vector<2x8x1xf32>
    %122 = tpu.reciprocal %121 {approx = true} : vector<2x8x1xf32> -> vector<2x8x1xf32>
    %123 = vector.broadcast %122 : vector<2x8x1xf32> to vector<2x8x8xf32>
    %124 = arith.mulf %119, %123 : vector<2x8x8xf32>
    "tpu.trace_start"() <{level = 10 : i32, message = "bqk,bkd->bqd"}> : () -> ()
    %cst_67 = arith.constant dense<0.000000e+00> : vector<2x8x8xf32>
    %125 = tpu.matmul %124, %108, %cst_67 {dimension_numbers = #tpu.dot_dimension_numbers<[2], [1], [1], [2], [0, 0, 0, 1, 1, 2], [0], [0]>} : vector<2x8x8xf32>, vector<2x8x8xf32>, vector<2x8x8xf32> -> vector<2x8x8xf32>
    "tpu.trace_stop"() : () -> ()
    %126 = vector.shape_cast %125 : vector<2x8x8xf32> to vector<16x8xf32>
    %127 = vector.extract_strided_slice %78 {offsets = [0, 16], sizes = [16, 8], strides = [1, 1]} : vector<16x96xf32> to vector<16x8xf32>
    %128 = vector.shape_cast %127 : vector<16x8xf32> to vector<2x8x8xf32>
    %129 = vector.extract_strided_slice %78 {offsets = [0, 48], sizes = [16, 8], strides = [1, 1]} : vector<16x96xf32> to vector<16x8xf32>
    %130 = vector.shape_cast %129 : vector<16x8xf32> to vector<2x8x8xf32>
    %131 = vector.extract_strided_slice %78 {offsets = [0, 80], sizes = [16, 8], strides = [1, 1]} : vector<16x96xf32> to vector<16x8xf32>
    %132 = vector.shape_cast %131 : vector<16x8xf32> to vector<2x8x8xf32>
    "tpu.trace_start"() <{level = 10 : i32, message = "bqd,bkd->bqk"}> : () -> ()
    %cst_68 = arith.constant dense<0.000000e+00> : vector<2x8x8xf32>
    %133 = tpu.matmul %128, %130, %cst_68 {dimension_numbers = #tpu.dot_dimension_numbers<[2], [2], [1], [1], [0, 0, 0, 1, 1, 1], [0], [0]>} : vector<2x8x8xf32>, vector<2x8x8xf32>, vector<2x8x8xf32> -> vector<2x8x8xf32>
    "tpu.trace_stop"() : () -> ()
    %cst_69 = arith.constant 0.353553385 : f32
    %134 = vector.broadcast %cst_69 : f32 to vector<2x8x8xf32>
    %135 = arith.mulf %133, %134 : vector<2x8x8xf32>
    %136 = vector.shape_cast %31 : vector<8x8xf32> to vector<1x8x8xf32>
    %137 = vector.broadcast %136 : vector<1x8x8xf32> to vector<2x8x8xf32>
    %138 = arith.addf %135, %137 : vector<2x8x8xf32>
    %cst_70 = arith.constant dense<0xFF800000> : vector<2x8xf32>
    %139 = vector.multi_reduction <maximumf>, %138, %cst_70 [2] : vector<2x8x8xf32> to vector<2x8xf32>
    %140 = vector.shape_cast %139 : vector<2x8xf32> to vector<2x8x1xf32>
    %141 = vector.broadcast %140 : vector<2x8x1xf32> to vector<2x8x8xf32>
    %142 = arith.subf %138, %141 : vector<2x8x8xf32>
    %143 = math.exp %142 : vector<2x8x8xf32>
    %cst_71 = arith.constant dense<0.000000e+00> : vector<2x8xf32>
    %144 = vector.multi_reduction <add>, %143, %cst_71 [2] : vector<2x8x8xf32> to vector<2x8xf32>
    %145 = vector.shape_cast %144 : vector<2x8xf32> to vector<2x8x1xf32>
    %146 = tpu.reciprocal %145 {approx = true} : vector<2x8x1xf32> -> vector<2x8x1xf32>
    %147 = vector.broadcast %146 : vector<2x8x1xf32> to vector<2x8x8xf32>
    %148 = arith.mulf %143, %147 : vector<2x8x8xf32>
    "tpu.trace_start"() <{level = 10 : i32, message = "bqk,bkd->bqd"}> : () -> ()
    %cst_72 = arith.constant dense<0.000000e+00> : vector<2x8x8xf32>
    %149 = tpu.matmul %148, %132, %cst_72 {dimension_numbers = #tpu.dot_dimension_numbers<[2], [1], [1], [2], [0, 0, 0, 1, 1, 2], [0], [0]>} : vector<2x8x8xf32>, vector<2x8x8xf32>, vector<2x8x8xf32> -> vector<2x8x8xf32>
    "tpu.trace_stop"() : () -> ()
    %150 = vector.shape_cast %149 : vector<2x8x8xf32> to vector<16x8xf32>
    %151 = vector.extract_strided_slice %78 {offsets = [0, 24], sizes = [16, 8], strides = [1, 1]} : vector<16x96xf32> to vector<16x8xf32>
    %152 = vector.shape_cast %151 : vector<16x8xf32> to vector<2x8x8xf32>
    %153 = vector.extract_strided_slice %78 {offsets = [0, 56], sizes = [16, 8], strides = [1, 1]} : vector<16x96xf32> to vector<16x8xf32>
    %154 = vector.shape_cast %153 : vector<16x8xf32> to vector<2x8x8xf32>
    %155 = vector.extract_strided_slice %78 {offsets = [0, 88], sizes = [16, 8], strides = [1, 1]} : vector<16x96xf32> to vector<16x8xf32>
    %156 = vector.shape_cast %155 : vector<16x8xf32> to vector<2x8x8xf32>
    "tpu.trace_start"() <{level = 10 : i32, message = "bqd,bkd->bqk"}> : () -> ()
    %cst_73 = arith.constant dense<0.000000e+00> : vector<2x8x8xf32>
    %157 = tpu.matmul %152, %154, %cst_73 {dimension_numbers = #tpu.dot_dimension_numbers<[2], [2], [1], [1], [0, 0, 0, 1, 1, 1], [0], [0]>} : vector<2x8x8xf32>, vector<2x8x8xf32>, vector<2x8x8xf32> -> vector<2x8x8xf32>
    "tpu.trace_stop"() : () -> ()
    %cst_74 = arith.constant 0.353553385 : f32
    %158 = vector.broadcast %cst_74 : f32 to vector<2x8x8xf32>
    %159 = arith.mulf %157, %158 : vector<2x8x8xf32>
    %160 = vector.shape_cast %31 : vector<8x8xf32> to vector<1x8x8xf32>
    %161 = vector.broadcast %160 : vector<1x8x8xf32> to vector<2x8x8xf32>
    %162 = arith.addf %159, %161 : vector<2x8x8xf32>
    %cst_75 = arith.constant dense<0xFF800000> : vector<2x8xf32>
    %163 = vector.multi_reduction <maximumf>, %162, %cst_75 [2] : vector<2x8x8xf32> to vector<2x8xf32>
    %164 = vector.shape_cast %163 : vector<2x8xf32> to vector<2x8x1xf32>
    %165 = vector.broadcast %164 : vector<2x8x1xf32> to vector<2x8x8xf32>
    %166 = arith.subf %162, %165 : vector<2x8x8xf32>
    %167 = math.exp %166 : vector<2x8x8xf32>
    %cst_76 = arith.constant dense<0.000000e+00> : vector<2x8xf32>
    %168 = vector.multi_reduction <add>, %167, %cst_76 [2] : vector<2x8x8xf32> to vector<2x8xf32>
    %169 = vector.shape_cast %168 : vector<2x8xf32> to vector<2x8x1xf32>
    %170 = tpu.reciprocal %169 {approx = true} : vector<2x8x1xf32> -> vector<2x8x1xf32>
    %171 = vector.broadcast %170 : vector<2x8x1xf32> to vector<2x8x8xf32>
    %172 = arith.mulf %167, %171 : vector<2x8x8xf32>
    "tpu.trace_start"() <{level = 10 : i32, message = "bqk,bkd->bqd"}> : () -> ()
    %cst_77 = arith.constant dense<0.000000e+00> : vector<2x8x8xf32>
    %173 = tpu.matmul %172, %156, %cst_77 {dimension_numbers = #tpu.dot_dimension_numbers<[2], [1], [1], [2], [0, 0, 0, 1, 1, 2], [0], [0]>} : vector<2x8x8xf32>, vector<2x8x8xf32>, vector<2x8x8xf32> -> vector<2x8x8xf32>
    "tpu.trace_stop"() : () -> ()
    %174 = vector.shape_cast %173 : vector<2x8x8xf32> to vector<16x8xf32>
    %175 = tpu.concatenate %102, %126, %150, %174 in 1 : vector<16x8xf32>, vector<16x8xf32>, vector<16x8xf32>, vector<16x8xf32> -> vector<16x32xf32>
    %cst_78 = arith.constant dense<0.000000e+00> : vector<16x32xf32>
    %176 = tpu.matmul %175, %41, %cst_78 {dimension_numbers = #tpu.dot_dimension_numbers<[1], [0], [0], [1], [0, 0, 1, 1], [], []>} : vector<16x32xf32>, vector<32x32xf32>, vector<16x32xf32> -> vector<16x32xf32>
    %177 = arith.addf %30, %176 : vector<16x32xf32>
    %178 = vector.broadcast %43 : vector<1x32xf32> to vector<16x32xf32>
    %179 = arith.addf %177, %178 : vector<16x32xf32>
    %cst_79 = arith.constant dense<0.000000e+00> : vector<16xf32>
    %180 = vector.multi_reduction <add>, %179, %cst_79 [1] : vector<16x32xf32> to vector<16xf32>
    %181 = vector.shape_cast %180 : vector<16xf32> to vector<16x1xf32>
    %cst_80 = arith.constant 3.200000e+01 : f32
    %182 = vector.broadcast %cst_80 : f32 to vector<16x1xf32>
    %183 = arith.divf %181, %182 : vector<16x1xf32>
    %184 = vector.broadcast %183 : vector<16x1xf32> to vector<16x32xf32>
    %185 = arith.subf %179, %184 : vector<16x32xf32>
    %186 = arith.mulf %185, %185 : vector<16x32xf32>
    %cst_81 = arith.constant dense<0.000000e+00> : vector<16xf32>
    %187 = vector.multi_reduction <add>, %186, %cst_81 [1] : vector<16x32xf32> to vector<16xf32>
    %188 = vector.shape_cast %187 : vector<16xf32> to vector<16x1xf32>
    %cst_82 = arith.constant 3.200000e+01 : f32
    %189 = vector.broadcast %cst_82 : f32 to vector<16x1xf32>
    %190 = arith.divf %188, %189 : vector<16x1xf32>
    %cst_83 = arith.constant 9.99999974E-6 : f32
    %191 = vector.broadcast %cst_83 : f32 to vector<16x1xf32>
    %192 = arith.addf %190, %191 : vector<16x1xf32>
    %193 = math.rsqrt %192 : vector<16x1xf32>
    %194 = vector.broadcast %193 : vector<16x1xf32> to vector<16x32xf32>
    %195 = arith.mulf %185, %194 : vector<16x32xf32>
    %196 = vector.broadcast %45 : vector<1x32xf32> to vector<16x32xf32>
    %197 = arith.mulf %195, %196 : vector<16x32xf32>
    %198 = vector.broadcast %47 : vector<1x32xf32> to vector<16x32xf32>
    %199 = arith.addf %197, %198 : vector<16x32xf32>
    %cst_84 = arith.constant dense<0.000000e+00> : vector<16x128xf32>
    %200 = tpu.matmul %199, %49, %cst_84 {dimension_numbers = #tpu.dot_dimension_numbers<[1], [0], [0], [1], [0, 0, 1, 1], [], []>} : vector<16x32xf32>, vector<32x128xf32>, vector<16x128xf32> -> vector<16x128xf32>
    %201 = vector.broadcast %51 : vector<1x128xf32> to vector<16x128xf32>
    %202 = arith.addf %200, %201 : vector<16x128xf32>
    %cst_85 = arith.constant 1.702000e+00 : f32
    %203 = vector.broadcast %cst_85 : f32 to vector<16x128xf32>
    %204 = arith.mulf %203, %202 : vector<16x128xf32>
    %205 = arith.negf %204 : vector<16x128xf32>
    %206 = math.exp %205 : vector<16x128xf32>
    %cst_86 = arith.constant 1.000000e+00 : f32
    %207 = vector.broadcast %cst_86 : f32 to vector<16x128xf32>
    %208 = arith.addf %207, %206 : vector<16x128xf32>
    %209 = arith.divf %207, %208 : vector<16x128xf32>
    %210 = arith.mulf %202, %209 : vector<16x128xf32>
    %cst_87 = arith.constant dense<0.000000e+00> : vector<16x32xf32>
    %211 = tpu.matmul %210, %53, %cst_87 {dimension_numbers = #tpu.dot_dimension_numbers<[1], [0], [0], [1], [0, 0, 1, 1], [], []>} : vector<16x128xf32>, vector<128x32xf32>, vector<16x32xf32> -> vector<16x32xf32>
    %212 = vector.broadcast %55 : vector<1x32xf32> to vector<16x32xf32>
    %213 = arith.addf %211, %212 : vector<16x32xf32>
    %214 = arith.addf %179, %213 : vector<16x32xf32>
    %c1 = arith.constant 1 : index
    %c0_88 = arith.constant 0 : index
    %c0_89 = arith.constant 0 : index
    %215 = vector.load %arg6[%c1, %c0_88, %c0_89] : memref<2x1x32xf32, #tpu.memory_space<vmem>>, vector<1x1x32xf32>
    %216 = vector.shape_cast %215 : vector<1x1x32xf32> to vector<1x32xf32>
    %c1_90 = arith.constant 1 : index
    %c0_91 = arith.constant 0 : index
    %c0_92 = arith.constant 0 : index
    %217 = vector.load %arg7[%c1_90, %c0_91, %c0_92] : memref<2x1x32xf32, #tpu.memory_space<vmem>>, vector<1x1x32xf32>
    %218 = vector.shape_cast %217 : vector<1x1x32xf32> to vector<1x32xf32>
    %c1_93 = arith.constant 1 : index
    %c0_94 = arith.constant 0 : index
    %c0_95 = arith.constant 0 : index
    %219 = vector.load %arg8[%c1_93, %c0_94, %c0_95] : memref<2x32x96xf32, #tpu.memory_space<vmem>>, vector<1x32x96xf32>
    %220 = vector.shape_cast %219 : vector<1x32x96xf32> to vector<32x96xf32>
    %c1_96 = arith.constant 1 : index
    %c0_97 = arith.constant 0 : index
    %c0_98 = arith.constant 0 : index
    %221 = vector.load %arg9[%c1_96, %c0_97, %c0_98] : memref<2x1x96xf32, #tpu.memory_space<vmem>>, vector<1x1x96xf32>
    %222 = vector.shape_cast %221 : vector<1x1x96xf32> to vector<1x96xf32>
    %c1_99 = arith.constant 1 : index
    %c0_100 = arith.constant 0 : index
    %c0_101 = arith.constant 0 : index
    %223 = vector.load %arg10[%c1_99, %c0_100, %c0_101] : memref<2x32x32xf32, #tpu.memory_space<vmem>>, vector<1x32x32xf32>
    %224 = vector.shape_cast %223 : vector<1x32x32xf32> to vector<32x32xf32>
    %c1_102 = arith.constant 1 : index
    %c0_103 = arith.constant 0 : index
    %c0_104 = arith.constant 0 : index
    %225 = vector.load %arg11[%c1_102, %c0_103, %c0_104] : memref<2x1x32xf32, #tpu.memory_space<vmem>>, vector<1x1x32xf32>
    %226 = vector.shape_cast %225 : vector<1x1x32xf32> to vector<1x32xf32>
    %c1_105 = arith.constant 1 : index
    %c0_106 = arith.constant 0 : index
    %c0_107 = arith.constant 0 : index
    %227 = vector.load %arg12[%c1_105, %c0_106, %c0_107] : memref<2x1x32xf32, #tpu.memory_space<vmem>>, vector<1x1x32xf32>
    %228 = vector.shape_cast %227 : vector<1x1x32xf32> to vector<1x32xf32>
    %c1_108 = arith.constant 1 : index
    %c0_109 = arith.constant 0 : index
    %c0_110 = arith.constant 0 : index
    %229 = vector.load %arg13[%c1_108, %c0_109, %c0_110] : memref<2x1x32xf32, #tpu.memory_space<vmem>>, vector<1x1x32xf32>
    %230 = vector.shape_cast %229 : vector<1x1x32xf32> to vector<1x32xf32>
    %c1_111 = arith.constant 1 : index
    %c0_112 = arith.constant 0 : index
    %c0_113 = arith.constant 0 : index
    %231 = vector.load %arg14[%c1_111, %c0_112, %c0_113] : memref<2x32x128xf32, #tpu.memory_space<vmem>>, vector<1x32x128xf32>
    %232 = vector.shape_cast %231 : vector<1x32x128xf32> to vector<32x128xf32>
    %c1_114 = arith.constant 1 : index
    %c0_115 = arith.constant 0 : index
    %c0_116 = arith.constant 0 : index
    %233 = vector.load %arg15[%c1_114, %c0_115, %c0_116] : memref<2x1x128xf32, #tpu.memory_space<vmem>>, vector<1x1x128xf32>
    %234 = vector.shape_cast %233 : vector<1x1x128xf32> to vector<1x128xf32>
    %c1_117 = arith.constant 1 : index
    %c0_118 = arith.constant 0 : index
    %c0_119 = arith.constant 0 : index
    %235 = vector.load %arg16[%c1_117, %c0_118, %c0_119] : memref<2x128x32xf32, #tpu.memory_space<vmem>>, vector<1x128x32xf32>
    %236 = vector.shape_cast %235 : vector<1x128x32xf32> to vector<128x32xf32>
    %c1_120 = arith.constant 1 : index
    %c0_121 = arith.constant 0 : index
    %c0_122 = arith.constant 0 : index
    %237 = vector.load %arg17[%c1_120, %c0_121, %c0_122] : memref<2x1x32xf32, #tpu.memory_space<vmem>>, vector<1x1x32xf32>
    %238 = vector.shape_cast %237 : vector<1x1x32xf32> to vector<1x32xf32>
    %cst_123 = arith.constant dense<0.000000e+00> : vector<16xf32>
    %239 = vector.multi_reduction <add>, %214, %cst_123 [1] : vector<16x32xf32> to vector<16xf32>
    %240 = vector.shape_cast %239 : vector<16xf32> to vector<16x1xf32>
    %cst_124 = arith.constant 3.200000e+01 : f32
    %241 = vector.broadcast %cst_124 : f32 to vector<16x1xf32>
    %242 = arith.divf %240, %241 : vector<16x1xf32>
    %243 = vector.broadcast %242 : vector<16x1xf32> to vector<16x32xf32>
    %244 = arith.subf %214, %243 : vector<16x32xf32>
    %245 = arith.mulf %244, %244 : vector<16x32xf32>
    %cst_125 = arith.constant dense<0.000000e+00> : vector<16xf32>
    %246 = vector.multi_reduction <add>, %245, %cst_125 [1] : vector<16x32xf32> to vector<16xf32>
    %247 = vector.shape_cast %246 : vector<16xf32> to vector<16x1xf32>
    %cst_126 = arith.constant 3.200000e+01 : f32
    %248 = vector.broadcast %cst_126 : f32 to vector<16x1xf32>
    %249 = arith.divf %247, %248 : vector<16x1xf32>
    %cst_127 = arith.constant 9.99999974E-6 : f32
    %250 = vector.broadcast %cst_127 : f32 to vector<16x1xf32>
    %251 = arith.addf %249, %250 : vector<16x1xf32>
    %252 = math.rsqrt %251 : vector<16x1xf32>
    %253 = vector.broadcast %252 : vector<16x1xf32> to vector<16x32xf32>
    %254 = arith.mulf %244, %253 : vector<16x32xf32>
    %255 = vector.broadcast %216 : vector<1x32xf32> to vector<16x32xf32>
    %256 = arith.mulf %254, %255 : vector<16x32xf32>
    %257 = vector.broadcast %218 : vector<1x32xf32> to vector<16x32xf32>
    %258 = arith.addf %256, %257 : vector<16x32xf32>
    %cst_128 = arith.constant dense<0.000000e+00> : vector<16x96xf32>
    %259 = tpu.matmul %258, %220, %cst_128 {dimension_numbers = #tpu.dot_dimension_numbers<[1], [0], [0], [1], [0, 0, 1, 1], [], []>} : vector<16x32xf32>, vector<32x96xf32>, vector<16x96xf32> -> vector<16x96xf32>
    %260 = vector.broadcast %222 : vector<1x96xf32> to vector<16x96xf32>
    %261 = arith.addf %259, %260 : vector<16x96xf32>
    %262 = vector.extract_strided_slice %261 {offsets = [0, 0], sizes = [16, 8], strides = [1, 1]} : vector<16x96xf32> to vector<16x8xf32>
    %263 = vector.shape_cast %262 : vector<16x8xf32> to vector<2x8x8xf32>
    %264 = vector.extract_strided_slice %261 {offsets = [0, 32], sizes = [16, 8], strides = [1, 1]} : vector<16x96xf32> to vector<16x8xf32>
    %265 = vector.shape_cast %264 : vector<16x8xf32> to vector<2x8x8xf32>
    %266 = vector.extract_strided_slice %261 {offsets = [0, 64], sizes = [16, 8], strides = [1, 1]} : vector<16x96xf32> to vector<16x8xf32>
    %267 = vector.shape_cast %266 : vector<16x8xf32> to vector<2x8x8xf32>
    "tpu.trace_start"() <{level = 10 : i32, message = "bqd,bkd->bqk"}> : () -> ()
    %cst_129 = arith.constant dense<0.000000e+00> : vector<2x8x8xf32>
    %268 = tpu.matmul %263, %265, %cst_129 {dimension_numbers = #tpu.dot_dimension_numbers<[2], [2], [1], [1], [0, 0, 0, 1, 1, 1], [0], [0]>} : vector<2x8x8xf32>, vector<2x8x8xf32>, vector<2x8x8xf32> -> vector<2x8x8xf32>
    "tpu.trace_stop"() : () -> ()
    %cst_130 = arith.constant 0.353553385 : f32
    %269 = vector.broadcast %cst_130 : f32 to vector<2x8x8xf32>
    %270 = arith.mulf %268, %269 : vector<2x8x8xf32>
    %271 = vector.shape_cast %31 : vector<8x8xf32> to vector<1x8x8xf32>
    %272 = vector.broadcast %271 : vector<1x8x8xf32> to vector<2x8x8xf32>
    %273 = arith.addf %270, %272 : vector<2x8x8xf32>
    %cst_131 = arith.constant dense<0xFF800000> : vector<2x8xf32>
    %274 = vector.multi_reduction <maximumf>, %273, %cst_131 [2] : vector<2x8x8xf32> to vector<2x8xf32>
    %275 = vector.shape_cast %274 : vector<2x8xf32> to vector<2x8x1xf32>
    %276 = vector.broadcast %275 : vector<2x8x1xf32> to vector<2x8x8xf32>
    %277 = arith.subf %273, %276 : vector<2x8x8xf32>
    %278 = math.exp %277 : vector<2x8x8xf32>
    %cst_132 = arith.constant dense<0.000000e+00> : vector<2x8xf32>
    %279 = vector.multi_reduction <add>, %278, %cst_132 [2] : vector<2x8x8xf32> to vector<2x8xf32>
    %280 = vector.shape_cast %279 : vector<2x8xf32> to vector<2x8x1xf32>
    %281 = tpu.reciprocal %280 {approx = true} : vector<2x8x1xf32> -> vector<2x8x1xf32>
    %282 = vector.broadcast %281 : vector<2x8x1xf32> to vector<2x8x8xf32>
    %283 = arith.mulf %278, %282 : vector<2x8x8xf32>
    "tpu.trace_start"() <{level = 10 : i32, message = "bqk,bkd->bqd"}> : () -> ()
    %cst_133 = arith.constant dense<0.000000e+00> : vector<2x8x8xf32>
    %284 = tpu.matmul %283, %267, %cst_133 {dimension_numbers = #tpu.dot_dimension_numbers<[2], [1], [1], [2], [0, 0, 0, 1, 1, 2], [0], [0]>} : vector<2x8x8xf32>, vector<2x8x8xf32>, vector<2x8x8xf32> -> vector<2x8x8xf32>
    "tpu.trace_stop"() : () -> ()
    %285 = vector.shape_cast %284 : vector<2x8x8xf32> to vector<16x8xf32>
    %286 = vector.extract_strided_slice %261 {offsets = [0, 8], sizes = [16, 8], strides = [1, 1]} : vector<16x96xf32> to vector<16x8xf32>
    %287 = vector.shape_cast %286 : vector<16x8xf32> to vector<2x8x8xf32>
    %288 = vector.extract_strided_slice %261 {offsets = [0, 40], sizes = [16, 8], strides = [1, 1]} : vector<16x96xf32> to vector<16x8xf32>
    %289 = vector.shape_cast %288 : vector<16x8xf32> to vector<2x8x8xf32>
    %290 = vector.extract_strided_slice %261 {offsets = [0, 72], sizes = [16, 8], strides = [1, 1]} : vector<16x96xf32> to vector<16x8xf32>
    %291 = vector.shape_cast %290 : vector<16x8xf32> to vector<2x8x8xf32>
    "tpu.trace_start"() <{level = 10 : i32, message = "bqd,bkd->bqk"}> : () -> ()
    %cst_134 = arith.constant dense<0.000000e+00> : vector<2x8x8xf32>
    %292 = tpu.matmul %287, %289, %cst_134 {dimension_numbers = #tpu.dot_dimension_numbers<[2], [2], [1], [1], [0, 0, 0, 1, 1, 1], [0], [0]>} : vector<2x8x8xf32>, vector<2x8x8xf32>, vector<2x8x8xf32> -> vector<2x8x8xf32>
    "tpu.trace_stop"() : () -> ()
    %cst_135 = arith.constant 0.353553385 : f32
    %293 = vector.broadcast %cst_135 : f32 to vector<2x8x8xf32>
    %294 = arith.mulf %292, %293 : vector<2x8x8xf32>
    %295 = vector.shape_cast %31 : vector<8x8xf32> to vector<1x8x8xf32>
    %296 = vector.broadcast %295 : vector<1x8x8xf32> to vector<2x8x8xf32>
    %297 = arith.addf %294, %296 : vector<2x8x8xf32>
    %cst_136 = arith.constant dense<0xFF800000> : vector<2x8xf32>
    %298 = vector.multi_reduction <maximumf>, %297, %cst_136 [2] : vector<2x8x8xf32> to vector<2x8xf32>
    %299 = vector.shape_cast %298 : vector<2x8xf32> to vector<2x8x1xf32>
    %300 = vector.broadcast %299 : vector<2x8x1xf32> to vector<2x8x8xf32>
    %301 = arith.subf %297, %300 : vector<2x8x8xf32>
    %302 = math.exp %301 : vector<2x8x8xf32>
    %cst_137 = arith.constant dense<0.000000e+00> : vector<2x8xf32>
    %303 = vector.multi_reduction <add>, %302, %cst_137 [2] : vector<2x8x8xf32> to vector<2x8xf32>
    %304 = vector.shape_cast %303 : vector<2x8xf32> to vector<2x8x1xf32>
    %305 = tpu.reciprocal %304 {approx = true} : vector<2x8x1xf32> -> vector<2x8x1xf32>
    %306 = vector.broadcast %305 : vector<2x8x1xf32> to vector<2x8x8xf32>
    %307 = arith.mulf %302, %306 : vector<2x8x8xf32>
    "tpu.trace_start"() <{level = 10 : i32, message = "bqk,bkd->bqd"}> : () -> ()
    %cst_138 = arith.constant dense<0.000000e+00> : vector<2x8x8xf32>
    %308 = tpu.matmul %307, %291, %cst_138 {dimension_numbers = #tpu.dot_dimension_numbers<[2], [1], [1], [2], [0, 0, 0, 1, 1, 2], [0], [0]>} : vector<2x8x8xf32>, vector<2x8x8xf32>, vector<2x8x8xf32> -> vector<2x8x8xf32>
    "tpu.trace_stop"() : () -> ()
    %309 = vector.shape_cast %308 : vector<2x8x8xf32> to vector<16x8xf32>
    %310 = vector.extract_strided_slice %261 {offsets = [0, 16], sizes = [16, 8], strides = [1, 1]} : vector<16x96xf32> to vector<16x8xf32>
    %311 = vector.shape_cast %310 : vector<16x8xf32> to vector<2x8x8xf32>
    %312 = vector.extract_strided_slice %261 {offsets = [0, 48], sizes = [16, 8], strides = [1, 1]} : vector<16x96xf32> to vector<16x8xf32>
    %313 = vector.shape_cast %312 : vector<16x8xf32> to vector<2x8x8xf32>
    %314 = vector.extract_strided_slice %261 {offsets = [0, 80], sizes = [16, 8], strides = [1, 1]} : vector<16x96xf32> to vector<16x8xf32>
    %315 = vector.shape_cast %314 : vector<16x8xf32> to vector<2x8x8xf32>
    "tpu.trace_start"() <{level = 10 : i32, message = "bqd,bkd->bqk"}> : () -> ()
    %cst_139 = arith.constant dense<0.000000e+00> : vector<2x8x8xf32>
    %316 = tpu.matmul %311, %313, %cst_139 {dimension_numbers = #tpu.dot_dimension_numbers<[2], [2], [1], [1], [0, 0, 0, 1, 1, 1], [0], [0]>} : vector<2x8x8xf32>, vector<2x8x8xf32>, vector<2x8x8xf32> -> vector<2x8x8xf32>
    "tpu.trace_stop"() : () -> ()
    %cst_140 = arith.constant 0.353553385 : f32
    %317 = vector.broadcast %cst_140 : f32 to vector<2x8x8xf32>
    %318 = arith.mulf %316, %317 : vector<2x8x8xf32>
    %319 = vector.shape_cast %31 : vector<8x8xf32> to vector<1x8x8xf32>
    %320 = vector.broadcast %319 : vector<1x8x8xf32> to vector<2x8x8xf32>
    %321 = arith.addf %318, %320 : vector<2x8x8xf32>
    %cst_141 = arith.constant dense<0xFF800000> : vector<2x8xf32>
    %322 = vector.multi_reduction <maximumf>, %321, %cst_141 [2] : vector<2x8x8xf32> to vector<2x8xf32>
    %323 = vector.shape_cast %322 : vector<2x8xf32> to vector<2x8x1xf32>
    %324 = vector.broadcast %323 : vector<2x8x1xf32> to vector<2x8x8xf32>
    %325 = arith.subf %321, %324 : vector<2x8x8xf32>
    %326 = math.exp %325 : vector<2x8x8xf32>
    %cst_142 = arith.constant dense<0.000000e+00> : vector<2x8xf32>
    %327 = vector.multi_reduction <add>, %326, %cst_142 [2] : vector<2x8x8xf32> to vector<2x8xf32>
    %328 = vector.shape_cast %327 : vector<2x8xf32> to vector<2x8x1xf32>
    %329 = tpu.reciprocal %328 {approx = true} : vector<2x8x1xf32> -> vector<2x8x1xf32>
    %330 = vector.broadcast %329 : vector<2x8x1xf32> to vector<2x8x8xf32>
    %331 = arith.mulf %326, %330 : vector<2x8x8xf32>
    "tpu.trace_start"() <{level = 10 : i32, message = "bqk,bkd->bqd"}> : () -> ()
    %cst_143 = arith.constant dense<0.000000e+00> : vector<2x8x8xf32>
    %332 = tpu.matmul %331, %315, %cst_143 {dimension_numbers = #tpu.dot_dimension_numbers<[2], [1], [1], [2], [0, 0, 0, 1, 1, 2], [0], [0]>} : vector<2x8x8xf32>, vector<2x8x8xf32>, vector<2x8x8xf32> -> vector<2x8x8xf32>
    "tpu.trace_stop"() : () -> ()
    %333 = vector.shape_cast %332 : vector<2x8x8xf32> to vector<16x8xf32>
    %334 = vector.extract_strided_slice %261 {offsets = [0, 24], sizes = [16, 8], strides = [1, 1]} : vector<16x96xf32> to vector<16x8xf32>
    %335 = vector.shape_cast %334 : vector<16x8xf32> to vector<2x8x8xf32>
    %336 = vector.extract_strided_slice %261 {offsets = [0, 56], sizes = [16, 8], strides = [1, 1]} : vector<16x96xf32> to vector<16x8xf32>
    %337 = vector.shape_cast %336 : vector<16x8xf32> to vector<2x8x8xf32>
    %338 = vector.extract_strided_slice %261 {offsets = [0, 88], sizes = [16, 8], strides = [1, 1]} : vector<16x96xf32> to vector<16x8xf32>
    %339 = vector.shape_cast %338 : vector<16x8xf32> to vector<2x8x8xf32>
    "tpu.trace_start"() <{level = 10 : i32, message = "bqd,bkd->bqk"}> : () -> ()
    %cst_144 = arith.constant dense<0.000000e+00> : vector<2x8x8xf32>
    %340 = tpu.matmul %335, %337, %cst_144 {dimension_numbers = #tpu.dot_dimension_numbers<[2], [2], [1], [1], [0, 0, 0, 1, 1, 1], [0], [0]>} : vector<2x8x8xf32>, vector<2x8x8xf32>, vector<2x8x8xf32> -> vector<2x8x8xf32>
    "tpu.trace_stop"() : () -> ()
    %cst_145 = arith.constant 0.353553385 : f32
    %341 = vector.broadcast %cst_145 : f32 to vector<2x8x8xf32>
    %342 = arith.mulf %340, %341 : vector<2x8x8xf32>
    %343 = vector.shape_cast %31 : vector<8x8xf32> to vector<1x8x8xf32>
    %344 = vector.broadcast %343 : vector<1x8x8xf32> to vector<2x8x8xf32>
    %345 = arith.addf %342, %344 : vector<2x8x8xf32>
    %cst_146 = arith.constant dense<0xFF800000> : vector<2x8xf32>
    %346 = vector.multi_reduction <maximumf>, %345, %cst_146 [2] : vector<2x8x8xf32> to vector<2x8xf32>
    %347 = vector.shape_cast %346 : vector<2x8xf32> to vector<2x8x1xf32>
    %348 = vector.broadcast %347 : vector<2x8x1xf32> to vector<2x8x8xf32>
    %349 = arith.subf %345, %348 : vector<2x8x8xf32>
    %350 = math.exp %349 : vector<2x8x8xf32>
    %cst_147 = arith.constant dense<0.000000e+00> : vector<2x8xf32>
    %351 = vector.multi_reduction <add>, %350, %cst_147 [2] : vector<2x8x8xf32> to vector<2x8xf32>
    %352 = vector.shape_cast %351 : vector<2x8xf32> to vector<2x8x1xf32>
    %353 = tpu.reciprocal %352 {approx = true} : vector<2x8x1xf32> -> vector<2x8x1xf32>
    %354 = vector.broadcast %353 : vector<2x8x1xf32> to vector<2x8x8xf32>
    %355 = arith.mulf %350, %354 : vector<2x8x8xf32>
    "tpu.trace_start"() <{level = 10 : i32, message = "bqk,bkd->bqd"}> : () -> ()
    %cst_148 = arith.constant dense<0.000000e+00> : vector<2x8x8xf32>
    %356 = tpu.matmul %355, %339, %cst_148 {dimension_numbers = #tpu.dot_dimension_numbers<[2], [1], [1], [2], [0, 0, 0, 1, 1, 2], [0], [0]>} : vector<2x8x8xf32>, vector<2x8x8xf32>, vector<2x8x8xf32> -> vector<2x8x8xf32>
    "tpu.trace_stop"() : () -> ()
    %357 = vector.shape_cast %356 : vector<2x8x8xf32> to vector<16x8xf32>
    %358 = tpu.concatenate %285, %309, %333, %357 in 1 : vector<16x8xf32>, vector<16x8xf32>, vector<16x8xf32>, vector<16x8xf32> -> vector<16x32xf32>
    %cst_149 = arith.constant dense<0.000000e+00> : vector<16x32xf32>
    %359 = tpu.matmul %358, %224, %cst_149 {dimension_numbers = #tpu.dot_dimension_numbers<[1], [0], [0], [1], [0, 0, 1, 1], [], []>} : vector<16x32xf32>, vector<32x32xf32>, vector<16x32xf32> -> vector<16x32xf32>
    %360 = arith.addf %214, %359 : vector<16x32xf32>
    %361 = vector.broadcast %226 : vector<1x32xf32> to vector<16x32xf32>
    %362 = arith.addf %360, %361 : vector<16x32xf32>
    %cst_150 = arith.constant dense<0.000000e+00> : vector<16xf32>
    %363 = vector.multi_reduction <add>, %362, %cst_150 [1] : vector<16x32xf32> to vector<16xf32>
    %364 = vector.shape_cast %363 : vector<16xf32> to vector<16x1xf32>
    %cst_151 = arith.constant 3.200000e+01 : f32
    %365 = vector.broadcast %cst_151 : f32 to vector<16x1xf32>
    %366 = arith.divf %364, %365 : vector<16x1xf32>
    %367 = vector.broadcast %366 : vector<16x1xf32> to vector<16x32xf32>
    %368 = arith.subf %362, %367 : vector<16x32xf32>
    %369 = arith.mulf %368, %368 : vector<16x32xf32>
    %cst_152 = arith.constant dense<0.000000e+00> : vector<16xf32>
    %370 = vector.multi_reduction <add>, %369, %cst_152 [1] : vector<16x32xf32> to vector<16xf32>
    %371 = vector.shape_cast %370 : vector<16xf32> to vector<16x1xf32>
    %cst_153 = arith.constant 3.200000e+01 : f32
    %372 = vector.broadcast %cst_153 : f32 to vector<16x1xf32>
    %373 = arith.divf %371, %372 : vector<16x1xf32>
    %cst_154 = arith.constant 9.99999974E-6 : f32
    %374 = vector.broadcast %cst_154 : f32 to vector<16x1xf32>
    %375 = arith.addf %373, %374 : vector<16x1xf32>
    %376 = math.rsqrt %375 : vector<16x1xf32>
    %377 = vector.broadcast %376 : vector<16x1xf32> to vector<16x32xf32>
    %378 = arith.mulf %368, %377 : vector<16x32xf32>
    %379 = vector.broadcast %228 : vector<1x32xf32> to vector<16x32xf32>
    %380 = arith.mulf %378, %379 : vector<16x32xf32>
    %381 = vector.broadcast %230 : vector<1x32xf32> to vector<16x32xf32>
    %382 = arith.addf %380, %381 : vector<16x32xf32>
    %cst_155 = arith.constant dense<0.000000e+00> : vector<16x128xf32>
    %383 = tpu.matmul %382, %232, %cst_155 {dimension_numbers = #tpu.dot_dimension_numbers<[1], [0], [0], [1], [0, 0, 1, 1], [], []>} : vector<16x32xf32>, vector<32x128xf32>, vector<16x128xf32> -> vector<16x128xf32>
    %384 = vector.broadcast %234 : vector<1x128xf32> to vector<16x128xf32>
    %385 = arith.addf %383, %384 : vector<16x128xf32>
    %cst_156 = arith.constant 1.702000e+00 : f32
    %386 = vector.broadcast %cst_156 : f32 to vector<16x128xf32>
    %387 = arith.mulf %386, %385 : vector<16x128xf32>
    %388 = arith.negf %387 : vector<16x128xf32>
    %389 = math.exp %388 : vector<16x128xf32>
    %cst_157 = arith.constant 1.000000e+00 : f32
    %390 = vector.broadcast %cst_157 : f32 to vector<16x128xf32>
    %391 = arith.addf %390, %389 : vector<16x128xf32>
    %392 = arith.divf %390, %391 : vector<16x128xf32>
    %393 = arith.mulf %385, %392 : vector<16x128xf32>
    %cst_158 = arith.constant dense<0.000000e+00> : vector<16x32xf32>
    %394 = tpu.matmul %393, %236, %cst_158 {dimension_numbers = #tpu.dot_dimension_numbers<[1], [0], [0], [1], [0, 0, 1, 1], [], []>} : vector<16x128xf32>, vector<128x32xf32>, vector<16x32xf32> -> vector<16x32xf32>
    %395 = vector.broadcast %238 : vector<1x32xf32> to vector<16x32xf32>
    %396 = arith.addf %394, %395 : vector<16x32xf32>
    %397 = arith.addf %362, %396 : vector<16x32xf32>
    %398 = vector.shape_cast %397 : vector<16x32xf32> to vector<2x8x32xf32>
    %399 = vector.extract_strided_slice %398 {offsets = [0, 0, 0], sizes = [2, 1, 32], strides = [1, 1, 1]} : vector<2x8x32xf32> to vector<2x1x32xf32>
    %400 = vector.shape_cast %399 : vector<2x1x32xf32> to vector<2x32xf32>
    %c0_159 = arith.constant 0 : index
    %c0_160 = arith.constant 0 : index
    %401 = vector.load %arg18[%c0_159, %c0_160] : memref<1x32xf32, #tpu.memory_space<vmem>>, vector<1x32xf32>
    %c0_161 = arith.constant 0 : index
    %c0_162 = arith.constant 0 : index
    %402 = vector.load %arg19[%c0_161, %c0_162] : memref<1x32xf32, #tpu.memory_space<vmem>>, vector<1x32xf32>
    %cst_163 = arith.constant dense<0.000000e+00> : vector<2xf32>
    %403 = vector.multi_reduction <add>, %400, %cst_163 [1] : vector<2x32xf32> to vector<2xf32>
    %404 = vector.shape_cast %403 : vector<2xf32> to vector<2x1xf32>
    %cst_164 = arith.constant 3.200000e+01 : f32
    %405 = vector.broadcast %cst_164 : f32 to vector<2x1xf32>
    %406 = arith.divf %404, %405 : vector<2x1xf32>
    %407 = vector.broadcast %406 : vector<2x1xf32> to vector<2x32xf32>
    %408 = arith.subf %400, %407 : vector<2x32xf32>
    %409 = arith.mulf %408, %408 : vector<2x32xf32>
    %cst_165 = arith.constant dense<0.000000e+00> : vector<2xf32>
    %410 = vector.multi_reduction <add>, %409, %cst_165 [1] : vector<2x32xf32> to vector<2xf32>
    %411 = vector.shape_cast %410 : vector<2xf32> to vector<2x1xf32>
    %cst_166 = arith.constant 3.200000e+01 : f32
    %412 = vector.broadcast %cst_166 : f32 to vector<2x1xf32>
    %413 = arith.divf %411, %412 : vector<2x1xf32>
    %cst_167 = arith.constant 9.99999974E-6 : f32
    %414 = vector.broadcast %cst_167 : f32 to vector<2x1xf32>
    %415 = arith.addf %413, %414 : vector<2x1xf32>
    %416 = math.rsqrt %415 : vector<2x1xf32>
    %417 = vector.broadcast %416 : vector<2x1xf32> to vector<2x32xf32>
    %418 = arith.mulf %408, %417 : vector<2x32xf32>
    %419 = vector.broadcast %401 : vector<1x32xf32> to vector<2x32xf32>
    %420 = arith.mulf %418, %419 : vector<2x32xf32>
    %421 = vector.broadcast %402 : vector<1x32xf32> to vector<2x32xf32>
    %422 = arith.addf %420, %421 : vector<2x32xf32>
    %c0_168 = arith.constant 0 : index
    %c0_169 = arith.constant 0 : index
    %423 = vector.load %arg20[%c0_168, %c0_169] : memref<32x32xf32, #tpu.memory_space<vmem>>, vector<32x32xf32>
    %cst_170 = arith.constant dense<0.000000e+00> : vector<2x32xf32>
    %424 = tpu.matmul %422, %423, %cst_170 {dimension_numbers = #tpu.dot_dimension_numbers<[1], [0], [0], [1], [0, 0, 1, 1], [], []>} : vector<2x32xf32>, vector<32x32xf32>, vector<2x32xf32> -> vector<2x32xf32>
    %425 = arith.mulf %424, %424 : vector<2x32xf32>
    %cst_171 = arith.constant dense<0.000000e+00> : vector<2xf32>
    %426 = vector.multi_reduction <add>, %425, %cst_171 [1] : vector<2x32xf32> to vector<2xf32>
    %427 = vector.shape_cast %426 : vector<2xf32> to vector<2x1xf32>
    %cst_172 = arith.constant 1.000000e-24 : f32
    %428 = vector.broadcast %cst_172 : f32 to vector<2x1xf32>
    %429 = arith.maximumf %427, %428 : vector<2x1xf32>
    %430 = math.rsqrt %429 : vector<2x1xf32>
    %431 = vector.broadcast %430 : vector<2x1xf32> to vector<2x32xf32>
    %432 = arith.mulf %424, %431 : vector<2x32xf32>
    %c0_173 = arith.constant 0 : index
    %c0_174 = arith.constant 0 : index
    %433 = vector.load %arg21[%c0_173, %c0_174] : memref<1x32xf32, #tpu.memory_space<vmem>>, vector<1x32xf32>
    %cst_175 = arith.constant dense<0.000000e+00> : vector<1x2xf32>
    %434 = tpu.matmul %433, %432, %cst_175 {dimension_numbers = #tpu.dot_dimension_numbers<[1], [1], [0], [0], [0, 0, 1, 0], [], []>} : vector<1x32xf32>, vector<2x32xf32>, vector<1x2xf32> -> vector<1x2xf32>
    %c0_176 = arith.constant 0 : index
    %c0_177 = arith.constant 0 : index
    %435 = vector.load %arg22[%c0_176, %c0_177] : memref<1x2xf32, #tpu.memory_space<vmem>>, vector<1x2xf32>
    tpu.vector_store %arg22[%c0_176, %c0_177], %434 {strides = array<i32>} : memref<1x2xf32, #tpu.memory_space<vmem>>, vector<1x2xf32>,
    return
  }
}

</mosaic_0001>

<bundles_post_ra>
// kernel: clip_forward.2
= control target key start
LH: loop header
LB: loop body
LE: loop exit
PB: predicated region body
PF: predicated region fallthrough
CT: control target
= control target key end

     0   :  { %vm97_vm0 = vcmask 261120   ;;  %v2889_v7 = vmov 0.0   ;;  %vm2890_vm1 = vmmov 0   ;;  %s2893_s20 = smov 88   ;;  %vm208_vm2 = vcmask 64512   ;;  %s3556_s23 = smov 112   ;;  %s3528_s0 = inlined_call_operand.vmem [shape: f32[8,32], index: 0, kind: input, shape index: {}]   ;;  %s3529_s5 = inlined_call_operand.vmem [shape: f32[2,32,96], index: 5, kind: input, shape index: {}]   ;;  %s3530_s3 = inlined_call_operand.vmem [shape: f32[2,1,32], index: 3, kind: input, shape index: {}]   ;;  %s3531_s4 = inlined_call_operand.vmem [shape: f32[2,1,32], index: 4, kind: input, shape index: {}]   ;;  %s3532_s6 = inlined_call_operand.vmem [shape: f32[2,1,96], index: 6, kind: input, shape index: {}]   ;;  %s3533_s1 = inlined_call_operand.vmem [shape: f32[8,8], index: 1, kind: input, shape index: {}]   ;;  %s3534_s7 = inlined_call_operand.vmem [shape: f32[2,32,32], index: 7, kind: input, shape index: {}]   ;;  %s3535_s8 = inlined_call_operand.vmem [shape: f32[2,1,32], index: 8, kind: input, shape index: {}]   ;;  %s3536_s11 = inlined_call_operand.vmem [shape: f32[2,32,128], index: 11, kind: input, shape index: {}]   ;;  %s3537_s9 = inlined_call_operand.vmem [shape: f32[2,1,32], index: 9, kind: input, shape index: {}]   ;;  %s3538_s10 = inlined_call_operand.vmem [shape: f32[2,1,32], index: 10, kind: input, shape index: {}]   ;;  %s3539_s13 = inlined_call_operand.vmem [shape: f32[2,128,32], index: 13, kind: input, shape index: {}]   ;;  %s3540_s12 = inlined_call_operand.vmem [shape: f32[2,1,128], index: 12, kind: input, shape index: {}]   ;;  %s3541_s14 = inlined_call_operand.vmem [shape: f32[2,1,32], index: 14, kind: input, shape index: {}]   ;;  %s3542_s2 = inlined_call_operand.vmem [shape: f32[1,8], index: 2, kind: input, shape index: {}]   ;;  %s3543_s17 = inlined_call_operand.vmem [shape: f32[32,32], index: 17, kind: input, shape index: {}]   ;;  %s3544_s15 = inlined_call_operand.vmem [shape: f32[1,32], index: 15, kind: input, shape index: {}]   ;;  %s3545_s16 = inlined_call_operand.vmem [shape: f32[1,32], index: 16, kind: input, shape index: {}]   ;;  %s3546_s18 = inlined_call_operand.vmem [shape: f32[1,32], index: 18, kind: output, shape index: {}]  }
   0x1   :  { %3557 = sst [smem:[#allocation2_spill]] %s3528_s0  ;;  %2594 = vmatprep.subr.mxu1 %v2889_v7  ;;  %2602 = vmatprep.mubr.msk.f32.mxu1 %vm2890_vm1, %v2889_v7  ;;  %v2406_v18 = vld [vmem:[%s3531_s4] ss:$0 sm:$0xff]  ;;  %s2891_s0 = smov 64   ;;  %vm886_vm3 = vcmask 130048   ;;  %vm888_vm4 = vcmask 195584  }
   0x2   :  { %3558 = sst [smem:[#allocation3_spill]] %s3529_s5  ;;  %2625 = vmatprep.subr.mxu0 %v2889_v7  ;;  %2627 = vmatprep.mubr.msk.f32.mxu0 %vm2890_vm1, %v2889_v7  ;;  %v2407_v21 = vld [vmem:[%s3532_s6] ss:$0 sm:$0xff]  ;;  %s2892_s5 = smov 96   ;;  %vm2393_vm5 = vcmask 253952  }
   0x3   :  { %3559 = sst [smem:[#allocation4_spill]] %s3530_s3  ;;  %v3061_v28 = vld [vmem:[%s3533_s1] sm:$0xff]  ;;  %s2894_s3 = smov 80  }
   0x4   :  { %s3560_s29 = sld [smem:[#allocation2_spill]]  ;;  %s2895_s1 = smov 120  }
   0x5   :  { %s3561_s19 = sld [smem:[#allocation3_spill]]  ;;  %s3551_s24 = smov 72  }
   0x6   :  { %s3562_s26 = sld [smem:[#allocation4_spill]]  ;;  %s3552_s25 = smov 104  }
   0x7   :  { %s3550_s27 = smov 48   ;;  %s2900_s28 = smov 56  }
   0x8   :  { %s3569_s22 = smov 16   ;;  %s3570_s30 = smov 24  }
   0xa   :  { %v3003_v0 = vld [vmem:[%s3560_s29] sm:$0xff]  ;;  %s3549_s29 = smov 40  }
   0xb   :  { %v98_v1 = vsel %vm97_vm0, %v3003_v0, 0.0  ;;  %v66_v8 = vld [vmem:[%s3561_s19 + $0x18] sm:$0xff]  ;;  %v65_v9 = vld [vmem:[%s3561_s19 + $0x10] sm:$0xff]  ;;  %v64_v10 = vld [vmem:[%s3561_s19 + $0x8] sm:$0xff] }
   0xc   :  { %99 = vadd.xlane.f32.xlu0 %v98_v1  ;;  %2595 = vmatpush3.msra.mxu1 %v66_v8  ;;  %v63_v11 = vld [vmem:[%s3561_s19] sm:$0xff] }
   0xd   :  { %2596 = vmatprep.subr.mxu1 %v2889_v7  ;;  %v2405_v16 = vld [vmem:[%s3562_s26] ss:$0 sm:$0xff] }
   0xe   :  { %2597 = vmatpush3.msra.mxu1 %v65_v9 }
   0xf   :  { %2598 = vmatprep.subr.mxu1 %v2889_v7 }
  0x10   :  { %2599 = vmatpush3.msra.mxu1 %v64_v10 }
  0x11   :  { %2600 = vmatprep.subr.mxu1 %v2889_v7 }
  0x12   :  { %2601 = vmatpush3.msra.mxu1 %v63_v11 }
  0x13   :  { %2605 = vmatprep.subr.mxu1 %v2889_v7 }
  0x95   :  { %v100_v2 = vpop.xlane.xlu0 %99 }
  0x96   :  { %v102_v3 = vmul.f32 0.03125, %v100_v2 }
  0x98   :  { %v103_v4 = vsub.f32 %v3003_v0, %v102_v3 }
  0x9a   :  { %v104_v5 = vmul.f32 %v103_v4, %v103_v4 }
  0x9c   :  { %v105_v6 = vsel %vm97_vm0, %v104_v5, 0.0 }
  0x9d   :  { %106 = vadd.xlane.f32.xlu0 %v105_v6 }
 0x126   :  { %v107_v12 = vpop.xlane.xlu0 %106 }
 0x127   :  { %v108_v13 = vmul.f32 0.03125, %v107_v12 }
 0x129   :  { %v109_v14 = vadd.f32 1e-05, %v108_v13 }
 0x12b   :  { %2837 = vrsqrt.f32 %v109_v14 }
 0x138   :  { %v2838_v15 = vpop.eup %2837 }
 0x139   :  { %v111_v17 = vmul.f32 %v2838_v15, %v103_v4 }
 0x13b   :  { %v118_v19 = vmul.f32 %v2405_v16, %v111_v17 }
 0x13d   :  { %v125_v20 = vadd.f32 %v2406_v18, %v118_v19 }
 0x13f   :  { %2603 = vmatmul.mubr.msk.f32.vlgmr.msra.gmra.mxu1 %vm97_vm0, %v125_v20 }
 0x140   :  { %2607 = vmatprep.mubr.msk.f32.mxu1 %vm2890_vm1, %v2889_v7 }
 0x1ff   :  { %v201_v22 = vpop.f32.mrf.mxu1 }
 0x200   :  { %v3043_v23 = vadd.f32 %v2407_v21, %v201_v22 }
 0x201   :  { %v2604_v24 = vpop.f32.mrf.mxu1 }
 0x202   :  { %296 = vrot.lane.b32.xlu0 %v3043_v23, %s2891_s0  ;;  %206 = vrot.lane.b32.xlu1 %v3043_v23, %s2892_s5 }
 0x206   :  { %374 = vrot.lane.b32.xlu0 %v3043_v23, %s2893_s20 }
 0x274   :  { %v207_v25 = vpop.permute.xlu1 %206  ;;  %v297_v26 = vpop.permute.xlu0 %296 }
 0x275   :  { %2606 = vmatpush3.xpose.msk.msra.mxu1 %vm208_vm2, %v207_v25 }
 0x276   :  { %2610 = vmatprep.subr.mxu1 %v2889_v7 }
 0x278   :  { %2608 = vmatmul.mubr.msk.f32.vlgmr.msra.gmra.mxu1 %vm208_vm2, %v3043_v23  ;;  %v375_v39 = vpop.permute.xlu0 %374 }
 0x279   :  { %2611 = vmatpush3.msra.mxu1 %v297_v26  ;;  %2612 = vmatprep.mubr.msk.f32.mxu1 %vm2890_vm1, %v2889_v7 }
 0x27a   :  { %2615 = vmatprep.subr.mxu1 %v2889_v7 }
 0x338   :  { %v279_v27 = vpop.f32.mrf.mxu1 }
 0x339   :  { %v283_v29 = vmul.f32 0.35355338, %v279_v27 }
 0x33a   :  { %v2609_v30 = vpop.f32.mrf.mxu1 }
 0x33b   :  { %v284_v31 = vadd.f32 %v283_v29, %v3061_v28  ;;  %v71_v30 = vld [vmem:[%s3534_s7 + $0x18] sm:$0xff] }
 0x33d   :  { %v285_v32 = vsel %vm208_vm2, %v284_v31, -inf }
 0x33e   :  { %286 = vmax.xlane.f32.xlu1 %v285_v32  ;;  %v69_v32 = vld [vmem:[%s3534_s7 + $0x8] sm:$0xff] }
 0x34f   :  { %541 = vrot.lane.b32.xlu1 %v3043_v23, %s2894_s3 }
 0x3c7   :  { %v287_v33 = vpop.xlane.xlu1 %286 }
 0x3c8   :  { %v288_v34 = vsub.f32 %v284_v31, %v287_v33  ;;  %v70_v31 = vld [vmem:[%s3534_s7 + $0x10] sm:$0xff]  ;;  %v68_v33 = vld [vmem:[%s3534_s7] sm:$0xff] }
 0x3ca   :  { %v289_v35 = vmul.f32 1.442695, %v288_v34 }
 0x3cb   :  { %v542_v36 = vpop.permute.xlu1 %541 }
 0x3cc   :  { %2839 = vpow2.f32 %v289_v35  ;;  %2626 = vmatpush3.xpose.msk.msra.mxu0 %vm208_vm2, %v542_v36 }
 0x3cd   :  { %2635 = vmatprep.subr.mxu0 %v2889_v7 }
 0x3d9   :  { %v2840_v37 = vpop.eup %2839 }
 0x3da   :  { %v291_v38 = vsel %vm208_vm2, %v2840_v37, 0.0 }
 0x3db   :  { %292 = vadd.xlane.f32.xlu0 %v291_v38 }
 0x3f1   :  { %372 = vrot.lane.b32.xlu0 %v3043_v23, %s2895_s1 }
 0x3f5   :  { %539 = vrot.lane.b32.xlu0 %v3043_v23, %s3556_s23 }
 0x3f9   :  { %708 = vrot.lane.b32.xlu0 %v3043_v23, %s3551_s24  ;;  %s3554_s24 = smov 16  }
 0x3fd   :  { %706 = vrot.lane.b32.xlu0 %v3043_v23, %s3552_s25 }
 0x464   :  { %v293_v40 = vpop.xlane.xlu0 %292 }
 0x465   :  { %2841 = vrcp.f32 %v293_v40 }
 0x468   :  { %v373_v41 = vpop.permute.xlu0 %372 }
 0x46c   :  { %v540_v42 = vpop.permute.xlu0 %539 }
 0x46d   :  { %2628 = vmatmul.mubr.msk.f32.vlgmr.msra.gmra.mxu0 %vm208_vm2, %v540_v42 }
 0x46e   :  { %2637 = vmatprep.mubr.msk.f32.mxu0 %vm2890_vm1, %v2889_v7 }
 0x470   :  { %v709_v43 = vpop.permute.xlu0 %708 }
 0x471   :  { %2636 = vmatpush3.xpose.msk.msra.mxu0 %vm208_vm2, %v709_v43 }
 0x472   :  { %v2842_v44 = vpop.eup %2841  ;;  %2645 = vmatprep.subr.mxu0 %v2889_v7 }
 0x473   :  { %v295_v45 = vmul.f32 %v2842_v44, %v2840_v37 }
 0x474   :  { %v707_v46 = vpop.permute.xlu0 %706 }
 0x475   :  { %2613 = vmatmul.mubr.msk.f32.vlgmr.msra.gmra.mxu1 %vm208_vm2, %v295_v45  ;;  %2638 = vmatmul.mubr.msk.f32.vlgmr.msra.gmra.mxu0 %vm208_vm2, %v707_v46  ;;  %v2422_v46 = vld [vmem:[%s3535_s8] ss:$0 sm:$0xff] }
 0x476   :  { %2616 = vmatpush3.xpose.msk.msra.mxu1 %vm208_vm2, %v375_v39  ;;  %2617 = vmatprep.mubr.msk.f32.mxu1 %vm2890_vm1, %v2889_v7 }
 0x477   :  { %2620 = vmatprep.subr.mxu1 %v2889_v7  ;;  %2653 = vmatprep.mubr.msk.f32.mxu0 %vm2890_vm1, %v2889_v7 }
 0x478   :  { %2646 = vmatpush3.msra.mxu0 %v71_v30 }
 0x479   :  { %2618 = vmatmul.mubr.msk.f32.vlgmr.msra.gmra.mxu1 %vm208_vm2, %v373_v41  ;;  %2647 = vmatprep.subr.mxu0 %v2889_v7 }
 0x47a   :  { %2622 = vmatprep.mubr.msk.f32.mxu1 %vm2890_vm1, %v2889_v7  ;;  %2648 = vmatpush3.msra.mxu0 %v70_v31 }
 0x47b   :  { %2649 = vmatprep.subr.mxu0 %v2889_v7 }
 0x47c   :  { %2650 = vmatpush3.msra.mxu0 %v69_v32 }
 0x47d   :  { %2651 = vmatprep.subr.mxu0 %v2889_v7 }
 0x47e   :  { %2652 = vmatpush3.msra.mxu0 %v68_v33 }
 0x47f   :  { %2667 = vmatprep.subr.mxu0 %v2889_v7 }
 0x52d   :  { %v613_v47 = vpop.f32.mrf.mxu0 }
 0x52e   :  { %v617_v48 = vmul.f32 0.35355338, %v613_v47 }
 0x52f   :  { %v2629_v49 = vpop.f32.mrf.mxu0 }
 0x530   :  { %v618_v50 = vadd.f32 %v617_v48, %v3061_v28 }
 0x532   :  { %v619_v51 = vsel %vm208_vm2, %v618_v50, -inf }
 0x533   :  { %620 = vmax.xlane.f32.xlu1 %v619_v51 }
 0x535   :  { %v3096_v52 = vpop.f32.mrf.mxu1  ;;  %v780_v53 = vpop.f32.mrf.mxu0 }
 0x536   :  { %v784_v57 = vmul.f32 0.35355338, %v780_v53 }
 0x537   :  { %v2614_v54 = vpop.f32.mrf.mxu1  ;;  %v2639_v55 = vpop.f32.mrf.mxu0 }
 0x538   :  { %v785_v62 = vadd.f32 %v784_v57, %v3061_v28  ;;  %v78_v57 = vld [vmem:[%s3536_s11 + $0x18] sm:$0xff] }
 0x539   :  { %v446_v56 = vpop.f32.mrf.mxu1 }
 0x53a   :  { %v450_v58 = vmul.f32 0.35355338, %v446_v56  ;;  %v786_v63 = vsel %vm208_vm2, %v785_v62, -inf }
 0x53b   :  { %v2619_v59 = vpop.f32.mrf.mxu1 }
 0x53c   :  { %v451_v60 = vadd.f32 %v450_v58, %v3061_v28  ;;  %v76_v58 = vld [vmem:[%s3536_s11 + $0x8] sm:$0xff]  ;;  %v75_v59 = vld [vmem:[%s3536_s11] sm:$0xff] }
 0x53e   :  { %v452_v61 = vsel %vm208_vm2, %v451_v60, -inf }
 0x53f   :  { %453 = vmax.xlane.f32.xlu0 %v452_v61 }
 0x543   :  { %787 = vmax.xlane.f32.xlu0 %v786_v63 }
 0x5bc   :  { %v621_v1 = vpop.xlane.xlu1 %620 }
 0x5bd   :  { %v622_v2 = vsub.f32 %v618_v50, %v621_v1  ;;  %v2423_v1 = vld [vmem:[%s3537_s9] ss:$0 sm:$0xff] }
 0x5bf   :  { %v623_v3 = vmul.f32 1.442695, %v622_v2 }
 0x5c1   :  { %2843 = vpow2.f32 %v623_v3  ;;  %v2424_v3 = vld [vmem:[%s3538_s10] ss:$0 sm:$0xff] }
 0x5c8   :  { %v454_v4 = vpop.xlane.xlu0 %453 }
 0x5c9   :  { %v455_v5 = vsub.f32 %v451_v60, %v454_v4 }
 0x5cb   :  { %v456_v6 = vmul.f32 1.442695, %v455_v5 }
 0x5cc   :  { %v788_v8 = vpop.xlane.xlu0 %787 }
 0x5cd   :  { %2845 = vpow2.f32 %v456_v6  ;;  %v789_v9 = vsub.f32 %v785_v62, %v788_v8  ;;  %v95_v6 = vld [vmem:[%s3539_s13 + $0x78] sm:$0xff]  ;;  %v94_v8 = vld [vmem:[%s3539_s13 + $0x70] sm:$0xff] }
 0x5ce   :  { %v2844_v10 = vpop.eup %2843 }
 0x5cf   :  { %v790_v11 = vmul.f32 1.442695, %v789_v9  ;;  %v625_v12 = vsel %vm208_vm2, %v2844_v10, 0.0  ;;  %v93_v9 = vld [vmem:[%s3539_s13 + $0x68] sm:$0xff] }
 0x5d0   :  { %626 = vadd.xlane.f32.xlu0 %v625_v12  ;;  %v90_v12 = vld [vmem:[%s3539_s13 + $0x50] sm:$0xff] }
 0x5d1   :  { %2847 = vpow2.f32 %v790_v11  ;;  %v91_v11 = vld [vmem:[%s3539_s13 + $0x58] sm:$0xff] }
 0x5da   :  { %v2846_v13 = vpop.eup %2845 }
 0x5db   :  { %v458_v14 = vsel %vm208_vm2, %v2846_v13, 0.0 }
 0x5dc   :  { %459 = vadd.xlane.f32.xlu0 %v458_v14  ;;  %v88_v14 = vld [vmem:[%s3539_s13 + $0x40] sm:$0xff] }
 0x5de   :  { %v2848_v15 = vpop.eup %2847 }
 0x5df   :  { %v792_v16 = vsel %vm208_vm2, %v2848_v15, 0.0 }
 0x5e0   :  { %793 = vadd.xlane.f32.xlu1 %v792_v16  ;;  %v86_v16 = vld [vmem:[%s3539_s13 + $0x30] sm:$0xff] }
 0x5f1   :  { %630 = vrot.lane.b32.xlu1 %v3043_v23, %s3550_s27  ;;  %s3553_s27 = smov 24  }
 0x5f2   :  { %463 = vrot.lane.b32.xlu0 %v3043_v23, %s2900_s28 }
 0x5f5   :  { %797 = vrot.lane.b32.xlu1 %v3043_v23, %s3549_s29  ;;  %s3555_s29 = smov 8  }
 0x659   :  { %v627_v17 = vpop.xlane.xlu0 %626 }
 0x665   :  { %v460_v18 = vpop.xlane.xlu0 %459 }
 0x666   :  { %2849 = vrcp.f32 %v460_v18  ;;  %v84_v18 = vld [vmem:[%s3539_s13 + $0x20] sm:$0xff] }
 0x667   :  { %2851 = vrcp.f32 %v627_v17  ;;  %v85_v17 = vld [vmem:[%s3539_s13 + $0x28] sm:$0xff] }
 0x669   :  { %v794_v19 = vpop.xlane.xlu1 %793  ;;  %v464_v20 = vpop.permute.xlu0 %463 }
 0x66a   :  { %2621 = vmatpush3.msra.mxu1 %v464_v20  ;;  %2853 = vrcp.f32 %v794_v19  ;;  %v83_v19 = vld [vmem:[%s3539_s13 + $0x18] sm:$0xff]  ;;  %v82_v20 = vld [vmem:[%s3539_s13 + $0x10] sm:$0xff] }
 0x66b   :  { %2630 = vmatprep.subr.mxu1 %v2889_v7 }
 0x66d   :  { %v631_v22 = vpop.permute.xlu1 %630 }
 0x671   :  { %v798_v27 = vpop.permute.xlu1 %797 }
 0x673   :  { %v2850_v21 = vpop.eup %2849 }
 0x674   :  { %v462_v24 = vmul.f32 %v2850_v21, %v2846_v13  ;;  %v2852_v25 = vpop.eup %2851  ;;  %v89_v13 = vld [vmem:[%s3539_s13 + $0x48] sm:$0xff] }
 0x675   :  { %v629_v23 = vmul.f32 %v2852_v25, %v2844_v10  ;;  %v92_v10 = vld [vmem:[%s3539_s13 + $0x60] sm:$0xff]  ;;  %v81_v21 = vld [vmem:[%s3539_s13 + $0x8] sm:$0xff] }
 0x676   :  { %2623 = vmatmul.mubr.msk.f32.vlgmr.msra.gmra.mxu1 %vm208_vm2, %v462_v24  ;;  %v2425_v24 = vld [vmem:[%s3540_s12] ss:$0 sm:$0xff] }
 0x677   :  { %2631 = vmatpush3.msra.mxu1 %v631_v22  ;;  %2632 = vmatprep.mubr.msk.f32.mxu1 %vm2890_vm1, %v2889_v7  ;;  %v2854_v26 = vpop.eup %2853  ;;  %v80_v22 = vld [vmem:[%s3539_s13] sm:$0xff] }
 0x678   :  { %2640 = vmatprep.subr.mxu1 %v2889_v7  ;;  %v796_v29 = vmul.f32 %v2854_v26, %v2848_v15  ;;  %v87_v15 = vld [vmem:[%s3539_s13 + $0x38] sm:$0xff] }
 0x67a   :  { %2633 = vmatmul.mubr.msk.f32.vlgmr.msra.gmra.mxu1 %vm208_vm2, %v629_v23 }
 0x67b   :  { %2641 = vmatpush3.msra.mxu1 %v798_v27  ;;  %2642 = vmatprep.mubr.msk.f32.mxu1 %vm2890_vm1, %v2889_v7 }
 0x67c   :  { %2656 = vmatprep.subr.mxu1 %v2889_v7 }
 0x67e   :  { %2643 = vmatmul.mubr.msk.f32.vlgmr.msra.gmra.mxu1 %vm208_vm2, %v796_v29 }
 0x67f   :  { %2664 = vmatprep.mubr.msk.f32.mxu1 %vm2890_vm1, %v2889_v7  ;;  %2657 = vmatpush3.msra.mxu1 %v78_v57 }
 0x680   :  { %2658 = vmatprep.subr.mxu1 %v2889_v7 }
 0x736   :  { %v535_v34 = vpop.f32.mrf.mxu1 }
 0x737   :  { %874 = vrot.lane.b32.xlu1 %v535_v34, %s3555_s29  ;;  %v2428_v34 = vld [vmem:[%s3541_s14] ss:$0 sm:$0xff] }
 0x738   :  { %v2624_v35 = vpop.f32.mrf.mxu1 }
 0x73a   :  { %v702_v36 = vpop.f32.mrf.mxu1 }
 0x73b   :  { %878 = vrot.lane.b32.xlu0 %v702_v36, %s3554_s24 }
 0x73c   :  { %v2634_v37 = vpop.f32.mrf.mxu1 }
 0x73e   :  { %v869_v38 = vpop.f32.mrf.mxu1 }
 0x73f   :  { %882 = vrot.lane.b32.xlu1 %v869_v38, %s3553_s27 }
 0x740   :  { %v2644_v39 = vpop.f32.mrf.mxu1 }
 0x7a9   :  { %v875_v40 = vpop.permute.xlu1 %874 }
 0x7aa   :  { %v885_v42 = vsel %vm208_vm2, %v3096_v52, %v875_v40 }
 0x7ad   :  { %v879_v41 = vpop.permute.xlu0 %878 }
 0x7ae   :  { %v887_v43 = vsel %vm886_vm3, %v885_v42, %v879_v41 }
 0x7b1   :  { %v883_v44 = vpop.permute.xlu1 %882 }
 0x7b2   :  { %v889_v45 = vsel %vm888_vm4, %v887_v43, %v883_v44 }
 0x7b3   :  { %2654 = vmatmul.mubr.msk.f32.vlgmr.msra.gmra.mxu0 %vm97_vm0, %v889_v45  ;;  %v2434_v45 = vld [vmem:[%s3561_s19 + $0x38] sm:$0xff] }
 0x7b4   :  { %2699 = vmatprep.mubr.msk.f32.mxu0 %vm2890_vm1, %v2889_v7  ;;  %2668 = vmatpush3.msra.mxu0 %v95_v6 }
 0x7b5   :  { %2669 = vmatprep.subr.mxu0 %v2889_v7 }
 0x7b6   :  { %2670 = vmatpush3.msra.mxu0 %v94_v8 }
 0x7b7   :  { %2671 = vmatprep.subr.mxu0 %v2889_v7 }
 0x7b8   :  { %2672 = vmatpush3.msra.mxu0 %v93_v9 }
 0x7b9   :  { %2673 = vmatprep.subr.mxu0 %v2889_v7 }
 0x7ba   :  { %2674 = vmatpush3.msra.mxu0 %v92_v10 }
 0x7bb   :  { %2675 = vmatprep.subr.mxu0 %v2889_v7 }
 0x7bc   :  { %2676 = vmatpush3.msra.mxu0 %v91_v11 }
 0x7bd   :  { %2677 = vmatprep.subr.mxu0 %v2889_v7 }
 0x7be   :  { %2678 = vmatpush3.msra.mxu0 %v90_v12 }
 0x7bf   :  { %2679 = vmatprep.subr.mxu0 %v2889_v7 }
 0x7c0   :  { %2680 = vmatpush3.msra.mxu0 %v89_v13 }
 0x7c1   :  { %2681 = vmatprep.subr.mxu0 %v2889_v7 }
 0x7c2   :  { %2682 = vmatpush3.msra.mxu0 %v88_v14 }
 0x7c3   :  { %2683 = vmatprep.subr.mxu0 %v2889_v7 }
 0x7c4   :  { %2684 = vmatpush3.msra.mxu0 %v87_v15 }
 0x7c5   :  { %2685 = vmatprep.subr.mxu0 %v2889_v7 }
 0x7c6   :  { %2686 = vmatpush3.msra.mxu0 %v86_v16 }
 0x7c7   :  { %2687 = vmatprep.subr.mxu0 %v2889_v7 }
 0x7c8   :  { %2688 = vmatpush3.msra.mxu0 %v85_v17 }
 0x7c9   :  { %2689 = vmatprep.subr.mxu0 %v2889_v7 }
 0x7ca   :  { %2690 = vmatpush3.msra.mxu0 %v84_v18 }
 0x7cb   :  { %2691 = vmatprep.subr.mxu0 %v2889_v7 }
 0x7cc   :  { %2692 = vmatpush3.msra.mxu0 %v83_v19 }
 0x7cd   :  { %2693 = vmatprep.subr.mxu0 %v2889_v7 }
 0x7ce   :  { %2694 = vmatpush3.msra.mxu0 %v82_v20 }
 0x7cf   :  { %2695 = vmatprep.subr.mxu0 %v2889_v7 }
 0x7d0   :  { %2696 = vmatpush3.msra.mxu0 %v81_v21 }
 0x7d1   :  { %2697 = vmatprep.subr.mxu0 %v2889_v7 }
 0x7d2   :  { %2698 = vmatpush3.msra.mxu0 %v80_v22 }
 0x7d3   :  { %2743 = vmatprep.subr.mxu0 %v2889_v7 }
 0x873   :  { %v959_v47 = vpop.f32.mrf.mxu0 }
 0x874   :  { %v963_v48 = vadd.f32 %v959_v47, %v3003_v0  ;;  %v77_v0 = vld [vmem:[%s3536_s11 + $0x10] sm:$0xff]  ;;  %v2432_v47 = vld [vmem:[%s3561_s19 + $0x28] sm:$0xff] }
 0x875   :  { %v2655_v49 = vpop.f32.mrf.mxu0  ;;  %2659 = vmatpush3.msra.mxu1 %v77_v0  ;;  %v2467_v0 = vld [vmem:[%s3532_s6 + $0x1] ss:$0 sm:$0xff]  ;;  %s3564_s6 = smov 104  }
 0x876   :  { %v3153_v50 = vadd.f32 %v2422_v46, %v963_v48  ;;  %2660 = vmatprep.subr.mxu1 %v2889_v7  ;;  %v2433_v46 = vld [vmem:[%s3561_s19 + $0x30] sm:$0xff]  ;;  %v2431_v48 = vld [vmem:[%s3561_s19 + $0x20] sm:$0xff] }
 0x877   :  { %2661 = vmatpush3.msra.mxu1 %v76_v58 }
 0x878   :  { %v971_v51 = vsel %vm97_vm0, %v3153_v50, 0.0  ;;  %2662 = vmatprep.subr.mxu1 %v2889_v7 }
 0x879   :  { %972 = vadd.xlane.f32.xlu0 %v971_v51  ;;  %2663 = vmatpush3.msra.mxu1 %v75_v59 }
 0x87a   :  { %2702 = vmatprep.subr.mxu1 %v2889_v7 }
 0x902   :  { %v973_v52 = vpop.xlane.xlu0 %972 }
 0x903   :  { %v974_v53 = vmul.f32 0.03125, %v973_v52 }
 0x905   :  { %v975_v54 = vsub.f32 %v3153_v50, %v974_v53  ;;  %v2465_v53 = vld [vmem:[%s3562_s26 + $0x1] ss:$0 sm:$0xff]  ;;  %s3565_s26 = smov 72  }
 0x907   :  { %v976_v55 = vmul.f32 %v975_v54, %v975_v54 }
 0x909   :  { %v977_v56 = vsel %vm97_vm0, %v976_v55, 0.0  ;;  %v2466_v55 = vld [vmem:[%s3531_s4 + $0x1] ss:$0 sm:$0xff]  ;;  %s3563_s4 = smov 112  }
 0x90a   :  { %978 = vadd.xlane.f32.xlu1 %v977_v56 }
 0x993   :  { %v979_v60 = vpop.xlane.xlu1 %978 }
 0x994   :  { %v980_v61 = vmul.f32 0.03125, %v979_v60 }
 0x996   :  { %v981_v62 = vadd.f32 1e-05, %v980_v61 }
 0x998   :  { %2855 = vrsqrt.f32 %v981_v62 }
 0x9a5   :  { %v2856_v63 = vpop.eup %2855 }
 0x9a6   :  { %v983_v2 = vmul.f32 %v2856_v63, %v975_v54 }
 0x9a8   :  { %v990_v4 = vmul.f32 %v2423_v1, %v983_v2 }
 0x9aa   :  { %v997_v5 = vadd.f32 %v2424_v3, %v990_v4 }
 0x9ac   :  { %2665 = vmatmul.mubr.msk.f32.vlgmr.msra.gmra.mxu1 %vm97_vm0, %v997_v5 }
 0x9ad   :  { %2710 = vmatprep.mubr.msk.f32.mxu1 %vm2890_vm1, %v2889_v7  ;;  %2703 = vmatpush3.msra.mxu1 %v2434_v45 }
 0x9ae   :  { %2704 = vmatprep.subr.mxu1 %v2889_v7 }
 0x9af   :  { %2705 = vmatpush3.msra.mxu1 %v2433_v46 }
 0x9b0   :  { %2706 = vmatprep.subr.mxu1 %v2889_v7 }
 0x9b1   :  { %2707 = vmatpush3.msra.mxu1 %v2432_v47 }
 0x9b2   :  { %2708 = vmatprep.subr.mxu1 %v2889_v7 }
 0x9b3   :  { %2709 = vmatpush3.msra.mxu1 %v2431_v48 }
 0x9b4   :  { %2713 = vmatprep.subr.mxu1 %v2889_v7 }
 0xa6c   :  { %v1073_v25 = vpop.f32.mrf.mxu1 }
 0xa6d   :  { %v1074_v23 = vadd.f32 %v2425_v24, %v1073_v25 }
 0xa6e   :  { %v2666_v26 = vpop.f32.mrf.mxu1 }
 0xa6f   :  { %v2427_v27 = vmul.f32 -1.702, %v1074_v23 }
 0xa71   :  { %v1079_v29 = vmul.f32 1.442695, %v2427_v27 }
 0xa73   :  { %2857 = vpow2.f32 %v1079_v29 }
 0xa80   :  { %v2858_v30 = vpop.eup %2857 }
 0xa81   :  { %v1081_v31 = vadd.f32 1.0, %v2858_v30 }
 0xa83   :  { %2859 = vrcp.f32 %v1081_v31 }
 0xa90   :  { %v2860_v32 = vpop.eup %2859 }
 0xa91   :  { %v1084_v33 = vmul.f32 %v2860_v32, %v1074_v23 }
 0xa93   :  { %2700 = vmatmul.mubr.f32.vlgmr.msra.gmra.mxu0 %v1084_v33 }
 0xa94   :  { %2745 = vmatprep.mubr.msk.f32.mxu0 %vm2890_vm1, %v2889_v7 }
 0xb53   :  { %v1157_v35 = vpop.f32.mrf.mxu0 }
 0xb54   :  { %v1158_v36 = vadd.f32 %v2428_v34, %v1157_v35 }
 0xb55   :  { %v2701_v37 = vpop.f32.mrf.mxu0 }
 0xb56   :  { %v3257_v38 = vadd.f32 %v1158_v36, %v3153_v50 }
 0xb58   :  { %v1210_v39 = vsel %vm97_vm0, %v3257_v38, 0.0 }
 0xb59   :  { %1211 = vadd.xlane.f32.xlu0 %v1210_v39 }
 0xbe2   :  { %v1212_v40 = vpop.xlane.xlu0 %1211 }
 0xbe3   :  { %v1213_v41 = vmul.f32 0.03125, %v1212_v40 }
 0xbe5   :  { %v1214_v42 = vsub.f32 %v3257_v38, %v1213_v41 }
 0xbe7   :  { %v1215_v43 = vmul.f32 %v1214_v42, %v1214_v42 }
 0xbe9   :  { %v1216_v44 = vsel %vm97_vm0, %v1215_v43, 0.0 }
 0xbea   :  { %1217 = vadd.xlane.f32.xlu0 %v1216_v44 }
 0xc73   :  { %v1218_v49 = vpop.xlane.xlu0 %1217 }
 0xc74   :  { %v1219_v50 = vmul.f32 0.03125, %v1218_v49 }
 0xc76   :  { %v1220_v51 = vadd.f32 1e-05, %v1219_v50 }
 0xc78   :  { %2861 = vrsqrt.f32 %v1220_v51 }
 0xc85   :  { %v2862_v52 = vpop.eup %2861 }
 0xc86   :  { %v1222_v54 = vmul.f32 %v2862_v52, %v1214_v42 }
 0xc88   :  { %v1229_v56 = vmul.f32 %v2465_v53, %v1222_v54 }
 0xc8a   :  { %v1236_v57 = vadd.f32 %v2466_v55, %v1229_v56 }
 0xc8c   :  { %2711 = vmatmul.mubr.msk.f32.vlgmr.msra.gmra.mxu1 %vm97_vm0, %v1236_v57 }
 0xc8d   :  { %2715 = vmatprep.mubr.msk.f32.mxu1 %vm2890_vm1, %v2889_v7 }
 0xd4c   :  { %v1312_v58 = vpop.f32.mrf.mxu1 }
 0xd4d   :  { %v3291_v59 = vadd.f32 %v2467_v0, %v1312_v58 }
 0xd4e   :  { %v2712_v60 = vpop.f32.mrf.mxu1 }
 0xd4f   :  { %1317 = vrot.lane.b32.xlu0 %v3291_v59, %s2892_s5  ;;  %s3567_s5 = smov 8  }
 0xd53   :  { %1484 = vrot.lane.b32.xlu0 %v3291_v59, %s2893_s20  ;;  %s3568_s20 = smov 40  }
 0xdc1   :  { %v1318_v61 = vpop.permute.xlu0 %1317 }
 0xdc2   :  { %2714 = vmatpush3.xpose.msk.msra.mxu1 %vm208_vm2, %v1318_v61 }
 0xdc3   :  { %2718 = vmatprep.subr.mxu1 %v2889_v7 }
 0xdc5   :  { %2716 = vmatmul.mubr.msk.f32.vlgmr.msra.gmra.mxu1 %vm208_vm2, %v3291_v59  ;;  %v1485_v14 = vpop.permute.xlu0 %1484 }
 0xdc6   :  { %2720 = vmatprep.mubr.msk.f32.mxu1 %vm2890_vm1, %v2889_v7 }
 0xe85   :  { %v1389_v62 = vpop.f32.mrf.mxu1 }
 0xe86   :  { %v1393_v63 = vmul.f32 0.35355338, %v1389_v62 }
 0xe87   :  { %v2717_v1 = vpop.f32.mrf.mxu1 }
 0xe88   :  { %v1394_v2 = vadd.f32 %v1393_v63, %v3061_v28 }
 0xe8a   :  { %v1395_v3 = vsel %vm208_vm2, %v1394_v2, -inf }
 0xe8b   :  { %1396 = vmax.xlane.f32.xlu1 %v1395_v3 }
 0xe9c   :  { %1406 = vrot.lane.b32.xlu1 %v3291_v59, %s2891_s0  ;;  %s3566_s0 = smov 48  }
 0xf14   :  { %v1397_v4 = vpop.xlane.xlu1 %1396 }
 0xf15   :  { %v1398_v5 = vsub.f32 %v1394_v2, %v1397_v4  ;;  %v2438_v4 = vld [vmem:[%s3534_s7 + $0x30] sm:$0xff] }
 0xf17   :  { %v1399_v6 = vmul.f32 1.442695, %v1398_v5  ;;  %v2437_v5 = vld [vmem:[%s3534_s7 + $0x28] sm:$0xff] }
 0xf18   :  { %v1407_v8 = vpop.permute.xlu1 %1406 }
 0xf19   :  { %2863 = vpow2.f32 %v1399_v6  ;;  %2719 = vmatpush3.msra.mxu1 %v1407_v8  ;;  %v2436_v6 = vld [vmem:[%s3534_s7 + $0x20] sm:$0xff] }
 0xf1a   :  { %2723 = vmatprep.subr.mxu1 %v2889_v7 }
 0xf26   :  { %v2864_v9 = vpop.eup %2863 }
 0xf27   :  { %v1401_v10 = vsel %vm208_vm2, %v2864_v9, 0.0 }
 0xf28   :  { %1402 = vadd.xlane.f32.xlu1 %v1401_v10 }
 0xf39   :  { %1482 = vrot.lane.b32.xlu1 %v3291_v59, %s2895_s1 }
 0xf3d   :  { %1651 = vrot.lane.b32.xlu1 %v3291_v59, %s2894_s3 }
 0xfb1   :  { %v1403_v11 = vpop.xlane.xlu1 %1402 }
 0xfb2   :  { %2865 = vrcp.f32 %v1403_v11 }
 0xfb5   :  { %v1483_v15 = vpop.permute.xlu1 %1482 }
 0xfb9   :  { %v1652_v30 = vpop.permute.xlu1 %1651 }
 0xfbf   :  { %v2866_v12 = vpop.eup %2865 }
 0xfc0   :  { %v1405_v13 = vmul.f32 %v2866_v12, %v2864_v9 }
 0xfc2   :  { %2721 = vmatmul.mubr.msk.f32.vlgmr.msra.gmra.mxu1 %vm208_vm2, %v1405_v13 }
 0xfc3   :  { %2724 = vmatpush3.xpose.msk.msra.mxu1 %vm208_vm2, %v1485_v14  ;;  %2725 = vmatprep.mubr.msk.f32.mxu1 %vm2890_vm1, %v2889_v7 }
 0xfc4   :  { %2728 = vmatprep.subr.mxu1 %v2889_v7 }
 0xfc6   :  { %2726 = vmatmul.mubr.msk.f32.vlgmr.msra.gmra.mxu1 %vm208_vm2, %v1483_v15 }
 0xfc7   :  { %2730 = vmatprep.mubr.msk.f32.mxu1 %vm2890_vm1, %v2889_v7 }
0x1082   :  { %v3321_v16 = vpop.f32.mrf.mxu1 }
0x1084   :  { %v2722_v17 = vpop.f32.mrf.mxu1 }
0x1086   :  { %v1556_v18 = vpop.f32.mrf.mxu1 }
0x1087   :  { %v1560_v19 = vmul.f32 0.35355338, %v1556_v18 }
0x1088   :  { %v2727_v20 = vpop.f32.mrf.mxu1 }
0x1089   :  { %v1561_v21 = vadd.f32 %v1560_v19, %v3061_v28  ;;  %v2482_v19 = vld [vmem:[%s3535_s8 + $0x1] ss:$0 sm:$0xff] }
0x108b   :  { %v1562_v22 = vsel %vm208_vm2, %v1561_v21, -inf }
0x108c   :  { %1563 = vmax.xlane.f32.xlu0 %v1562_v22 }
0x10a2   :  { %1573 = vrot.lane.b32.xlu0 %v3291_v59, %s2900_s28 }
0x10a6   :  { %1649 = vrot.lane.b32.xlu0 %v3291_v59, %s3563_s4 }
0x10aa   :  { %1816 = vrot.lane.b32.xlu0 %v3291_v59, %s3564_s6 }
0x1115   :  { %v1564_v24 = vpop.xlane.xlu0 %1563 }
0x1116   :  { %v1565_v25 = vsub.f32 %v1561_v21, %v1564_v24 }
0x1118   :  { %v1566_v23 = vmul.f32 1.442695, %v1565_v25 }
0x1119   :  { %v1574_v26 = vpop.permute.xlu0 %1573 }
0x111a   :  { %2867 = vpow2.f32 %v1566_v23  ;;  %2729 = vmatpush3.msra.mxu1 %v1574_v26 }
0x111b   :  { %2733 = vmatprep.subr.mxu1 %v2889_v7 }
0x111d   :  { %v1650_v32 = vpop.permute.xlu0 %1649 }
0x1121   :  { %v1817_v34 = vpop.permute.xlu0 %1816 }
0x1127   :  { %v2868_v27 = vpop.eup %2867 }
0x1128   :  { %v1568_v29 = vsel %vm208_vm2, %v2868_v27, 0.0 }
0x1129   :  { %1569 = vadd.xlane.f32.xlu1 %v1568_v29 }
0x113a   :  { %1818 = vrot.lane.b32.xlu1 %v3291_v59, %s3565_s26 }
0x11b2   :  { %v1570_v31 = vpop.xlane.xlu1 %1569 }
0x11b3   :  { %2869 = vrcp.f32 %v1570_v31  ;;  %v2444_v31 = vld [vmem:[%s3536_s11 + $0x28] sm:$0xff] }
0x11b6   :  { %v1819_v33 = vpop.permute.xlu1 %1818 }
0x11b7   :  { %2744 = vmatpush3.xpose.msk.msra.mxu0 %vm208_vm2, %v1819_v33 }
0x11b8   :  { %2753 = vmatprep.subr.mxu0 %v2889_v7 }
0x11ba   :  { %2746 = vmatmul.mubr.msk.f32.vlgmr.msra.gmra.mxu0 %vm208_vm2, %v1817_v34 }
0x11bb   :  { %2761 = vmatprep.mubr.msk.f32.mxu0 %vm2890_vm1, %v2889_v7 }
0x11c0   :  { %v2870_v35 = vpop.eup %2869 }
0x11c1   :  { %v1572_v36 = vmul.f32 %v2870_v35, %v2868_v27 }
0x11c3   :  { %2731 = vmatmul.mubr.msk.f32.vlgmr.msra.gmra.mxu1 %vm208_vm2, %v1572_v36 }
0x11c4   :  { %2734 = vmatpush3.xpose.msk.msra.mxu1 %vm208_vm2, %v1652_v30  ;;  %2735 = vmatprep.mubr.msk.f32.mxu1 %vm2890_vm1, %v2889_v7  ;;  %v2446_v30 = vld [vmem:[%s3536_s11 + $0x38] sm:$0xff] }
0x11c5   :  { %2738 = vmatprep.subr.mxu1 %v2889_v7 }
0x11c7   :  { %2736 = vmatmul.mubr.msk.f32.vlgmr.msra.gmra.mxu1 %vm208_vm2, %v1650_v32  ;;  %v2443_v32 = vld [vmem:[%s3536_s11 + $0x20] sm:$0xff] }
0x11c8   :  { %2740 = vmatprep.mubr.msk.f32.mxu1 %vm2890_vm1, %v2889_v7 }
0x127a   :  { %v1890_v37 = vpop.f32.mrf.mxu0 }
0x127b   :  { %v1894_v39 = vmul.f32 0.35355338, %v1890_v37  ;;  %v2483_v37 = vld [vmem:[%s3537_s9 + $0x1] ss:$0 sm:$0xff] }
0x127c   :  { %v2747_v40 = vpop.f32.mrf.mxu0 }
0x127d   :  { %v1895_v41 = vadd.f32 %v1894_v39, %v3061_v28  ;;  %v2484_v40 = vld [vmem:[%s3538_s10 + $0x1] ss:$0 sm:$0xff] }
0x127f   :  { %v1896_v42 = vsel %vm208_vm2, %v1895_v41, -inf }
0x1280   :  { %1897 = vmax.xlane.f32.xlu0 %v1896_v42 }
0x1283   :  { %v1645_v43 = vpop.f32.mrf.mxu1 }
0x1285   :  { %v2732_v44 = vpop.f32.mrf.mxu1 }
0x1286   :  { %v2462_v44 = vld [vmem:[%s3539_s13 + $0xf0] sm:$0xff] }
0x1287   :  { %v1723_v45 = vpop.f32.mrf.mxu1 }
0x1288   :  { %v1727_v46 = vmul.f32 0.35355338, %v1723_v45  ;;  %v2461_v45 = vld [vmem:[%s3539_s13 + $0xe8] sm:$0xff] }
0x1289   :  { %v2737_v47 = vpop.f32.mrf.mxu1 }
0x128a   :  { %v1728_v48 = vadd.f32 %v1727_v46, %v3061_v28  ;;  %v2460_v46 = vld [vmem:[%s3539_s13 + $0xe0] sm:$0xff]  ;;  %v2459_v47 = vld [vmem:[%s3539_s13 + $0xd8] sm:$0xff] }
0x128c   :  { %v1729_v49 = vsel %vm208_vm2, %v1728_v48, -inf }
0x128d   :  { %1730 = vmax.xlane.f32.xlu1 %v1729_v49  ;;  %v2457_v49 = vld [vmem:[%s3539_s13 + $0xc8] sm:$0xff] }
0x129e   :  { %1740 = vrot.lane.b32.xlu1 %v3291_v59, %s3566_s0 }
0x12a2   :  { %1984 = vrot.lane.b32.xlu1 %v1645_v43, %s3567_s5  ;;  %v2463_v43 = vld [vmem:[%s3539_s13 + $0xf8] sm:$0xff] }
0x1309   :  { %v1898_v50 = vpop.xlane.xlu0 %1897 }
0x130a   :  { %v1899_v51 = vsub.f32 %v1895_v41, %v1898_v50  ;;  %v2456_v50 = vld [vmem:[%s3539_s13 + $0xc0] sm:$0xff] }
0x130c   :  { %v1900_v52 = vmul.f32 1.442695, %v1899_v51  ;;  %v2455_v51 = vld [vmem:[%s3539_s13 + $0xb8] sm:$0xff] }
0x130e   :  { %2871 = vpow2.f32 %v1900_v52  ;;  %v2454_v52 = vld [vmem:[%s3539_s13 + $0xb0] sm:$0xff] }
0x1316   :  { %v1731_v53 = vpop.xlane.xlu1 %1730 }
0x1317   :  { %v1732_v54 = vsub.f32 %v1728_v48, %v1731_v53  ;;  %v2458_v48 = vld [vmem:[%s3539_s13 + $0xd0] sm:$0xff]  ;;  %v2453_v53 = vld [vmem:[%s3539_s13 + $0xa8] sm:$0xff] }
0x1319   :  { %v1733_v55 = vmul.f32 1.442695, %v1732_v54  ;;  %v2452_v54 = vld [vmem:[%s3539_s13 + $0xa0] sm:$0xff] }
0x131a   :  { %v1741_v56 = vpop.permute.xlu1 %1740 }
0x131b   :  { %v2872_v57 = vpop.eup %2871  ;;  %2873 = vpow2.f32 %v1733_v55  ;;  %2739 = vmatpush3.msra.mxu1 %v1741_v56  ;;  %v2451_v55 = vld [vmem:[%s3539_s13 + $0x98] sm:$0xff]  ;;  %v2450_v56 = vld [vmem:[%s3539_s13 + $0x90] sm:$0xff] }
0x131c   :  { %v1902_v28 = vsel %vm208_vm2, %v2872_v57, 0.0  ;;  %2748 = vmatprep.subr.mxu1 %v2889_v7 }
0x131d   :  { %1903 = vadd.xlane.f32.xlu0 %v1902_v28  ;;  %v2448_v28 = vld [vmem:[%s3539_s13 + $0x80] sm:$0xff] }
0x131e   :  { %v1985_v12 = vpop.permute.xlu1 %1984 }
0x131f   :  { %v1995_v14 = vsel %vm208_vm2, %v3321_v16, %v1985_v12 }
0x1328   :  { %v2874_v0 = vpop.eup %2873 }
0x1329   :  { %v1735_v58 = vsel %vm208_vm2, %v2874_v0, 0.0 }
0x132a   :  { %1736 = vadd.xlane.f32.xlu0 %v1735_v58 }
0x1340   :  { %1907 = vrot.lane.b32.xlu0 %v3291_v59, %s3568_s20  ;;  %v2439_v59 = vld [vmem:[%s3534_s7 + $0x38] sm:$0xff] }
0x1341   :  { %2754 = vmatpush3.msra.mxu0 %v2439_v59 }
0x1342   :  { %2755 = vmatprep.subr.mxu0 %v2889_v7 }
0x1343   :  { %2756 = vmatpush3.msra.mxu0 %v2438_v4  ;;  %v2488_v4 = vld [vmem:[%s3541_s14 + $0x1] ss:$0 sm:$0xff] }
0x1344   :  { %2757 = vmatprep.subr.mxu0 %v2889_v7 }
0x1345   :  { %2758 = vmatpush3.msra.mxu0 %v2437_v5 }
0x1346   :  { %2759 = vmatprep.subr.mxu0 %v2889_v7 }
0x1347   :  { %2760 = vmatpush3.msra.mxu0 %v2436_v6 }
0x1348   :  { %2775 = vmatprep.subr.mxu0 %v2889_v7 }
0x13a6   :  { %v1904_v60 = vpop.xlane.xlu0 %1903 }
0x13b3   :  { %v1737_v61 = vpop.xlane.xlu0 %1736 }
0x13b4   :  { %2875 = vrcp.f32 %v1737_v61 }
0x13b5   :  { %2877 = vrcp.f32 %v1904_v60 }
0x13b7   :  { %v1908_v2 = vpop.permute.xlu0 %1907 }
0x13c1   :  { %v2876_v62 = vpop.eup %2875 }
0x13c2   :  { %v1739_v63 = vmul.f32 %v2876_v62, %v2874_v0  ;;  %v2878_v1 = vpop.eup %2877  ;;  %v2485_v0 = vld [vmem:[%s3540_s12 + $0x1] ss:$0 sm:$0xff] }
0x13c3   :  { %v1906_v3 = vmul.f32 %v2878_v1, %v2872_v57  ;;  %v2449_v57 = vld [vmem:[%s3539_s13 + $0x88] sm:$0xff] }
0x13c4   :  { %2741 = vmatmul.mubr.msk.f32.vlgmr.msra.gmra.mxu1 %vm208_vm2, %v1739_v63 }
0x13c5   :  { %2749 = vmatpush3.msra.mxu1 %v1908_v2  ;;  %2750 = vmatprep.mubr.msk.f32.mxu1 %vm2890_vm1, %v2889_v7 }
0x13c6   :  { %2764 = vmatprep.subr.mxu1 %v2889_v7 }
0x13c8   :  { %2751 = vmatmul.mubr.msk.f32.vlgmr.msra.gmra.mxu1 %vm208_vm2, %v1906_v3 }
0x13c9   :  { %2772 = vmatprep.mubr.msk.f32.mxu1 %vm2890_vm1, %v2889_v7  ;;  %2765 = vmatpush3.msra.mxu1 %v2446_v30 }
0x13ca   :  { %2766 = vmatprep.subr.mxu1 %v2889_v7 }
0x1484   :  { %v1812_v8 = vpop.f32.mrf.mxu1 }
0x1485   :  { %1988 = vrot.lane.b32.xlu1 %v1812_v8, %s3569_s22 }
0x1486   :  { %v2742_v9 = vpop.f32.mrf.mxu1 }
0x1488   :  { %v1979_v10 = vpop.f32.mrf.mxu1 }
0x1489   :  { %1992 = vrot.lane.b32.xlu1 %v1979_v10, %s3570_s30 }
0x148a   :  { %v2752_v11 = vpop.f32.mrf.mxu1 }
0x14f7   :  { %v1989_v13 = vpop.permute.xlu1 %1988 }
0x14f8   :  { %v1996_v15 = vsel %vm886_vm3, %v1995_v14, %v1989_v13 }
0x14fb   :  { %v1993_v17 = vpop.permute.xlu1 %1992 }
0x14fc   :  { %v1997_v18 = vsel %vm888_vm4, %v1996_v15, %v1993_v17  ;;  %v2491_v17 = vld [vmem:[%s3542_s2] ss:$0 sm:$0xff] }
0x14fd   :  { %2762 = vmatmul.mubr.msk.f32.vlgmr.msra.gmra.mxu0 %vm97_vm0, %v1997_v18  ;;  %v2318_v18 = vld [vmem:[%s3543_s17 + $0x18] sm:$0xff] }
0x14fe   :  { %2807 = vmatprep.mubr.msk.f32.mxu0 %vm2890_vm1, %v2889_v7  ;;  %2776 = vmatpush3.msra.mxu0 %v2463_v43 }
0x14ff   :  { %2777 = vmatprep.subr.mxu0 %v2889_v7 }
0x1500   :  { %2778 = vmatpush3.msra.mxu0 %v2462_v44 }
0x1501   :  { %2779 = vmatprep.subr.mxu0 %v2889_v7 }
0x1502   :  { %2780 = vmatpush3.msra.mxu0 %v2461_v45 }
0x1503   :  { %2781 = vmatprep.subr.mxu0 %v2889_v7 }
0x1504   :  { %2782 = vmatpush3.msra.mxu0 %v2460_v46 }
0x1505   :  { %2783 = vmatprep.subr.mxu0 %v2889_v7 }
0x1506   :  { %2784 = vmatpush3.msra.mxu0 %v2459_v47 }
0x1507   :  { %2785 = vmatprep.subr.mxu0 %v2889_v7 }
0x1508   :  { %2786 = vmatpush3.msra.mxu0 %v2458_v48 }
0x1509   :  { %2787 = vmatprep.subr.mxu0 %v2889_v7 }
0x150a   :  { %2788 = vmatpush3.msra.mxu0 %v2457_v49 }
0x150b   :  { %2789 = vmatprep.subr.mxu0 %v2889_v7 }
0x150c   :  { %2790 = vmatpush3.msra.mxu0 %v2456_v50 }
0x150d   :  { %2791 = vmatprep.subr.mxu0 %v2889_v7 }
0x150e   :  { %2792 = vmatpush3.msra.mxu0 %v2455_v51 }
0x150f   :  { %2793 = vmatprep.subr.mxu0 %v2889_v7 }
0x1510   :  { %2794 = vmatpush3.msra.mxu0 %v2454_v52 }
0x1511   :  { %2795 = vmatprep.subr.mxu0 %v2889_v7 }
0x1512   :  { %2796 = vmatpush3.msra.mxu0 %v2453_v53 }
0x1513   :  { %2797 = vmatprep.subr.mxu0 %v2889_v7 }
0x1514   :  { %2798 = vmatpush3.msra.mxu0 %v2452_v54 }
0x1515   :  { %2799 = vmatprep.subr.mxu0 %v2889_v7 }
0x1516   :  { %2800 = vmatpush3.msra.mxu0 %v2451_v55 }
0x1517   :  { %2801 = vmatprep.subr.mxu0 %v2889_v7 }
0x1518   :  { %2802 = vmatpush3.msra.mxu0 %v2450_v56 }
0x1519   :  { %2803 = vmatprep.subr.mxu0 %v2889_v7 }
0x151a   :  { %2804 = vmatpush3.msra.mxu0 %v2449_v57 }
0x151b   :  { %2805 = vmatprep.subr.mxu0 %v2889_v7 }
0x151c   :  { %2806 = vmatpush3.msra.mxu0 %v2448_v28 }
0x15bd   :  { %v2067_v20 = vpop.f32.mrf.mxu0 }
0x15be   :  { %v2071_v21 = vadd.f32 %v2067_v20, %v3257_v38  ;;  %v2445_v38 = vld [vmem:[%s3536_s11 + $0x30] sm:$0xff]  ;;  %v2316_v20 = vld [vmem:[%s3543_s17 + $0x8] sm:$0xff] }
0x15bf   :  { %v2763_v22 = vpop.f32.mrf.mxu0  ;;  %2767 = vmatpush3.msra.mxu1 %v2445_v38 }
0x15c0   :  { %v3396_v24 = vadd.f32 %v2482_v19, %v2071_v21  ;;  %2768 = vmatprep.subr.mxu1 %v2889_v7  ;;  %v2317_v19 = vld [vmem:[%s3543_s17 + $0x10] sm:$0xff]  ;;  %v2315_v21 = vld [vmem:[%s3543_s17] sm:$0xff] }
0x15c1   :  { %2769 = vmatpush3.msra.mxu1 %v2444_v31 }
0x15c2   :  { %v2079_v16 = vsel %vm97_vm0, %v3396_v24, 0.0  ;;  %2770 = vmatprep.subr.mxu1 %v2889_v7 }
0x15c3   :  { %2080 = vadd.xlane.f32.xlu0 %v2079_v16  ;;  %2771 = vmatpush3.msra.mxu1 %v2443_v32 }
0x15c4   :  { %2810 = vmatprep.subr.mxu1 %v2889_v7 }
0x164c   :  { %v2081_v25 = vpop.xlane.xlu0 %2080 }
0x164d   :  { %v2082_v23 = vmul.f32 0.03125, %v2081_v25 }
0x164f   :  { %v2083_v26 = vsub.f32 %v3396_v24, %v2082_v23  ;;  %v2489_v23 = vld [vmem:[%s3544_s15] ss:$0 sm:$0xff] }
0x1651   :  { %v2084_v27 = vmul.f32 %v2083_v26, %v2083_v26 }
0x1653   :  { %v2085_v29 = vsel %vm97_vm0, %v2084_v27, 0.0  ;;  %v2490_v27 = vld [vmem:[%s3545_s16] ss:$0 sm:$0xff] }
0x1654   :  { %2086 = vadd.xlane.f32.xlu1 %v2085_v29 }
0x16dd   :  { %v2087_v33 = vpop.xlane.xlu1 %2086 }
0x16de   :  { %v2088_v34 = vmul.f32 0.03125, %v2087_v33 }
0x16e0   :  { %v2089_v35 = vadd.f32 1e-05, %v2088_v34 }
0x16e2   :  { %2879 = vrsqrt.f32 %v2089_v35 }
0x16ef   :  { %v2880_v36 = vpop.eup %2879 }
0x16f0   :  { %v2091_v39 = vmul.f32 %v2880_v36, %v2083_v26 }
0x16f2   :  { %v2098_v41 = vmul.f32 %v2483_v37, %v2091_v39 }
0x16f4   :  { %v2105_v42 = vadd.f32 %v2484_v40, %v2098_v41 }
0x16f6   :  { %2773 = vmatmul.mubr.msk.f32.vlgmr.msra.gmra.mxu1 %vm97_vm0, %v2105_v42 }
0x16f7   :  { %2818 = vmatprep.mubr.msk.f32.mxu1 %vm2890_vm1, %v2889_v7  ;;  %2811 = vmatpush3.msra.mxu1 %v2318_v18 }
0x16f8   :  { %2812 = vmatprep.subr.mxu1 %v2889_v7 }
0x16f9   :  { %2813 = vmatpush3.msra.mxu1 %v2317_v19 }
0x16fa   :  { %2814 = vmatprep.subr.mxu1 %v2889_v7 }
0x16fb   :  { %2815 = vmatpush3.msra.mxu1 %v2316_v20 }
0x16fc   :  { %2816 = vmatprep.subr.mxu1 %v2889_v7 }
0x16fd   :  { %2817 = vmatpush3.msra.mxu1 %v2315_v21 }
0x17b6   :  { %v2181_v58 = vpop.f32.mrf.mxu1 }
0x17b7   :  { %v2182_v60 = vadd.f32 %v2485_v0, %v2181_v58 }
0x17b8   :  { %v2774_v61 = vpop.f32.mrf.mxu1 }
0x17b9   :  { %v2487_v62 = vmul.f32 -1.702, %v2182_v60 }
0x17bb   :  { %v2187_v63 = vmul.f32 1.442695, %v2487_v62 }
0x17bd   :  { %2881 = vpow2.f32 %v2187_v63 }
0x17ca   :  { %v2882_v1 = vpop.eup %2881 }
0x17cb   :  { %v2189_v2 = vadd.f32 1.0, %v2882_v1 }
0x17cd   :  { %2883 = vrcp.f32 %v2189_v2 }
0x17da   :  { %v2884_v3 = vpop.eup %2883 }
0x17db   :  { %v2192_v59 = vmul.f32 %v2884_v3, %v2182_v60 }
0x17dd   :  { %2808 = vmatmul.mubr.f32.vlgmr.msra.gmra.mxu0 %v2192_v59 }
0x189d   :  { %v2265_v5 = vpop.f32.mrf.mxu0 }
0x189e   :  { %v2266_v6 = vadd.f32 %v2488_v4, %v2265_v5 }
0x189f   :  { %v2809_v8 = vpop.f32.mrf.mxu0 }
0x18a0   :  { %v2269_v9 = vadd.f32 %v2266_v6, %v3396_v24 }
0x18a2   :  { %v2272_v10 = vsel %vm97_vm0, %v2269_v9, 0.0 }
0x18a3   :  { %2273 = vadd.xlane.f32.xlu0 %v2272_v10 }
0x192c   :  { %v2274_v11 = vpop.xlane.xlu0 %2273 }
0x192d   :  { %v2275_v12 = vmul.f32 0.03125, %v2274_v11 }
0x192f   :  { %v2276_v13 = vsub.f32 %v2269_v9, %v2275_v12 }
0x1931   :  { %v2277_v14 = vmul.f32 %v2276_v13, %v2276_v13 }
0x1933   :  { %v2278_v15 = vsel %vm97_vm0, %v2277_v14, 0.0 }
0x1934   :  { %2279 = vadd.xlane.f32.xlu0 %v2278_v15 }
0x194a   :  { %2305 = vbcast.lane.b32.xlu0 %v2491_v17, 256 }
0x19bd   :  { %v2280_v22 = vpop.xlane.xlu0 %2279 }
0x19be   :  { %v2281_v24 = vmul.f32 0.03125, %v2280_v22 }
0x19c0   :  { %v2282_v16 = vadd.f32 1e-05, %v2281_v24 }
0x19c1   :  { %v2306_v30 = vpop.permute.xlu0 %2305 }
0x19c2   :  { %2885 = vrsqrt.f32 %v2282_v16 }
0x19cf   :  { %v2886_v25 = vpop.eup %2885 }
0x19d0   :  { %v2284_v26 = vmul.f32 %v2886_v25, %v2276_v13 }
0x19d2   :  { %v2291_v29 = vmul.f32 %v2489_v23, %v2284_v26 }
0x19d4   :  { %v2298_v38 = vadd.f32 %v2490_v27, %v2291_v29 }
0x19d6   :  { %v2307_v31 = vmul.f32 %v2306_v30, %v2298_v38 }
0x19d8   :  { %v2308_v7 = vsel %vm97_vm0, %v2307_v31, 0.0 }
0x19d9   :  { %v2309_v32 = vrot.slane %v2308_v7, 4 }
0x19db   :  { %v2310_v33 = vadd.f32 %v2309_v32, %v2308_v7 }
0x19dd   :  { %v2311_v34 = vrot.slane %v2310_v33, 2 }
0x19df   :  { %v2312_v35 = vadd.f32 %v2311_v34, %v2310_v33 }
0x19e1   :  { %v2313_v36 = vrot.slane %v2312_v35, 1 }
0x19e3   :  { %v2314_v37 = vadd.f32 %v2313_v36, %v2312_v35 }
0x19e5   :  { %2819 = vmatmul.mubr.msk.f32.vlgmr.msra.gmra.mxu1 %vm97_vm0, %v2314_v37 }
0x1aa5   :  { %v2388_v39 = vpop.f32.mrf.mxu1 }
0x1aa6   :  { %v2392_v40 = vmul.f32 %v2388_v39, %v2388_v39 }
0x1aa7   :  { %v2820_v41 = vpop.f32.mrf.mxu1 }
0x1aa8   :  { %v2394_v42 = vsel %vm2393_vm5, %v2392_v40, 0.0 }
0x1aa9   :  { %2395 = vadd.xlane.f32.xlu1 %v2394_v42 }
0x1b32   :  { %v2396_v43 = vpop.xlane.xlu1 %2395 }
0x1b33   :  { %v2397_v44 = vmax.f32 %v2396_v43, 1e-24 }
0x1b35   :  { %2887 = vrsqrt.f32 %v2397_v44 }
0x1b42   :  { %v2888_v45 = vpop.eup %2887 }
0x1b43   :  { %v2399_v46 = vmul.f32 %v2888_v45, %v2388_v39 }
0x1b45   :  { %2400 = vst.msk [vmem:[%s3546_s18] sm:$0x1] %vm2393_vm5, %v2399_v46 }

// kernel: clip_forward.3
= control target key start
LH: loop header
LB: loop body
LE: loop exit
PB: predicated region body
PF: predicated region fallthrough
CT: control target
= control target key end

     0   :  { %s5832_s0 = inlined_call_operand.vmem [shape: f32[16,192], index: 0, kind: input, shape index: {}]   ;;  %s5833_s1 = inlined_call_operand.vmem [shape: f32[192,32], index: 1, kind: input, shape index: {}]   ;;  %s5834_s2 = inlined_call_operand.vmem [shape: f32[8,32], index: 2, kind: input, shape index: {}]   ;;  %s5835_s3 = inlined_call_operand.vmem [shape: f32[8,8], index: 3, kind: input, shape index: {}]   ;;  %s5836_s4 = inlined_call_operand.vmem [shape: f32[1,32], index: 4, kind: input, shape index: {}]   ;;  %s5837_s5 = inlined_call_operand.vmem [shape: f32[1,32], index: 5, kind: input, shape index: {}]   ;;  %s5838_s6 = inlined_call_operand.vmem [shape: f32[2,1,32], index: 6, kind: input, shape index: {}]   ;;  %s5839_s7 = inlined_call_operand.vmem [shape: f32[2,1,32], index: 7, kind: input, shape index: {}]   ;;  %s5840_s8 = inlined_call_operand.vmem [shape: f32[2,32,96], index: 8, kind: input, shape index: {}]   ;;  %s5841_s9 = inlined_call_operand.vmem [shape: f32[2,1,96], index: 9, kind: input, shape index: {}]   ;;  %s5842_s10 = inlined_call_operand.vmem [shape: f32[2,32,32], index: 10, kind: input, shape index: {}]   ;;  %s5843_s11 = inlined_call_operand.vmem [shape: f32[2,1,32], index: 11, kind: input, shape index: {}]   ;;  %s5844_s12 = inlined_call_operand.vmem [shape: f32[2,1,32], index: 12, kind: input, shape index: {}]   ;;  %s5845_s13 = inlined_call_operand.vmem [shape: f32[2,1,32], index: 13, kind: input, shape index: {}]   ;;  %s5846_s14 = inlined_call_operand.vmem [shape: f32[2,32,128], index: 14, kind: input, shape index: {}]   ;;  %s5847_s15 = inlined_call_operand.vmem [shape: f32[2,1,128], index: 15, kind: input, shape index: {}]   ;;  %s5848_s16 = inlined_call_operand.vmem [shape: f32[2,128,32], index: 16, kind: input, shape index: {}]   ;;  %s5849_s17 = inlined_call_operand.vmem [shape: f32[2,1,32], index: 17, kind: input, shape index: {}]   ;;  %s5850_s18 = inlined_call_operand.vmem [shape: f32[1,32], index: 18, kind: input, shape index: {}]   ;;  %s5851_s19 = inlined_call_operand.vmem [shape: f32[1,32], index: 19, kind: input, shape index: {}]   ;;  %s5852_s20 = inlined_call_operand.vmem [shape: f32[32,32], index: 20, kind: input, shape index: {}]   ;;  %s5853_s21 = inlined_call_operand.vmem [shape: f32[1,32], index: 21, kind: input, shape index: {}]   ;;  %s5854_s22 = inlined_call_operand.hbm [shape: f32[1,2], index: 22, kind: output, shape index: {}]  }
   0x1   :  { %5877 = sst [smem:[#allocation5_spill]] %s5832_s0 }
   0x2   :  { %5878 = sst [smem:[#allocation6_spill]] %s5833_s1 }
   0x3   :  { %5879 = sst [smem:[#allocation7_spill]] %s5834_s2 }
   0x4   :  { %5880 = sst [smem:[#allocation8_spill]] %s5835_s3 }
   0x5   :  { %5881 = sst [smem:[#allocation9_spill]] %s5836_s4 }
   0x6   :  { %5882 = sst [smem:[#allocation10_spill]] %s5837_s5 }
   0x7   :  { %5883 = sst [smem:[#allocation11_spill]] %s5838_s6 }
   0x8   :  { %s5884_s29 = sld [smem:[#allocation6_spill]]  ;;  %v4901_v1 = vmov 0.0   ;;  %vm100_vm0 = vcmask 523264  }
   0x9   :  { %107 = vmatprep.subr.mxu0 %v4901_v1  ;;  %4456 = vmatprep.subr.mxu1 %v4901_v1  ;;  %s5885_s2 = sld [smem:[#allocation5_spill]] }
   0xe   :  { %v91_v0 = vld [vmem:[%s5884_s29 + $0x78] sm:$0xff]  ;;  %v90_v2 = vld [vmem:[%s5884_s29 + $0x70] sm:$0xff]  ;;  %v89_v3 = vld [vmem:[%s5884_s29 + $0x68] sm:$0xff] }
   0xf   :  { %108 = vmatpush1.msra.mxu0 %v91_v0  ;;  %v88_v4 = vld [vmem:[%s5884_s29 + $0x60] sm:$0xff]  ;;  %v87_v5 = vld [vmem:[%s5884_s29 + $0x58] sm:$0xff]  ;;  %v73_v6 = vld [vmem:[%s5885_s2 + $0x8] sm:$0xff] }
  0x10   :  { %109 = vmatprep.subr.mxu0 %v4901_v1  ;;  %v86_v7 = vld [vmem:[%s5884_s29 + $0x50] sm:$0xff]  ;;  %4177 = vmatprep.mubr.msk.f32.mxu0 %vm100_vm0, %v73_v6 }
  0x11   :  { %110 = vmatpush1.msra.mxu0 %v90_v2 }
  0x12   :  { %111 = vmatprep.subr.mxu0 %v4901_v1 }
  0x13   :  { %112 = vmatpush1.msra.mxu0 %v89_v3 }
  0x14   :  { %113 = vmatprep.subr.mxu0 %v4901_v1 }
  0x15   :  { %114 = vmatpush1.msra.mxu0 %v88_v4 }
  0x16   :  { %115 = vmatprep.subr.mxu0 %v4901_v1 }
  0x17   :  { %27 = vsyncpa [#allocation3], 0  ;;  %116 = vmatpush1.msra.mxu0 %v87_v5  ;;  %v85_v8 = vld [vmem:[%s5884_s29 + $0x48] sm:$0xff]  ;;  %v84_v9 = vld [vmem:[%s5884_s29 + $0x40] sm:$0xff]  ;;  %s5886_s23 = sld [smem:[#allocation7_spill]]  ;;  %vm187_vm1 = vcmask 261120  }
  0x18   :  { %117 = vmatprep.subr.mxu0 %v4901_v1  ;;  %v83_v10 = vld [vmem:[%s5884_s29 + $0x38] sm:$0xff]  ;;  %v82_v11 = vld [vmem:[%s5884_s29 + $0x30] sm:$0xff]  ;;  %v81_v12 = vld [vmem:[%s5884_s29 + $0x28] sm:$0xff]  ;;  %s5887_s5 = sld [smem:[#allocation9_spill]]  ;;  %vm4902_vm2 = vmmov 0   ;;  %s4903_s26 = smov 96  }
  0x19   :  { %118 = vmatpush1.msra.mxu0 %v86_v7  ;;  %v80_v13 = vld [vmem:[%s5884_s29 + $0x20] sm:$0xff]  ;;  %v79_v14 = vld [vmem:[%s5884_s29 + $0x18] sm:$0xff]  ;;  %v78_v15 = vld [vmem:[%s5884_s29 + $0x10] sm:$0xff]  ;;  %s5888_s25 = sld [smem:[#allocation10_spill]]  ;;  %4458 = vmatprep.mubr.msk.f32.mxu1 %vm4902_vm2, %v4901_v1  ;;  %vm400_vm3 = vcmask 64512   ;;  %s4904_s30 = smov 64  }
  0x1a   :  { %119 = vmatprep.subr.mxu0 %v4901_v1  ;;  %v77_v16 = vld [vmem:[%s5884_s29 + $0x8] sm:$0xff]  ;;  %v76_v17 = vld [vmem:[%s5884_s29] sm:$0xff]  ;;  %v99_v18 = vld [vmem:[%s5884_s29 + $0xb8] sm:$0xff]  ;;  %s5889_s1 = sld [smem:[#allocation11_spill]]  ;;  %s4905_s4 = smov 88   ;;  %vm1761_vm4 = vcmask 195584  }
  0x1b   :  { %120 = vmatpush1.msra.mxu0 %v85_v8  ;;  %v98_v19 = vld [vmem:[%s5884_s29 + $0xb0] sm:$0xff]  ;;  %v97_v20 = vld [vmem:[%s5884_s29 + $0xa8] sm:$0xff]  ;;  %v96_v21 = vld [vmem:[%s5884_s29 + $0xa0] sm:$0xff]  ;;  %s5890_s28 = sld [smem:[#allocation8_spill]]  ;;  %s4907_s0 = smov 56   ;;  %vm1758_vm5 = vcmask 130048  }
  0x1c   :  { %121 = vmatprep.subr.mxu0 %v4901_v1  ;;  %v95_v22 = vld [vmem:[%s5884_s29 + $0x98] sm:$0xff]  ;;  %v94_v23 = vld [vmem:[%s5884_s29 + $0x90] sm:$0xff]  ;;  %v93_v24 = vld [vmem:[%s5884_s29 + $0x88] sm:$0xff]  ;;  %s5867_s24 = smov 72   ;;  %s5861_s6 = smov 104   ;;  %vm3948_vm6 = vcmask 1041409  }
  0x1d   :  { %122 = vmatpush1.msra.mxu0 %v84_v9  ;;  %v92_v25 = vld [vmem:[%s5884_s29 + $0x80] sm:$0xff]  ;;  %v75_v27 = vld [vmem:[%s5885_s2 + $0x18] sm:$0xff]  ;;  %v74_v28 = vld [vmem:[%s5885_s2 + $0x10] sm:$0xff]  ;;  %s4906_s29 = smov 120   ;;  %s5859_s27 = smov 8   ;;  %vm3951_vm7 = vcmask 254976  }
  0x1e   :  { %123 = vmatprep.subr.mxu0 %v4901_v1  ;;  %v72_v26 = vld [vmem:[%s5885_s2] sm:$0xff]  ;;  %s5871_s2 = smov 112   ;;  %s5865_s3 = smov 16   ;;  %vm4161_vm8 = vcmask 8192  }
  0x1f   :  { %124 = vmatpush1.msra.mxu0 %v83_v10  ;;  %v182_v29 = vld [vmem:[%s5886_s23] sm:$0xff]  ;;  %s5873_s23 = smov 80  }
  0x20   :  { %125 = vmatprep.subr.mxu0 %v4901_v1  ;;  %v4179_v55 = vld [vmem:[%s5887_s5] ss:$0 sm:$0xff]  ;;  %s5869_s5 = smov 48  }
  0x21   :  { %126 = vmatpush1.msra.mxu0 %v82_v11  ;;  %v4180_v57 = vld [vmem:[%s5888_s25] ss:$0 sm:$0xff]  ;;  %s5863_s25 = smov 40  }
  0x22   :  { %127 = vmatprep.subr.mxu0 %v4901_v1 }
  0x23   :  { %128 = vmatpush1.msra.mxu0 %v81_v12 }
  0x24   :  { %129 = vmatprep.subr.mxu0 %v4901_v1 }
  0x25   :  { %130 = vmatpush1.msra.mxu0 %v80_v13  ;;  %v237_v13 = vld [vmem:[%s5840_s8 + $0x18] sm:$0xff] }
  0x26   :  { %131 = vmatprep.subr.mxu0 %v4901_v1 }
  0x27   :  { %132 = vmatpush1.msra.mxu0 %v79_v14  ;;  %v236_v14 = vld [vmem:[%s5840_s8 + $0x10] sm:$0xff] }
  0x28   :  { %133 = vmatprep.subr.mxu0 %v4901_v1 }
  0x29   :  { %134 = vmatpush1.msra.mxu0 %v78_v15  ;;  %v235_v15 = vld [vmem:[%s5840_s8 + $0x8] sm:$0xff] }
  0x2a   :  { %135 = vmatprep.subr.mxu0 %v4901_v1 }
  0x2b   :  { %136 = vmatpush1.msra.mxu0 %v77_v16  ;;  %v234_v16 = vld [vmem:[%s5840_s8] sm:$0xff] }
  0x2c   :  { %137 = vmatprep.subr.mxu0 %v4901_v1 }
  0x2d   :  { %138 = vmatpush1.msra.mxu0 %v76_v17 }
  0x2e   :  { %155 = vmatprep.subr.mxu0 %v4901_v1 }
  0x2f   :  { %156 = vmatpush2.msra.mxu0 %v99_v18 }
  0x30   :  { %157 = vmatprep.subr.mxu0 %v4901_v1 }
  0x31   :  { %158 = vmatpush2.msra.mxu0 %v98_v19 }
  0x32   :  { %159 = vmatprep.subr.mxu0 %v4901_v1 }
  0x33   :  { %160 = vmatpush2.msra.mxu0 %v97_v20 }
  0x34   :  { %161 = vmatprep.subr.mxu0 %v4901_v1 }
  0x35   :  { %162 = vmatpush2.msra.mxu0 %v96_v21 }
  0x36   :  { %163 = vmatprep.subr.mxu0 %v4901_v1 }
  0x37   :  { %164 = vmatpush2.msra.mxu0 %v95_v22 }
  0x38   :  { %165 = vmatprep.subr.mxu0 %v4901_v1 }
  0x39   :  { %166 = vmatpush2.msra.mxu0 %v94_v23 }
  0x3a   :  { %167 = vmatprep.subr.mxu0 %v4901_v1 }
  0x3b   :  { %168 = vmatpush2.msra.mxu0 %v93_v24  ;;  %v4181_v24 = vld [vmem:[%s5889_s1] ss:$0 sm:$0xff] }
  0x3c   :  { %169 = vmatprep.subr.mxu0 %v4901_v1 }
  0x3d   :  { %170 = vmatpush2.msra.mxu0 %v92_v25 }
  0x3e   :  { %172 = vmatmul.mubr.f32.vlgmr.msra.gmra.mxu0 %v72_v26  ;;  %4445 = vmatprep.subr.mxu0 %v237_v13  ;;  %v4182_v26 = vld [vmem:[%s5839_s7] ss:$0 sm:$0xff] }
  0x3f   :  { %4178 = vmatprep.mubr.msk.f32.mxu0 %vm100_vm0, %v75_v27  ;;  %4446 = vmatpush3.msra.mxu0 %v237_v13 }
  0x40   :  { %4447 = vmatprep.subr.mxu0 %v236_v14 }
  0x41   :  { %4448 = vmatpush3.msra.mxu0 %v236_v14 }
  0x42   :  { %177 = vmatmul.mubr.f32.gmra.mxu0 %v74_v28  ;;  %4449 = vmatprep.subr.mxu0 %v235_v15 }
  0x43   :  { %4450 = vmatpush3.msra.mxu0 %v235_v15 }
  0x44   :  { %4451 = vmatprep.subr.mxu0 %v234_v16 }
  0x45   :  { %4452 = vmatpush3.msra.mxu0 %v234_v16 }
  0x46   :  { %4511 = vmatprep.subr.mxu0 %v4901_v1 }
  0xfe   :  { %v173_v30 = vpop.f32.mrf.mxu0 }
  0xff   :  { %v183_v31 = vadd.f32 %v182_v29, %v173_v30 }
 0x100   :  { %v175_v32 = vpop.f32.mrf.mxu0 }
 0x101   :  { %v188_v33 = vsel %vm187_vm1, %v183_v31, 0.0 }
 0x102   :  { %189 = vadd.xlane.f32.xlu0 %v188_v33  ;;  %v178_v34 = vpop.f32.mrf.mxu0  ;;  %v4183_v33 = vld [vmem:[%s5841_s9] ss:$0 sm:$0xff] }
 0x103   :  { %v184_v35 = vadd.f32 %v182_v29, %v178_v34 }
 0x104   :  { %v180_v36 = vpop.f32.mrf.mxu0 }
 0x105   :  { %v191_v37 = vsel %vm187_vm1, %v184_v35, 0.0 }
 0x106   :  { %192 = vadd.xlane.f32.xlu0 %v191_v37 }
 0x18b   :  { %v190_v38 = vpop.xlane.xlu0 %189 }
 0x18c   :  { %v195_v39 = vmul.f32 0.03125, %v190_v38 }
 0x18e   :  { %v197_v40 = vsub.f32 %v183_v31, %v195_v39 }
 0x18f   :  { %v193_v41 = vpop.xlane.xlu0 %192 }
 0x190   :  { %v196_v42 = vmul.f32 0.03125, %v193_v41  ;;  %v199_v43 = vmul.f32 %v197_v40, %v197_v40  ;;  %v5220_v41 = vld [vmem:[%s5890_s28] sm:$0xff] }
 0x192   :  { %v198_v44 = vsub.f32 %v184_v35, %v196_v42  ;;  %v201_v45 = vsel %vm187_vm1, %v199_v43, 0.0 }
 0x193   :  { %202 = vadd.xlane.f32.xlu1 %v201_v45 }
 0x194   :  { %v200_v46 = vmul.f32 %v198_v44, %v198_v44 }
 0x196   :  { %v204_v47 = vsel %vm187_vm1, %v200_v46, 0.0 }
 0x197   :  { %205 = vadd.xlane.f32.xlu1 %v204_v47 }
 0x21c   :  { %v203_v48 = vpop.xlane.xlu1 %202 }
 0x21d   :  { %v207_v49 = vmul.f32 0.03125, %v203_v48 }
 0x21f   :  { %v209_v50 = vadd.f32 1e-05, %v207_v49 }
 0x220   :  { %v206_v51 = vpop.xlane.xlu1 %205 }
 0x221   :  { %4774 = vrsqrt.f32 %v209_v50  ;;  %v208_v52 = vmul.f32 0.03125, %v206_v51 }
 0x223   :  { %v210_v53 = vadd.f32 1e-05, %v208_v52 }
 0x225   :  { %4776 = vrsqrt.f32 %v210_v53 }
 0x22e   :  { %v4775_v54 = vpop.eup %4774 }
 0x22f   :  { %v213_v56 = vmul.f32 %v4775_v54, %v197_v40 }
 0x231   :  { %v221_v58 = vmul.f32 %v4179_v55, %v213_v56 }
 0x232   :  { %v4777_v59 = vpop.eup %4776 }
 0x233   :  { %v5157_v60 = vadd.f32 %v4180_v57, %v221_v58  ;;  %v214_v61 = vmul.f32 %v4777_v59, %v198_v44 }
 0x235   :  { %v268_v62 = vsel %vm187_vm1, %v5157_v60, 0.0  ;;  %v222_v63 = vmul.f32 %v4179_v55, %v214_v61 }
 0x236   :  { %269 = vadd.xlane.f32.xlu0 %v268_v62 }
 0x237   :  { %v5161_v0 = vadd.f32 %v4180_v57, %v222_v63 }
 0x239   :  { %v271_v2 = vsel %vm187_vm1, %v5161_v0, 0.0 }
 0x23a   :  { %272 = vadd.xlane.f32.xlu1 %v271_v2 }
 0x2bf   :  { %v270_v3 = vpop.xlane.xlu0 %269 }
 0x2c0   :  { %v274_v4 = vmul.f32 0.03125, %v270_v3 }
 0x2c2   :  { %v276_v5 = vsub.f32 %v5157_v60, %v274_v4 }
 0x2c3   :  { %v273_v6 = vpop.xlane.xlu1 %272 }
 0x2c4   :  { %v275_v7 = vmul.f32 0.03125, %v273_v6  ;;  %v278_v8 = vmul.f32 %v276_v5, %v276_v5 }
 0x2c6   :  { %v277_v9 = vsub.f32 %v5161_v0, %v275_v7  ;;  %v280_v10 = vsel %vm187_vm1, %v278_v8, 0.0 }
 0x2c7   :  { %281 = vadd.xlane.f32.xlu0 %v280_v10 }
 0x2c8   :  { %v279_v11 = vmul.f32 %v277_v9, %v277_v9 }
 0x2ca   :  { %v283_v12 = vsel %vm187_vm1, %v279_v11, 0.0 }
 0x2cb   :  { %284 = vadd.xlane.f32.xlu1 %v283_v12 }
 0x350   :  { %v282_v17 = vpop.xlane.xlu0 %281 }
 0x351   :  { %v286_v18 = vmul.f32 0.03125, %v282_v17 }
 0x353   :  { %v288_v19 = vadd.f32 1e-05, %v286_v18 }
 0x354   :  { %v285_v20 = vpop.xlane.xlu1 %284 }
 0x355   :  { %4778 = vrsqrt.f32 %v288_v19  ;;  %v287_v21 = vmul.f32 0.03125, %v285_v20 }
 0x357   :  { %v289_v22 = vadd.f32 1e-05, %v287_v21 }
 0x359   :  { %4780 = vrsqrt.f32 %v289_v22 }
 0x362   :  { %v4779_v23 = vpop.eup %4778 }
 0x363   :  { %v292_v25 = vmul.f32 %v4779_v23, %v276_v5 }
 0x365   :  { %v300_v27 = vmul.f32 %v4181_v24, %v292_v25 }
 0x366   :  { %v4781_v28 = vpop.eup %4780 }
 0x367   :  { %v293_v29 = vmul.f32 %v4781_v28, %v277_v9  ;;  %v308_v30 = vadd.f32 %v4182_v26, %v300_v27 }
 0x369   :  { %v301_v31 = vmul.f32 %v4181_v24, %v293_v29  ;;  %4453 = vmatprep.mubr.msk.f32.mxu0 %vm187_vm1, %v308_v30 }
 0x36b   :  { %v309_v32 = vadd.f32 %v4182_v26, %v301_v31 }
 0x36d   :  { %4454 = vmatmul.mubr.msk.f32.vlgmr.msra.gmra.mxu0 %vm187_vm1, %v309_v32 }
 0x36e   :  { %4513 = vmatprep.mubr.msk.f32.mxu0 %vm4902_vm2, %v4901_v1 }
 0x42d   :  { %v4455_v34 = vpop.f32.mrf.mxu0 }
 0x42e   :  { %v5197_v35 = vadd.f32 %v4455_v34, %v4183_v33 }
 0x42f   :  { %v388_v36 = vpop.f32.mrf.mxu0 }
 0x430   :  { %v5199_v37 = vadd.f32 %v4183_v33, %v388_v36  ;;  %476 = vrot.lane.b32.xlu1 %v5197_v35, %s4903_s26 }
 0x432   :  { %398 = vrot.lane.b32.xlu0 %v5199_v37, %s4903_s26 }
 0x4a2   :  { %v477_v39 = vpop.permute.xlu1 %476 }
 0x4a4   :  { %v399_v38 = vpop.permute.xlu0 %398 }
 0x4a5   :  { %4457 = vmatpush3.xpose.msk.msra.mxu1 %vm400_vm3, %v399_v38 }
 0x4a6   :  { %4461 = vmatprep.subr.mxu1 %v4901_v1 }
 0x4a8   :  { %4459 = vmatmul.mubr.msk.f32.vlgmr.msra.gmra.mxu1 %vm400_vm3, %v5199_v37 }
 0x4a9   :  { %4462 = vmatpush3.xpose.msk.msra.mxu1 %vm400_vm3, %v477_v39  ;;  %4463 = vmatprep.mubr.msk.f32.mxu1 %vm4902_vm2, %v4901_v1 }
 0x4aa   :  { %4466 = vmatprep.subr.mxu1 %v4901_v1 }
 0x4ac   :  { %4464 = vmatmul.mubr.msk.f32.vlgmr.msra.gmra.mxu1 %vm400_vm3, %v5197_v35 }
 0x4ad   :  { %4468 = vmatprep.mubr.msk.f32.mxu1 %vm4902_vm2, %v4901_v1 }
 0x568   :  { %v471_v40 = vpop.f32.mrf.mxu1 }
 0x569   :  { %v552_v42 = vmul.f32 0.35355338, %v471_v40 }
 0x56a   :  { %v4460_v43 = vpop.f32.mrf.mxu1 }
 0x56b   :  { %v554_v44 = vadd.f32 %v552_v42, %v5220_v41 }
 0x56c   :  { %v548_v45 = vpop.f32.mrf.mxu1 }
 0x56d   :  { %v553_v46 = vmul.f32 0.35355338, %v548_v45  ;;  %v556_v47 = vsel %vm400_vm3, %v554_v44, -inf }
 0x56e   :  { %557 = vmax.xlane.f32.xlu1 %v556_v47  ;;  %v4465_v48 = vpop.f32.mrf.mxu1 }
 0x56f   :  { %v555_v49 = vadd.f32 %v553_v46, %v5220_v41 }
 0x571   :  { %v559_v50 = vsel %vm400_vm3, %v555_v49, -inf }
 0x572   :  { %560 = vmax.xlane.f32.xlu0 %v559_v50 }
 0x57f   :  { %654 = vrot.lane.b32.xlu1 %v5197_v35, %s4904_s30 }
 0x583   :  { %732 = vrot.lane.b32.xlu1 %v5199_v37, %s4905_s4 }
 0x587   :  { %730 = vrot.lane.b32.xlu1 %v5199_v37, %s4906_s29 }
 0x5f7   :  { %v558_v51 = vpop.xlane.xlu1 %557 }
 0x5f8   :  { %v562_v52 = vsub.f32 %v554_v44, %v558_v51 }
 0x5fa   :  { %v564_v53 = vmul.f32 1.442695, %v562_v52 }
 0x5fb   :  { %v561_v54 = vpop.xlane.xlu0 %560  ;;  %v655_v62 = vpop.permute.xlu1 %654 }
 0x5fc   :  { %4782 = vpow2.f32 %v564_v53  ;;  %v563_v55 = vsub.f32 %v555_v49, %v561_v54 }
 0x5fe   :  { %v566_v56 = vmul.f32 1.442695, %v563_v55 }
 0x5ff   :  { %v733_v63 = vpop.permute.xlu1 %732 }
 0x600   :  { %4784 = vpow2.f32 %v566_v56 }
 0x603   :  { %v731_v2 = vpop.permute.xlu1 %730 }
 0x609   :  { %v4783_v57 = vpop.eup %4782 }
 0x60a   :  { %v568_v58 = vsel %vm400_vm3, %v4783_v57, 0.0 }
 0x60b   :  { %569 = vadd.xlane.f32.xlu0 %v568_v58 }
 0x60d   :  { %v4785_v59 = vpop.eup %4784 }
 0x60e   :  { %v571_v61 = vsel %vm400_vm3, %v4785_v59, 0.0 }
 0x60f   :  { %572 = vadd.xlane.f32.xlu1 %v571_v61 }
 0x620   :  { %808 = vrot.lane.b32.xlu1 %v5197_v35, %s4906_s29 }
 0x621   :  { %578 = vrot.lane.b32.xlu0 %v5199_v37, %s4904_s30 }
 0x625   :  { %810 = vrot.lane.b32.xlu0 %v5197_v35, %s4905_s4 }
 0x694   :  { %v570_v3 = vpop.xlane.xlu0 %569 }
 0x695   :  { %4786 = vrcp.f32 %v570_v3 }
 0x698   :  { %v573_v4 = vpop.xlane.xlu1 %572  ;;  %v579_v5 = vpop.permute.xlu0 %578 }
 0x699   :  { %4788 = vrcp.f32 %v573_v4  ;;  %4467 = vmatpush3.msra.mxu1 %v579_v5 }
 0x69a   :  { %4471 = vmatprep.subr.mxu1 %v4901_v1 }
 0x69c   :  { %v811_v10 = vpop.permute.xlu0 %810  ;;  %v809_v11 = vpop.permute.xlu1 %808 }
 0x6a2   :  { %v4787_v6 = vpop.eup %4786 }
 0x6a3   :  { %v576_v7 = vmul.f32 %v4787_v6, %v4783_v57 }
 0x6a5   :  { %4469 = vmatmul.mubr.msk.f32.vlgmr.msra.gmra.mxu1 %vm400_vm3, %v576_v7 }
 0x6a6   :  { %v4789_v8 = vpop.eup %4788  ;;  %4472 = vmatpush3.msra.mxu1 %v655_v62  ;;  %4473 = vmatprep.mubr.msk.f32.mxu1 %vm4902_vm2, %v4901_v1 }
 0x6a7   :  { %4476 = vmatprep.subr.mxu1 %v4901_v1  ;;  %v577_v9 = vmul.f32 %v4789_v8, %v4785_v59 }
 0x6a9   :  { %4474 = vmatmul.mubr.msk.f32.vlgmr.msra.gmra.mxu1 %vm400_vm3, %v577_v9 }
 0x6aa   :  { %4477 = vmatpush3.xpose.msk.msra.mxu1 %vm400_vm3, %v733_v63  ;;  %4478 = vmatprep.mubr.msk.f32.mxu1 %vm4902_vm2, %v4901_v1 }
 0x6ab   :  { %4481 = vmatprep.subr.mxu1 %v4901_v1 }
 0x6ad   :  { %4479 = vmatmul.mubr.msk.f32.vlgmr.msra.gmra.mxu1 %vm400_vm3, %v731_v2 }
 0x6ae   :  { %4482 = vmatpush3.xpose.msk.msra.mxu1 %vm400_vm3, %v811_v10  ;;  %4483 = vmatprep.mubr.msk.f32.mxu1 %vm4902_vm2, %v4901_v1 }
 0x6af   :  { %4486 = vmatprep.subr.mxu1 %v4901_v1 }
 0x6b1   :  { %4484 = vmatmul.mubr.msk.f32.vlgmr.msra.gmra.mxu1 %vm400_vm3, %v809_v11 }
 0x6b2   :  { %4488 = vmatprep.mubr.msk.f32.mxu1 %vm4902_vm2, %v4901_v1 }
 0x765   :  { %v5258_v12 = vpop.f32.mrf.mxu1 }
 0x767   :  { %v4470_v13 = vpop.f32.mrf.mxu1 }
 0x769   :  { %v5260_v14 = vpop.f32.mrf.mxu1 }
 0x76b   :  { %v4475_v15 = vpop.f32.mrf.mxu1 }
 0x76d   :  { %v804_v16 = vpop.f32.mrf.mxu1 }
 0x76e   :  { %v886_v17 = vmul.f32 0.35355338, %v804_v16 }
 0x76f   :  { %v4480_v18 = vpop.f32.mrf.mxu1 }
 0x770   :  { %v888_v19 = vadd.f32 %v886_v17, %v5220_v41 }
 0x771   :  { %v882_v20 = vpop.f32.mrf.mxu1 }
 0x772   :  { %v887_v21 = vmul.f32 0.35355338, %v882_v20  ;;  %v890_v22 = vsel %vm400_vm3, %v888_v19, -inf }
 0x773   :  { %891 = vmax.xlane.f32.xlu0 %v890_v22  ;;  %v4485_v23 = vpop.f32.mrf.mxu1 }
 0x774   :  { %v889_v24 = vadd.f32 %v887_v21, %v5220_v41 }
 0x776   :  { %v893_v25 = vsel %vm400_vm3, %v889_v24, -inf }
 0x777   :  { %894 = vmax.xlane.f32.xlu1 %v893_v25 }
 0x788   :  { %988 = vrot.lane.b32.xlu1 %v5197_v35, %s4907_s0 }
 0x78c   :  { %1066 = vrot.lane.b32.xlu1 %v5199_v37, %s5873_s23 }
 0x790   :  { %1064 = vrot.lane.b32.xlu1 %v5199_v37, %s5871_s2 }
 0x794   :  { %1142 = vrot.lane.b32.xlu1 %v5197_v35, %s5871_s2  ;;  %s4917_s2 = smov [#allocation2]  }
 0x7fc   :  { %v892_v26 = vpop.xlane.xlu0 %891 }
 0x7fd   :  { %v896_v27 = vsub.f32 %v888_v19, %v892_v26 }
 0x7ff   :  { %v898_v28 = vmul.f32 1.442695, %v896_v27 }
 0x800   :  { %v895_v29 = vpop.xlane.xlu1 %894 }
 0x801   :  { %4790 = vpow2.f32 %v898_v28  ;;  %v897_v30 = vsub.f32 %v889_v24, %v895_v29 }
 0x803   :  { %v900_v31 = vmul.f32 1.442695, %v897_v30 }
 0x804   :  { %v989_v42 = vpop.permute.xlu1 %988 }
 0x805   :  { %4792 = vpow2.f32 %v900_v31 }
 0x808   :  { %v1067_v45 = vpop.permute.xlu1 %1066 }
 0x80c   :  { %v1065_v48 = vpop.permute.xlu1 %1064 }
 0x80e   :  { %v4791_v32 = vpop.eup %4790 }
 0x80f   :  { %v902_v33 = vsel %vm400_vm3, %v4791_v32, 0.0 }
 0x810   :  { %903 = vadd.xlane.f32.xlu0 %v902_v33  ;;  %v1143_v50 = vpop.permute.xlu1 %1142 }
 0x812   :  { %v4793_v34 = vpop.eup %4792 }
 0x813   :  { %v905_v36 = vsel %vm400_vm3, %v4793_v34, 0.0 }
 0x814   :  { %906 = vadd.xlane.f32.xlu0 %v905_v36 }
 0x82a   :  { %912 = vrot.lane.b32.xlu0 %v5199_v37, %s4907_s0 }
 0x82e   :  { %1144 = vrot.lane.b32.xlu0 %v5197_v35, %s5873_s23 }
 0x899   :  { %v904_v38 = vpop.xlane.xlu0 %903 }
 0x89a   :  { %4794 = vrcp.f32 %v904_v38 }
 0x89d   :  { %v907_v39 = vpop.xlane.xlu0 %906 }
 0x89e   :  { %4796 = vrcp.f32 %v907_v39 }
 0x8a1   :  { %v913_v40 = vpop.permute.xlu0 %912 }
 0x8a2   :  { %4487 = vmatpush3.msra.mxu1 %v913_v40 }
 0x8a3   :  { %4491 = vmatprep.subr.mxu1 %v4901_v1 }
 0x8a5   :  { %v1145_v49 = vpop.permute.xlu0 %1144 }
 0x8a7   :  { %v4795_v43 = vpop.eup %4794 }
 0x8a8   :  { %v910_v44 = vmul.f32 %v4795_v43, %v4791_v32 }
 0x8aa   :  { %4489 = vmatmul.mubr.msk.f32.vlgmr.msra.gmra.mxu1 %vm400_vm3, %v910_v44 }
 0x8ab   :  { %v4797_v46 = vpop.eup %4796  ;;  %4492 = vmatpush3.msra.mxu1 %v989_v42  ;;  %4493 = vmatprep.mubr.msk.f32.mxu1 %vm4902_vm2, %v4901_v1 }
 0x8ac   :  { %4496 = vmatprep.subr.mxu1 %v4901_v1  ;;  %v911_v47 = vmul.f32 %v4797_v46, %v4793_v34 }
 0x8ae   :  { %4494 = vmatmul.mubr.msk.f32.vlgmr.msra.gmra.mxu1 %vm400_vm3, %v911_v47 }
 0x8af   :  { %4497 = vmatpush3.xpose.msk.msra.mxu1 %vm400_vm3, %v1067_v45  ;;  %4498 = vmatprep.mubr.msk.f32.mxu1 %vm4902_vm2, %v4901_v1 }
 0x8b0   :  { %4501 = vmatprep.subr.mxu1 %v4901_v1 }
 0x8b2   :  { %4499 = vmatmul.mubr.msk.f32.vlgmr.msra.gmra.mxu1 %vm400_vm3, %v1065_v48 }
 0x8b3   :  { %4502 = vmatpush3.xpose.msk.msra.mxu1 %vm400_vm3, %v1145_v49  ;;  %4503 = vmatprep.mubr.msk.f32.mxu1 %vm4902_vm2, %v4901_v1 }
 0x8b4   :  { %4506 = vmatprep.subr.mxu1 %v4901_v1 }
 0x8b6   :  { %4504 = vmatmul.mubr.msk.f32.vlgmr.msra.gmra.mxu1 %vm400_vm3, %v1143_v50 }
 0x8b7   :  { %4508 = vmatprep.mubr.msk.f32.mxu1 %vm4902_vm2, %v4901_v1 }
 0x96a   :  { %v5298_v51 = vpop.f32.mrf.mxu1 }
 0x96c   :  { %v4490_v52 = vpop.f32.mrf.mxu1 }
 0x96e   :  { %v5300_v53 = vpop.f32.mrf.mxu1 }
 0x970   :  { %v4495_v54 = vpop.f32.mrf.mxu1 }
 0x972   :  { %v1138_v55 = vpop.f32.mrf.mxu1 }
 0x973   :  { %v1220_v56 = vmul.f32 0.35355338, %v1138_v55 }
 0x974   :  { %v4500_v57 = vpop.f32.mrf.mxu1 }
 0x975   :  { %v1222_v58 = vadd.f32 %v1220_v56, %v5220_v41 }
 0x976   :  { %v1216_v59 = vpop.f32.mrf.mxu1 }
 0x977   :  { %v1221_v61 = vmul.f32 0.35355338, %v1216_v59  ;;  %v1224_v62 = vsel %vm400_vm3, %v1222_v58, -inf }
 0x978   :  { %1225 = vmax.xlane.f32.xlu0 %v1224_v62  ;;  %v4505_v63 = vpop.f32.mrf.mxu1 }
 0x979   :  { %v1223_v2 = vadd.f32 %v1221_v61, %v5220_v41  ;;  %v241_v63 = vld [vmem:[%s5842_s10 + $0x10] sm:$0xff] }
 0x97b   :  { %v1227_v3 = vsel %vm400_vm3, %v1223_v2, -inf }
 0x97c   :  { %1228 = vmax.xlane.f32.xlu1 %v1227_v3  ;;  %v239_v3 = vld [vmem:[%s5842_s10] sm:$0xff] }
 0x98d   :  { %1322 = vrot.lane.b32.xlu1 %v5197_v35, %s5869_s5 }
 0x98e   :  { %1246 = vrot.lane.b32.xlu0 %v5199_v37, %s5869_s5 }
 0x991   :  { %1400 = vrot.lane.b32.xlu1 %v5199_v37, %s5867_s24 }
 0x995   :  { %1478 = vrot.lane.b32.xlu1 %v5197_v35, %s5867_s24 }
 0x999   :  { %1476 = vrot.lane.b32.xlu1 %v5197_v35, %s5861_s6 }
 0xa01   :  { %v1226_v4 = vpop.xlane.xlu0 %1225 }
 0xa02   :  { %v1230_v5 = vsub.f32 %v1222_v58, %v1226_v4 }
 0xa04   :  { %v1232_v6 = vmul.f32 1.442695, %v1230_v5 }
 0xa05   :  { %v1247_v7 = vpop.permute.xlu0 %1246  ;;  %v1229_v8 = vpop.xlane.xlu1 %1228 }
 0xa06   :  { %4798 = vpow2.f32 %v1232_v6  ;;  %v1231_v9 = vsub.f32 %v1223_v2, %v1229_v8  ;;  %4507 = vmatpush3.msra.mxu1 %v1247_v7  ;;  %v240_v2 = vld [vmem:[%s5842_s10 + $0x8] sm:$0xff] }
 0xa07   :  { %4516 = vmatprep.subr.mxu1 %v4901_v1 }
 0xa08   :  { %v1234_v10 = vmul.f32 1.442695, %v1231_v9 }
 0xa09   :  { %v1323_v11 = vpop.permute.xlu1 %1322 }
 0xa0a   :  { %4800 = vpow2.f32 %v1234_v10  ;;  %4512 = vmatpush3.msra.mxu0 %v1323_v11 }
 0xa0b   :  { %4521 = vmatprep.subr.mxu0 %v4901_v1 }
 0xa0d   :  { %v1401_v20 = vpop.permute.xlu1 %1400 }
 0xa11   :  { %v1479_v24 = vpop.permute.xlu1 %1478 }
 0xa13   :  { %v4799_v13 = vpop.eup %4798 }
 0xa14   :  { %v1236_v15 = vsel %vm400_vm3, %v4799_v13, 0.0 }
 0xa15   :  { %1237 = vadd.xlane.f32.xlu0 %v1236_v15  ;;  %v1477_v27 = vpop.permute.xlu1 %1476 }
 0xa17   :  { %v4801_v16 = vpop.eup %4800 }
 0xa18   :  { %v1239_v17 = vsel %vm400_vm3, %v4801_v16, 0.0 }
 0xa19   :  { %1240 = vadd.xlane.f32.xlu0 %v1239_v17 }
 0xa2f   :  { %1398 = vrot.lane.b32.xlu0 %v5199_v37, %s5861_s6  ;;  %s5875_s6 = smov 24  }
 0xa9e   :  { %v1238_v18 = vpop.xlane.xlu0 %1237 }
 0xa9f   :  { %4802 = vrcp.f32 %v1238_v18 }
 0xaa2   :  { %v1241_v19 = vpop.xlane.xlu0 %1240 }
 0xaa3   :  { %4804 = vrcp.f32 %v1241_v19 }
 0xaa6   :  { %v1399_v26 = vpop.permute.xlu0 %1398 }
 0xaac   :  { %v4803_v21 = vpop.eup %4802 }
 0xaad   :  { %v1244_v22 = vmul.f32 %v4803_v21, %v4799_v13 }
 0xaaf   :  { %4509 = vmatmul.mubr.msk.f32.vlgmr.msra.gmra.mxu1 %vm400_vm3, %v1244_v22 }
 0xab0   :  { %v4805_v23 = vpop.eup %4804  ;;  %4517 = vmatpush3.xpose.msk.msra.mxu1 %vm400_vm3, %v1401_v20  ;;  %4518 = vmatprep.mubr.msk.f32.mxu1 %vm4902_vm2, %v4901_v1 }
 0xab1   :  { %v1245_v25 = vmul.f32 %v4805_v23, %v4801_v16  ;;  %4526 = vmatprep.subr.mxu1 %v4901_v1 }
 0xab3   :  { %4514 = vmatmul.mubr.msk.f32.vlgmr.msra.gmra.mxu0 %vm400_vm3, %v1245_v25  ;;  %4519 = vmatmul.mubr.msk.f32.vlgmr.msra.gmra.mxu1 %vm400_vm3, %v1399_v26 }
 0xab4   :  { %4522 = vmatpush3.xpose.msk.msra.mxu0 %vm400_vm3, %v1479_v24  ;;  %4523 = vmatprep.mubr.msk.f32.mxu0 %vm4902_vm2, %v4901_v1 }
 0xab5   :  { %4531 = vmatprep.subr.mxu0 %v4901_v1  ;;  %4528 = vmatprep.mubr.msk.f32.mxu1 %vm4902_vm2, %v4901_v1 }
 0xab7   :  { %4524 = vmatmul.mubr.msk.f32.vlgmr.msra.gmra.mxu0 %vm400_vm3, %v1477_v27 }
 0xab8   :  { %4533 = vmatprep.mubr.msk.f32.mxu0 %vm4902_vm2, %v4901_v1 }
 0xb6f   :  { %v1318_v28 = vpop.f32.mrf.mxu1 }
 0xb71   :  { %v4510_v29 = vpop.f32.mrf.mxu1 }
 0xb73   :  { %v1394_v30 = vpop.f32.mrf.mxu0  ;;  %v1472_v31 = vpop.f32.mrf.mxu1 }
 0xb74   :  { %v1554_v32 = vmul.f32 0.35355338, %v1472_v31 }
 0xb75   :  { %v4515_v33 = vpop.f32.mrf.mxu0  ;;  %v4520_v34 = vpop.f32.mrf.mxu1 }
 0xb76   :  { %v1556_v36 = vadd.f32 %v1554_v32, %v5220_v41 }
 0xb77   :  { %v1550_v38 = vpop.f32.mrf.mxu0 }
 0xb78   :  { %v1555_v39 = vmul.f32 0.35355338, %v1550_v38  ;;  %v1558_v40 = vsel %vm400_vm3, %v1556_v36, -inf }
 0xb79   :  { %v4525_v42 = vpop.f32.mrf.mxu0  ;;  %1559 = vmax.xlane.f32.xlu0 %v1558_v40  ;;  %v248_v40 = vld [vmem:[%s5846_s14 + $0x10] sm:$0xff] }
 0xb7a   :  { %v1557_v43 = vadd.f32 %v1555_v39, %v5220_v41  ;;  %v249_v39 = vld [vmem:[%s5846_s14 + $0x18] sm:$0xff]  ;;  %v247_v42 = vld [vmem:[%s5846_s14 + $0x8] sm:$0xff] }
 0xb7c   :  { %v1561_v44 = vsel %vm400_vm3, %v1557_v43, -inf }
 0xb7d   :  { %1562 = vmax.xlane.f32.xlu1 %v1561_v44 }
 0xb8e   :  { %1656 = vrot.lane.b32.xlu1 %v5197_v35, %s5863_s25 }
 0xb92   :  { %1734 = vrot.lane.b32.xlu1 %v5298_v51, %s5859_s27 }
 0xb96   :  { %1736 = vrot.lane.b32.xlu1 %v5300_v53, %s5859_s27 }
 0xb9a   :  { %1744 = vrot.lane.b32.xlu1 %v1394_v30, %s5865_s3 }
 0xc02   :  { %v1560_v45 = vpop.xlane.xlu0 %1559 }
 0xc03   :  { %v1564_v46 = vsub.f32 %v1556_v36, %v1560_v45 }
 0xc05   :  { %v1566_v47 = vmul.f32 1.442695, %v1564_v46 }
 0xc06   :  { %v1563_v48 = vpop.xlane.xlu1 %1562 }
 0xc07   :  { %4806 = vpow2.f32 %v1566_v47  ;;  %v1565_v49 = vsub.f32 %v1557_v43, %v1563_v48  ;;  %v246_v43 = vld [vmem:[%s5846_s14] sm:$0xff] }
 0xc09   :  { %v1568_v50 = vmul.f32 1.442695, %v1565_v49 }
 0xc0a   :  { %v1657_v52 = vpop.permute.xlu1 %1656 }
 0xc0b   :  { %4808 = vpow2.f32 %v1568_v50  ;;  %4532 = vmatpush3.msra.mxu0 %v1657_v52  ;;  %v4213_v52 = vld [vmem:[%s5844_s12] ss:$0 sm:$0xff] }
 0xc0c   :  { %4547 = vmatprep.subr.mxu0 %v249_v39 }
 0xc0e   :  { %v1735_v8 = vpop.permute.xlu1 %1734 }
 0xc0f   :  { %v1756_v11 = vsel %vm400_vm3, %v5258_v12, %v1735_v8  ;;  %v4212_v12 = vld [vmem:[%s5843_s11] ss:$0 sm:$0xff] }
 0xc10   :  { %v255_v8 = vld [vmem:[%s5848_s16 + $0x20] sm:$0xff] }
 0xc12   :  { %v1737_v9 = vpop.permute.xlu1 %1736 }
 0xc13   :  { %v1757_v18 = vsel %vm400_vm3, %v5260_v14, %v1737_v9  ;;  %v254_v9 = vld [vmem:[%s5848_s16 + $0x18] sm:$0xff] }
 0xc14   :  { %v4807_v35 = vpop.eup %4806 }
 0xc15   :  { %v1570_v54 = vsel %vm400_vm3, %v4807_v35, 0.0 }
 0xc16   :  { %1571 = vadd.xlane.f32.xlu0 %v1570_v54  ;;  %v1745_v13 = vpop.permute.xlu1 %1744  ;;  %v4214_v54 = vld [vmem:[%s5845_s13] ss:$0 sm:$0xff] }
 0xc17   :  { %v1760_v19 = vsel %vm1758_vm5, %v1757_v18, %v1745_v13  ;;  %v251_v13 = vld [vmem:[%s5848_s16] sm:$0xff] }
 0xc18   :  { %v4809_v51 = vpop.eup %4808 }
 0xc19   :  { %v1573_v53 = vsel %vm400_vm3, %v4809_v51, 0.0 }
 0xc1a   :  { %1574 = vadd.xlane.f32.xlu0 %v1573_v53 }
 0xc30   :  { %1580 = vrot.lane.b32.xlu0 %v5199_v37, %s5863_s25  ;;  %v242_v37 = vld [vmem:[%s5842_s10 + $0x18] sm:$0xff] }
 0xc34   :  { %1742 = vrot.lane.b32.xlu0 %v1318_v28, %s5865_s3  ;;  %s5898_s3 = smov 16  }
 0xc9f   :  { %v1572_v55 = vpop.xlane.xlu0 %1571 }
 0xca0   :  { %4810 = vrcp.f32 %v1572_v55 }
 0xca3   :  { %v1575_v56 = vpop.xlane.xlu0 %1574 }
 0xca4   :  { %4812 = vrcp.f32 %v1575_v56 }
 0xca7   :  { %v1581_v57 = vpop.permute.xlu0 %1580 }
 0xca8   :  { %4527 = vmatpush3.msra.mxu1 %v1581_v57 }
 0xca9   :  { %4536 = vmatprep.subr.mxu1 %v242_v37 }
 0xcab   :  { %v1743_v10 = vpop.permute.xlu0 %1742 }
 0xcac   :  { %v1759_v15 = vsel %vm1758_vm5, %v1756_v11, %v1743_v10  ;;  %v253_v10 = vld [vmem:[%s5848_s16 + $0x10] sm:$0xff]  ;;  %v252_v11 = vld [vmem:[%s5848_s16 + $0x8] sm:$0xff] }
 0xcad   :  { %v4811_v58 = vpop.eup %4810 }
 0xcae   :  { %v1578_v59 = vmul.f32 %v4811_v58, %v4807_v35 }
 0xcb0   :  { %4529 = vmatmul.mubr.msk.f32.vlgmr.msra.gmra.mxu1 %vm400_vm3, %v1578_v59  ;;  %v266_v59 = vld [vmem:[%s5848_s16 + $0x78] sm:$0xff] }
 0xcb1   :  { %v4813_v61 = vpop.eup %4812  ;;  %4537 = vmatpush3.msra.mxu1 %v242_v37  ;;  %v263_v37 = vld [vmem:[%s5848_s16 + $0x60] sm:$0xff] }
 0xcb2   :  { %v1579_v62 = vmul.f32 %v4813_v61, %v4809_v51  ;;  %4538 = vmatprep.subr.mxu1 %v241_v63  ;;  %v265_v61 = vld [vmem:[%s5848_s16 + $0x70] sm:$0xff] }
 0xcb3   :  { %4539 = vmatpush3.msra.mxu1 %v241_v63  ;;  %v262_v63 = vld [vmem:[%s5848_s16 + $0x58] sm:$0xff] }
 0xcb4   :  { %4534 = vmatmul.mubr.msk.f32.vlgmr.msra.gmra.mxu0 %vm400_vm3, %v1579_v62  ;;  %4540 = vmatprep.subr.mxu1 %v240_v2  ;;  %v264_v62 = vld [vmem:[%s5848_s16 + $0x68] sm:$0xff] }
 0xcb5   :  { %4541 = vmatpush3.msra.mxu1 %v240_v2  ;;  %4548 = vmatpush3.msra.mxu0 %v249_v39  ;;  %v261_v2 = vld [vmem:[%s5848_s16 + $0x50] sm:$0xff] }
 0xcb6   :  { %4542 = vmatprep.subr.mxu1 %v239_v3  ;;  %4549 = vmatprep.subr.mxu0 %v248_v40 }
 0xcb7   :  { %4543 = vmatpush3.msra.mxu1 %v239_v3  ;;  %4550 = vmatpush3.msra.mxu0 %v248_v40  ;;  %v260_v3 = vld [vmem:[%s5848_s16 + $0x48] sm:$0xff] }
 0xcb8   :  { %4551 = vmatprep.subr.mxu0 %v247_v42  ;;  %4558 = vmatprep.subr.mxu1 %v266_v59 }
 0xcb9   :  { %4552 = vmatpush3.msra.mxu0 %v247_v42 }
 0xcba   :  { %4553 = vmatprep.subr.mxu0 %v246_v43 }
 0xcbb   :  { %4554 = vmatpush3.msra.mxu0 %v246_v43 }
 0xd70   :  { %v1652_v4 = vpop.f32.mrf.mxu1 }
 0xd71   :  { %1750 = vrot.lane.b32.xlu0 %v1652_v4, %s5875_s6  ;;  %v259_v4 = vld [vmem:[%s5848_s16 + $0x40] sm:$0xff] }
 0xd72   :  { %v4530_v5 = vpop.f32.mrf.mxu1 }
 0xd73   :  { %v258_v5 = vld [vmem:[%s5848_s16 + $0x38] sm:$0xff] }
 0xd74   :  { %v1728_v6 = vpop.f32.mrf.mxu0 }
 0xd75   :  { %1752 = vrot.lane.b32.xlu1 %v1728_v6, %s5875_s6  ;;  %v257_v6 = vld [vmem:[%s5848_s16 + $0x30] sm:$0xff]  ;;  %s5897_s6 = smov 8  }
 0xd76   :  { %v4535_v7 = vpop.f32.mrf.mxu0 }
 0xd77   :  { %v256_v7 = vld [vmem:[%s5848_s16 + $0x28] sm:$0xff] }
 0xde3   :  { %v1751_v16 = vpop.permute.xlu0 %1750 }
 0xde4   :  { %v1762_v17 = vsel %vm1761_vm4, %v1759_v15, %v1751_v16  ;;  %v4215_v15 = vld [vmem:[%s5847_s15] ss:$0 sm:$0xff] }
 0xde5   :  { %4544 = vmatprep.mubr.msk.f32.mxu1 %vm187_vm1, %v1762_v17 }
 0xde7   :  { %v1753_v20 = vpop.permute.xlu1 %1752 }
 0xde8   :  { %v1763_v21 = vsel %vm1761_vm4, %v1760_v19, %v1753_v20 }
 0xde9   :  { %4545 = vmatmul.mubr.msk.f32.vlgmr.msra.gmra.mxu1 %vm187_vm1, %v1763_v21 }
 0xdea   :  { %4559 = vmatpush3.msra.mxu1 %v266_v59 }
 0xdeb   :  { %4560 = vmatprep.subr.mxu1 %v265_v61 }
 0xdec   :  { %4561 = vmatpush3.msra.mxu1 %v265_v61  ;;  %v4257_v61 = vld [vmem:[%s5889_s1 + $0x1] ss:$0 sm:$0xff] }
 0xded   :  { %4562 = vmatprep.subr.mxu1 %v264_v62 }
 0xdee   :  { %4563 = vmatpush3.msra.mxu1 %v264_v62 }
 0xdef   :  { %4564 = vmatprep.subr.mxu1 %v263_v37 }
 0xdf0   :  { %4565 = vmatpush3.msra.mxu1 %v263_v37 }
 0xdf1   :  { %4566 = vmatprep.subr.mxu1 %v262_v63 }
 0xdf2   :  { %4567 = vmatpush3.msra.mxu1 %v262_v63 }
 0xdf3   :  { %4568 = vmatprep.subr.mxu1 %v261_v2 }
 0xdf4   :  { %4569 = vmatpush3.msra.mxu1 %v261_v2 }
 0xdf5   :  { %4570 = vmatprep.subr.mxu1 %v260_v3 }
 0xdf6   :  { %4571 = vmatpush3.msra.mxu1 %v260_v3  ;;  %v4258_v3 = vld [vmem:[%s5839_s7 + $0x1] ss:$0 sm:$0xff]  ;;  %s5899_s7 = smov 24  }
 0xdf7   :  { %4572 = vmatprep.subr.mxu1 %v259_v4 }
 0xdf8   :  { %4573 = vmatpush3.msra.mxu1 %v259_v4 }
 0xdf9   :  { %4574 = vmatprep.subr.mxu1 %v258_v5 }
 0xdfa   :  { %4575 = vmatpush3.msra.mxu1 %v258_v5 }
 0xdfb   :  { %4576 = vmatprep.subr.mxu1 %v257_v6 }
 0xdfc   :  { %4577 = vmatpush3.msra.mxu1 %v257_v6 }
 0xdfd   :  { %4578 = vmatprep.subr.mxu1 %v256_v7 }
 0xdfe   :  { %4579 = vmatpush3.msra.mxu1 %v256_v7  ;;  %v4259_v7 = vld [vmem:[%s5841_s9 + $0x1] ss:$0 sm:$0xff] }
 0xdff   :  { %4580 = vmatprep.subr.mxu1 %v255_v8 }
 0xe00   :  { %4581 = vmatpush3.msra.mxu1 %v255_v8 }
 0xe01   :  { %4582 = vmatprep.subr.mxu1 %v254_v9 }
 0xe02   :  { %4583 = vmatpush3.msra.mxu1 %v254_v9 }
 0xe03   :  { %4584 = vmatprep.subr.mxu1 %v253_v10 }
 0xe04   :  { %4585 = vmatpush3.msra.mxu1 %v253_v10 }
 0xe05   :  { %4586 = vmatprep.subr.mxu1 %v252_v11 }
 0xe06   :  { %4587 = vmatpush3.msra.mxu1 %v252_v11 }
 0xe07   :  { %4588 = vmatprep.subr.mxu1 %v251_v13 }
 0xe08   :  { %4589 = vmatpush3.msra.mxu1 %v251_v13 }
 0xe09   :  { %4634 = vmatprep.subr.mxu1 %v4901_v1 }
 0xea9   :  { %v4546_v22 = vpop.f32.mrf.mxu1 }
 0xeaa   :  { %v1846_v23 = vadd.f32 %v4546_v22, %v5161_v0 }
 0xeab   :  { %v1836_v24 = vpop.f32.mrf.mxu1 }
 0xeac   :  { %v5384_v25 = vadd.f32 %v4212_v12, %v1846_v23  ;;  %v1845_v26 = vadd.f32 %v1836_v24, %v5157_v60 }
 0xeae   :  { %v5387_v14 = vadd.f32 %v4212_v12, %v1845_v26  ;;  %v1858_v27 = vsel %vm187_vm1, %v5384_v25, 0.0 }
 0xeaf   :  { %1859 = vadd.xlane.f32.xlu1 %v1858_v27 }
 0xeb0   :  { %v1855_v28 = vsel %vm187_vm1, %v5387_v14, 0.0 }
 0xeb1   :  { %1856 = vadd.xlane.f32.xlu0 %v1855_v28 }
 0xf38   :  { %v1860_v29 = vpop.xlane.xlu1 %1859 }
 0xf39   :  { %v1862_v30 = vmul.f32 0.03125, %v1860_v29 }
 0xf3a   :  { %v1857_v31 = vpop.xlane.xlu0 %1856 }
 0xf3b   :  { %v1861_v32 = vmul.f32 0.03125, %v1857_v31  ;;  %v1864_v0 = vsub.f32 %v5384_v25, %v1862_v30 }
 0xf3d   :  { %v1863_v33 = vsub.f32 %v5387_v14, %v1861_v32  ;;  %v1866_v36 = vmul.f32 %v1864_v0, %v1864_v0  ;;  %v4220_v32 = vld [vmem:[%s5849_s17] ss:$0 sm:$0xff] }
 0xf3f   :  { %v1865_v34 = vmul.f32 %v1863_v33, %v1863_v33  ;;  %v1870_v38 = vsel %vm187_vm1, %v1866_v36, 0.0 }
 0xf41   :  { %v1867_v60 = vsel %vm187_vm1, %v1865_v34, 0.0 }
 0xf42   :  { %1868 = vadd.xlane.f32.xlu0 %v1867_v60 }
 0xf46   :  { %1871 = vadd.xlane.f32.xlu0 %v1870_v38 }
 0xfcb   :  { %v1869_v44 = vpop.xlane.xlu0 %1868 }
 0xfcc   :  { %v1873_v45 = vmul.f32 0.03125, %v1869_v44 }
 0xfce   :  { %v1875_v46 = vadd.f32 1e-05, %v1873_v45 }
 0xfcf   :  { %v1872_v47 = vpop.xlane.xlu0 %1871 }
 0xfd0   :  { %4814 = vrsqrt.f32 %v1875_v46  ;;  %v1874_v48 = vmul.f32 0.03125, %v1872_v47 }
 0xfd2   :  { %v1876_v49 = vadd.f32 1e-05, %v1874_v48 }
 0xfd4   :  { %4816 = vrsqrt.f32 %v1876_v49 }
 0xfdd   :  { %v4815_v50 = vpop.eup %4814 }
 0xfde   :  { %v1879_v35 = vmul.f32 %v4815_v50, %v1863_v33  ;;  %v4226_v50 = vld [vmem:[%s5840_s8 + $0x38] sm:$0xff] }
 0xfdf   :  { %4593 = vmatprep.subr.mxu0 %v4226_v50 }
 0xfe0   :  { %v1887_v51 = vmul.f32 %v4213_v52, %v1879_v35  ;;  %v4224_v35 = vld [vmem:[%s5840_s8 + $0x28] sm:$0xff] }
 0xfe1   :  { %v4817_v53 = vpop.eup %4816 }
 0xfe2   :  { %v1880_v55 = vmul.f32 %v4817_v53, %v1864_v0  ;;  %v1895_v56 = vadd.f32 %v4214_v54, %v1887_v51 }
 0xfe4   :  { %v1888_v57 = vmul.f32 %v4213_v52, %v1880_v55  ;;  %4555 = vmatprep.mubr.msk.f32.mxu0 %vm187_vm1, %v1895_v56  ;;  %v4225_v52 = vld [vmem:[%s5840_s8 + $0x30] sm:$0xff] }
 0xfe6   :  { %v1896_v58 = vadd.f32 %v4214_v54, %v1888_v57  ;;  %v4223_v54 = vld [vmem:[%s5840_s8 + $0x20] sm:$0xff] }
 0xfe8   :  { %4556 = vmatmul.mubr.msk.f32.vlgmr.msra.gmra.mxu0 %vm187_vm1, %v1896_v58 }
 0xfe9   :  { %4594 = vmatpush3.msra.mxu0 %v4226_v50 }
 0xfea   :  { %4595 = vmatprep.subr.mxu0 %v4225_v52 }
 0xfeb   :  { %4596 = vmatpush3.msra.mxu0 %v4225_v52 }
 0xfec   :  { %4597 = vmatprep.subr.mxu0 %v4224_v35 }
 0xfed   :  { %4598 = vmatpush3.msra.mxu0 %v4224_v35 }
 0xfee   :  { %4599 = vmatprep.subr.mxu0 %v4223_v54 }
 0xfef   :  { %4600 = vmatpush3.msra.mxu0 %v4223_v54 }
 0xff0   :  { %4604 = vmatprep.subr.mxu0 %v4901_v1 }
0x10a8   :  { %v4557_v16 = vpop.f32.mrf.mxu0 }
0x10a9   :  { %v1981_v17 = vadd.f32 %v4557_v16, %v4215_v15 }
0x10aa   :  { %v1975_v18 = vpop.f32.mrf.mxu0 }
0x10ab   :  { %v4219_v19 = vmul.f32 -1.702, %v1981_v17  ;;  %v1976_v20 = vadd.f32 %v4215_v15, %v1975_v18 }
0x10ad   :  { %v1990_v21 = vmul.f32 1.442695, %v4219_v19  ;;  %v4218_v12 = vmul.f32 -1.702, %v1976_v20 }
0x10af   :  { %4818 = vpow2.f32 %v1990_v21  ;;  %v1988_v22 = vmul.f32 1.442695, %v4218_v12 }
0x10b1   :  { %4820 = vpow2.f32 %v1988_v22 }
0x10bc   :  { %v4819_v23 = vpop.eup %4818 }
0x10bd   :  { %v1993_v24 = vadd.f32 1.0, %v4819_v23 }
0x10be   :  { %v4821_v26 = vpop.eup %4820 }
0x10bf   :  { %v1992_v27 = vadd.f32 1.0, %v4821_v26  ;;  %4822 = vrcp.f32 %v1993_v24 }
0x10c1   :  { %4824 = vrcp.f32 %v1992_v27 }
0x10cc   :  { %v4823_v28 = vpop.eup %4822 }
0x10cd   :  { %v1999_v31 = vmul.f32 %v4823_v28, %v1981_v17 }
0x10ce   :  { %v4825_v29 = vpop.eup %4824 }
0x10cf   :  { %v1998_v30 = vmul.f32 %v4825_v29, %v1976_v20 }
0x10d1   :  { %4590 = vmatprep.mubr.f32.mxu1 %v1998_v30 }
0x10d2   :  { %4591 = vmatmul.mubr.f32.vlgmr.msra.gmra.mxu1 %v1999_v31 }
0x10d3   :  { %4636 = vmatprep.mubr.msk.f32.mxu1 %vm4902_vm2, %v4901_v1 }
0x1192   :  { %v4592_v0 = vpop.f32.mrf.mxu1 }
0x1193   :  { %v2078_v33 = vadd.f32 %v4592_v0, %v4220_v32 }
0x1194   :  { %v2072_v34 = vpop.f32.mrf.mxu1 }
0x1195   :  { %v5475_v60 = vadd.f32 %v2078_v33, %v5384_v25  ;;  %v2073_v36 = vadd.f32 %v4220_v32, %v2072_v34 }
0x1197   :  { %v5478_v38 = vadd.f32 %v2073_v36, %v5387_v14  ;;  %v2134_v39 = vsel %vm187_vm1, %v5475_v60, 0.0 }
0x1198   :  { %2135 = vadd.xlane.f32.xlu1 %v2134_v39 }
0x1199   :  { %v2131_v40 = vsel %vm187_vm1, %v5478_v38, 0.0 }
0x119a   :  { %2132 = vadd.xlane.f32.xlu0 %v2131_v40 }
0x1221   :  { %v2136_v42 = vpop.xlane.xlu1 %2135 }
0x1222   :  { %v2138_v43 = vmul.f32 0.03125, %v2136_v42 }
0x1223   :  { %v2133_v44 = vpop.xlane.xlu0 %2132 }
0x1224   :  { %v2140_v45 = vsub.f32 %v5475_v60, %v2138_v43  ;;  %v2137_v46 = vmul.f32 0.03125, %v2133_v44 }
0x1226   :  { %v2139_v25 = vsub.f32 %v5478_v38, %v2137_v46  ;;  %v2142_v47 = vmul.f32 %v2140_v45, %v2140_v45 }
0x1228   :  { %v2146_v14 = vsel %vm187_vm1, %v2142_v47, 0.0  ;;  %v2141_v48 = vmul.f32 %v2139_v25, %v2139_v25 }
0x1229   :  { %2147 = vadd.xlane.f32.xlu1 %v2146_v14 }
0x122a   :  { %v2143_v49 = vsel %vm187_vm1, %v2141_v48, 0.0 }
0x122b   :  { %2144 = vadd.xlane.f32.xlu0 %v2143_v49 }
0x12b2   :  { %v2148_v51 = vpop.xlane.xlu1 %2147 }
0x12b3   :  { %v2150_v53 = vmul.f32 0.03125, %v2148_v51 }
0x12b4   :  { %v2145_v55 = vpop.xlane.xlu0 %2144 }
0x12b5   :  { %v2152_v56 = vadd.f32 1e-05, %v2150_v53  ;;  %v2149_v57 = vmul.f32 0.03125, %v2145_v55  ;;  %v5577_v53 = vld [vmem:[%s5890_s28] sm:$0xff]  ;;  %s5892_s28 = smov 112  }
0x12b7   :  { %4826 = vrsqrt.f32 %v2152_v56  ;;  %v2151_v58 = vadd.f32 1e-05, %v2149_v57 }
0x12b9   :  { %4828 = vrsqrt.f32 %v2151_v58 }
0x12c4   :  { %v4827_v59 = vpop.eup %4826 }
0x12c5   :  { %v2156_v62 = vmul.f32 %v4827_v59, %v2140_v45 }
0x12c6   :  { %v4829_v37 = vpop.eup %4828 }
0x12c7   :  { %v2155_v63 = vmul.f32 %v4829_v37, %v2139_v25  ;;  %v2164_v2 = vmul.f32 %v4257_v61, %v2156_v62 }
0x12c9   :  { %v2163_v4 = vmul.f32 %v4257_v61, %v2155_v63  ;;  %v2172_v6 = vadd.f32 %v4258_v3, %v2164_v2 }
0x12cb   :  { %v2171_v5 = vadd.f32 %v4258_v3, %v2163_v4 }
0x12cd   :  { %4601 = vmatprep.mubr.msk.f32.mxu0 %vm187_vm1, %v2171_v5 }
0x12ce   :  { %4602 = vmatmul.mubr.msk.f32.vlgmr.msra.gmra.mxu0 %vm187_vm1, %v2172_v6 }
0x12cf   :  { %4606 = vmatprep.mubr.msk.f32.mxu0 %vm4902_vm2, %v4901_v1 }
0x138e   :  { %v4603_v8 = vpop.f32.mrf.mxu0 }
0x138f   :  { %v5514_v9 = vadd.f32 %v4603_v8, %v4259_v7 }
0x1390   :  { %v2251_v10 = vpop.f32.mrf.mxu0 }
0x1391   :  { %v5516_v11 = vadd.f32 %v4259_v7, %v2251_v10  ;;  %2338 = vrot.lane.b32.xlu1 %v5514_v9, %s4903_s26 }
0x1393   :  { %2261 = vrot.lane.b32.xlu0 %v5516_v11, %s4903_s26  ;;  %s5891_s26 = smov 80  }
0x1403   :  { %v2339_v15 = vpop.permute.xlu1 %2338 }
0x1405   :  { %v2262_v13 = vpop.permute.xlu0 %2261 }
0x1406   :  { %4605 = vmatpush3.xpose.msk.msra.mxu0 %vm400_vm3, %v2262_v13 }
0x1407   :  { %4609 = vmatprep.subr.mxu0 %v4901_v1 }
0x1409   :  { %4607 = vmatmul.mubr.msk.f32.vlgmr.msra.gmra.mxu0 %vm400_vm3, %v5516_v11 }
0x140a   :  { %4610 = vmatpush3.xpose.msk.msra.mxu0 %vm400_vm3, %v2339_v15  ;;  %4611 = vmatprep.mubr.msk.f32.mxu0 %vm4902_vm2, %v4901_v1 }
0x140b   :  { %4614 = vmatprep.subr.mxu0 %v4901_v1 }
0x140d   :  { %4612 = vmatmul.mubr.msk.f32.vlgmr.msra.gmra.mxu0 %vm400_vm3, %v5514_v9 }
0x140e   :  { %4616 = vmatprep.mubr.msk.f32.mxu0 %vm4902_vm2, %v4901_v1 }
0x14c9   :  { %v2333_v16 = vpop.f32.mrf.mxu0 }
0x14ca   :  { %v2414_v17 = vmul.f32 0.35355338, %v2333_v16 }
0x14cb   :  { %v4608_v18 = vpop.f32.mrf.mxu0 }
0x14cc   :  { %v2416_v19 = vadd.f32 %v2414_v17, %v5220_v41 }
0x14cd   :  { %v2410_v20 = vpop.f32.mrf.mxu0 }
0x14ce   :  { %v2415_v21 = vmul.f32 0.35355338, %v2410_v20  ;;  %v2418_v12 = vsel %vm400_vm3, %v2416_v19, -inf }
0x14cf   :  { %2419 = vmax.xlane.f32.xlu1 %v2418_v12  ;;  %v4613_v22 = vpop.f32.mrf.mxu0 }
0x14d0   :  { %v2417_v23 = vadd.f32 %v2415_v21, %v5220_v41 }
0x14d2   :  { %v2421_v24 = vsel %vm400_vm3, %v2417_v23, -inf }
0x14d3   :  { %2422 = vmax.xlane.f32.xlu0 %v2421_v24 }
0x14e0   :  { %2516 = vrot.lane.b32.xlu1 %v5514_v9, %s4904_s30 }
0x14e4   :  { %2594 = vrot.lane.b32.xlu1 %v5516_v11, %s4905_s4 }
0x14e8   :  { %2592 = vrot.lane.b32.xlu1 %v5516_v11, %s4906_s29 }
0x1558   :  { %v2420_v26 = vpop.xlane.xlu1 %2419 }
0x1559   :  { %v2424_v27 = vsub.f32 %v2416_v19, %v2420_v26 }
0x155b   :  { %v2426_v28 = vmul.f32 1.442695, %v2424_v27 }
0x155c   :  { %v2423_v29 = vpop.xlane.xlu0 %2422  ;;  %v2517_v34 = vpop.permute.xlu1 %2516 }
0x155d   :  { %4830 = vpow2.f32 %v2426_v28  ;;  %v2425_v30 = vsub.f32 %v2417_v23, %v2423_v29 }
0x155f   :  { %v2428_v31 = vmul.f32 1.442695, %v2425_v30 }
0x1560   :  { %v2595_v36 = vpop.permute.xlu1 %2594 }
0x1561   :  { %4832 = vpow2.f32 %v2428_v31 }
0x1564   :  { %v2593_v39 = vpop.permute.xlu1 %2592 }
0x156a   :  { %v4831_v41 = vpop.eup %4830 }
0x156b   :  { %v2430_v32 = vsel %vm400_vm3, %v4831_v41, 0.0 }
0x156c   :  { %2431 = vadd.xlane.f32.xlu0 %v2430_v32 }
0x156e   :  { %v4833_v0 = vpop.eup %4832 }
0x156f   :  { %v2433_v33 = vsel %vm400_vm3, %v4833_v0, 0.0 }
0x1570   :  { %2434 = vadd.xlane.f32.xlu1 %v2433_v33 }
0x1581   :  { %2670 = vrot.lane.b32.xlu1 %v5514_v9, %s4906_s29  ;;  %s5895_s29 = smov 104  }
0x1582   :  { %2440 = vrot.lane.b32.xlu0 %v5516_v11, %s4904_s30  ;;  %s5893_s30 = smov 48  }
0x1586   :  { %2672 = vrot.lane.b32.xlu0 %v5514_v9, %s4905_s4  ;;  %s5894_s4 = smov 72  }
0x15f5   :  { %v2432_v40 = vpop.xlane.xlu0 %2431 }
0x15f6   :  { %4834 = vrcp.f32 %v2432_v40 }
0x15f9   :  { %v2435_v42 = vpop.xlane.xlu1 %2434  ;;  %v2441_v43 = vpop.permute.xlu0 %2440 }
0x15fa   :  { %4836 = vrcp.f32 %v2435_v42  ;;  %4615 = vmatpush3.msra.mxu0 %v2441_v43 }
0x15fb   :  { %4619 = vmatprep.subr.mxu0 %v4901_v1 }
0x15fd   :  { %v2673_v47 = vpop.permute.xlu0 %2672  ;;  %v2671_v14 = vpop.permute.xlu1 %2670 }
0x1603   :  { %v4835_v44 = vpop.eup %4834 }
0x1604   :  { %v2438_v45 = vmul.f32 %v4835_v44, %v4831_v41 }
0x1606   :  { %4617 = vmatmul.mubr.msk.f32.vlgmr.msra.gmra.mxu0 %vm400_vm3, %v2438_v45 }
0x1607   :  { %v4837_v46 = vpop.eup %4836  ;;  %4620 = vmatpush3.msra.mxu0 %v2517_v34  ;;  %4621 = vmatprep.mubr.msk.f32.mxu0 %vm4902_vm2, %v4901_v1 }
0x1608   :  { %4624 = vmatprep.subr.mxu0 %v4901_v1  ;;  %v2439_v25 = vmul.f32 %v4837_v46, %v4833_v0 }
0x160a   :  { %4622 = vmatmul.mubr.msk.f32.vlgmr.msra.gmra.mxu0 %vm400_vm3, %v2439_v25 }
0x160b   :  { %4625 = vmatpush3.xpose.msk.msra.mxu0 %vm400_vm3, %v2595_v36  ;;  %4626 = vmatprep.mubr.msk.f32.mxu0 %vm4902_vm2, %v4901_v1 }
0x160c   :  { %4629 = vmatprep.subr.mxu0 %v4901_v1 }
0x160e   :  { %4627 = vmatmul.mubr.msk.f32.vlgmr.msra.gmra.mxu0 %vm400_vm3, %v2593_v39 }
0x160f   :  { %4630 = vmatpush3.xpose.msk.msra.mxu0 %vm400_vm3, %v2673_v47  ;;  %4631 = vmatprep.mubr.msk.f32.mxu0 %vm4902_vm2, %v4901_v1 }
0x1610   :  { %4639 = vmatprep.subr.mxu0 %v4901_v1 }
0x1612   :  { %4632 = vmatmul.mubr.msk.f32.vlgmr.msra.gmra.mxu0 %vm400_vm3, %v2671_v14 }
0x1613   :  { %4641 = vmatprep.mubr.msk.f32.mxu0 %vm4902_vm2, %v4901_v1 }
0x16c6   :  { %v5570_v48 = vpop.f32.mrf.mxu0 }
0x16c8   :  { %v4618_v49 = vpop.f32.mrf.mxu0 }
0x16ca   :  { %v5572_v50 = vpop.f32.mrf.mxu0 }
0x16cc   :  { %v4623_v52 = vpop.f32.mrf.mxu0 }
0x16ce   :  { %v2666_v35 = vpop.f32.mrf.mxu0 }
0x16cf   :  { %v2748_v54 = vmul.f32 0.35355338, %v2666_v35 }
0x16d0   :  { %v4628_v51 = vpop.f32.mrf.mxu0 }
0x16d1   :  { %v2750_v55 = vadd.f32 %v5577_v53, %v2748_v54 }
0x16d2   :  { %v2744_v56 = vpop.f32.mrf.mxu0 }
0x16d3   :  { %v2749_v57 = vmul.f32 0.35355338, %v2744_v56  ;;  %v2752_v58 = vsel %vm400_vm3, %v2750_v55, -inf }
0x16d4   :  { %2753 = vmax.xlane.f32.xlu0 %v2752_v58  ;;  %v4633_v59 = vpop.f32.mrf.mxu0 }
0x16d5   :  { %v2751_v61 = vadd.f32 %v5577_v53, %v2749_v57 }
0x16d7   :  { %v2755_v62 = vsel %vm400_vm3, %v2751_v61, -inf }
0x16d8   :  { %2756 = vmax.xlane.f32.xlu1 %v2755_v62 }
0x16e9   :  { %2850 = vrot.lane.b32.xlu1 %v5514_v9, %s4907_s0 }
0x16ea   :  { %2774 = vrot.lane.b32.xlu0 %v5516_v11, %s4907_s0  ;;  %s5896_s0 = smov 40  }
0x16ed   :  { %2928 = vrot.lane.b32.xlu1 %v5516_v11, %s5891_s26 }
0x16f1   :  { %3006 = vrot.lane.b32.xlu1 %v5514_v9, %s5891_s26 }
0x16f5   :  { %3004 = vrot.lane.b32.xlu1 %v5514_v9, %s5892_s28 }
0x175d   :  { %v2754_v37 = vpop.xlane.xlu0 %2753 }
0x175e   :  { %v2758_v63 = vsub.f32 %v2750_v55, %v2754_v37 }
0x1760   :  { %v2760_v2 = vmul.f32 1.442695, %v2758_v63 }
0x1761   :  { %v2775_v3 = vpop.permute.xlu0 %2774  ;;  %v2757_v4 = vpop.xlane.xlu1 %2756 }
0x1762   :  { %4838 = vpow2.f32 %v2760_v2  ;;  %v2759_v5 = vsub.f32 %v2751_v61, %v2757_v4  ;;  %4635 = vmatpush3.msra.mxu1 %v2775_v3 }
0x1763   :  { %4644 = vmatprep.subr.mxu1 %v4901_v1 }
0x1764   :  { %v2762_v6 = vmul.f32 1.442695, %v2759_v5 }
0x1765   :  { %v2851_v7 = vpop.permute.xlu1 %2850 }
0x1766   :  { %4840 = vpow2.f32 %v2762_v6  ;;  %4640 = vmatpush3.msra.mxu0 %v2851_v7 }
0x1767   :  { %4649 = vmatprep.subr.mxu0 %v4901_v1 }
0x1769   :  { %v2929_v18 = vpop.permute.xlu1 %2928 }
0x176d   :  { %v3007_v12 = vpop.permute.xlu1 %3006 }
0x176f   :  { %v4839_v8 = vpop.eup %4838 }
0x1770   :  { %v2764_v10 = vsel %vm400_vm3, %v4839_v8, 0.0 }
0x1771   :  { %2765 = vadd.xlane.f32.xlu0 %v2764_v10  ;;  %v3005_v24 = vpop.permute.xlu1 %3004 }
0x1773   :  { %v4841_v13 = vpop.eup %4840 }
0x1774   :  { %v2767_v15 = vsel %vm400_vm3, %v4841_v13, 0.0 }
0x1775   :  { %2768 = vadd.xlane.f32.xlu0 %v2767_v15 }
0x178b   :  { %2926 = vrot.lane.b32.xlu0 %v5516_v11, %s5892_s28 }
0x17fa   :  { %v2766_v16 = vpop.xlane.xlu0 %2765 }
0x17fb   :  { %4842 = vrcp.f32 %v2766_v16 }
0x17fe   :  { %v2769_v17 = vpop.xlane.xlu0 %2768 }
0x17ff   :  { %4844 = vrcp.f32 %v2769_v17 }
0x1802   :  { %v2927_v23 = vpop.permute.xlu0 %2926 }
0x1808   :  { %v4843_v19 = vpop.eup %4842 }
0x1809   :  { %v2772_v20 = vmul.f32 %v4843_v19, %v4839_v8 }
0x180b   :  { %4637 = vmatmul.mubr.msk.f32.vlgmr.msra.gmra.mxu1 %vm400_vm3, %v2772_v20 }
0x180c   :  { %v4845_v21 = vpop.eup %4844  ;;  %4645 = vmatpush3.xpose.msk.msra.mxu1 %vm400_vm3, %v2929_v18  ;;  %4646 = vmatprep.mubr.msk.f32.mxu1 %vm4902_vm2, %v4901_v1 }
0x180d   :  { %v2773_v22 = vmul.f32 %v4845_v21, %v4841_v13  ;;  %4654 = vmatprep.subr.mxu1 %v4901_v1 }
0x180f   :  { %4642 = vmatmul.mubr.msk.f32.vlgmr.msra.gmra.mxu0 %vm400_vm3, %v2773_v22  ;;  %4647 = vmatmul.mubr.msk.f32.vlgmr.msra.gmra.mxu1 %vm400_vm3, %v2927_v23 }
0x1810   :  { %4650 = vmatpush3.xpose.msk.msra.mxu0 %vm400_vm3, %v3007_v12  ;;  %4651 = vmatprep.mubr.msk.f32.mxu0 %vm4902_vm2, %v4901_v1 }
0x1811   :  { %4659 = vmatprep.subr.mxu0 %v4901_v1  ;;  %4656 = vmatprep.mubr.msk.f32.mxu1 %vm4902_vm2, %v4901_v1 }
0x1813   :  { %4652 = vmatmul.mubr.msk.f32.vlgmr.msra.gmra.mxu0 %vm400_vm3, %v3005_v24 }
0x1814   :  { %4661 = vmatprep.mubr.msk.f32.mxu0 %vm4902_vm2, %v4901_v1 }
0x18cb   :  { %v5615_v26 = vpop.f32.mrf.mxu1 }
0x18cd   :  { %v4638_v27 = vpop.f32.mrf.mxu1 }
0x18cf   :  { %v5617_v28 = vpop.f32.mrf.mxu0  ;;  %v3000_v29 = vpop.f32.mrf.mxu1 }
0x18d0   :  { %v3082_v30 = vmul.f32 0.35355338, %v3000_v29 }
0x18d1   :  { %v4643_v31 = vpop.f32.mrf.mxu0  ;;  %v4648_v41 = vpop.f32.mrf.mxu1 }
0x18d2   :  { %v3084_v32 = vadd.f32 %v5577_v53, %v3082_v30 }
0x18d3   :  { %v3078_v0 = vpop.f32.mrf.mxu0 }
0x18d4   :  { %v3083_v33 = vmul.f32 0.35355338, %v3078_v0  ;;  %v3086_v34 = vsel %vm400_vm3, %v3084_v32, -inf }
0x18d5   :  { %3087 = vmax.xlane.f32.xlu0 %v3086_v34  ;;  %v4653_v36 = vpop.f32.mrf.mxu0  ;;  %v4230_v34 = vld [vmem:[%s5842_s10 + $0x30] sm:$0xff] }
0x18d6   :  { %v3085_v39 = vadd.f32 %v5577_v53, %v3083_v33  ;;  %v4229_v36 = vld [vmem:[%s5842_s10 + $0x28] sm:$0xff] }
0x18d8   :  { %v3089_v40 = vsel %vm400_vm3, %v3085_v39, -inf }
0x18d9   :  { %3090 = vmax.xlane.f32.xlu1 %v3089_v40 }
0x18ea   :  { %3184 = vrot.lane.b32.xlu1 %v5514_v9, %s5893_s30 }
0x18eb   :  { %3108 = vrot.lane.b32.xlu0 %v5516_v11, %s5893_s30 }
0x18ee   :  { %3262 = vrot.lane.b32.xlu1 %v5516_v11, %s5894_s4 }
0x18f2   :  { %3340 = vrot.lane.b32.xlu1 %v5514_v9, %s5894_s4 }
0x18f6   :  { %3338 = vrot.lane.b32.xlu1 %v5514_v9, %s5895_s29 }
0x195e   :  { %v3088_v42 = vpop.xlane.xlu0 %3087 }
0x195f   :  { %v3092_v43 = vsub.f32 %v3084_v32, %v3088_v42 }
0x1961   :  { %v3094_v44 = vmul.f32 1.442695, %v3092_v43 }
0x1962   :  { %v3109_v45 = vpop.permute.xlu0 %3108  ;;  %v3091_v46 = vpop.xlane.xlu1 %3090 }
0x1963   :  { %4846 = vpow2.f32 %v3094_v44  ;;  %v3093_v25 = vsub.f32 %v3085_v39, %v3091_v46  ;;  %4655 = vmatpush3.msra.mxu1 %v3109_v45  ;;  %v4228_v39 = vld [vmem:[%s5842_s10 + $0x20] sm:$0xff] }
0x1964   :  { %4664 = vmatprep.subr.mxu1 %v4901_v1 }
0x1965   :  { %v3096_v47 = vmul.f32 1.442695, %v3093_v25 }
0x1966   :  { %v3185_v14 = vpop.permute.xlu1 %3184 }
0x1967   :  { %4848 = vpow2.f32 %v3096_v47  ;;  %4660 = vmatpush3.msra.mxu0 %v3185_v14 }
0x1968   :  { %4669 = vmatprep.subr.mxu0 %v4901_v1 }
0x196a   :  { %v3263_v56 = vpop.permute.xlu1 %3262 }
0x196e   :  { %v3341_v61 = vpop.permute.xlu1 %3340 }
0x1970   :  { %v4847_v49 = vpop.eup %4846 }
0x1971   :  { %v3098_v52 = vsel %vm400_vm3, %v4847_v49, 0.0 }
0x1972   :  { %3099 = vadd.xlane.f32.xlu0 %v3098_v52  ;;  %v3339_v63 = vpop.permute.xlu1 %3338 }
0x1974   :  { %v4849_v35 = vpop.eup %4848 }
0x1975   :  { %v3101_v54 = vsel %vm400_vm3, %v4849_v35, 0.0 }
0x1976   :  { %3102 = vadd.xlane.f32.xlu0 %v3101_v54 }
0x198c   :  { %3260 = vrot.lane.b32.xlu0 %v5516_v11, %s5895_s29 }
0x19fb   :  { %v3100_v51 = vpop.xlane.xlu0 %3099 }
0x19fc   :  { %4850 = vrcp.f32 %v3100_v51 }
0x19ff   :  { %v3103_v55 = vpop.xlane.xlu0 %3102 }
0x1a00   :  { %4852 = vrcp.f32 %v3103_v55 }
0x1a03   :  { %v3261_v37 = vpop.permute.xlu0 %3260 }
0x1a09   :  { %v4851_v57 = vpop.eup %4850 }
0x1a0a   :  { %v3106_v58 = vmul.f32 %v4851_v57, %v4847_v49 }
0x1a0c   :  { %4657 = vmatmul.mubr.msk.f32.vlgmr.msra.gmra.mxu1 %vm400_vm3, %v3106_v58 }
0x1a0d   :  { %v4853_v59 = vpop.eup %4852  ;;  %4665 = vmatpush3.xpose.msk.msra.mxu1 %vm400_vm3, %v3263_v56  ;;  %4666 = vmatprep.mubr.msk.f32.mxu1 %vm4902_vm2, %v4901_v1 }
0x1a0e   :  { %v3107_v62 = vmul.f32 %v4853_v59, %v4849_v35  ;;  %4674 = vmatprep.subr.mxu1 %v4901_v1 }
0x1a10   :  { %4662 = vmatmul.mubr.msk.f32.vlgmr.msra.gmra.mxu0 %vm400_vm3, %v3107_v62  ;;  %4667 = vmatmul.mubr.msk.f32.vlgmr.msra.gmra.mxu1 %vm400_vm3, %v3261_v37 }
0x1a11   :  { %4670 = vmatpush3.xpose.msk.msra.mxu0 %vm400_vm3, %v3341_v61  ;;  %4671 = vmatprep.mubr.msk.f32.mxu0 %vm4902_vm2, %v4901_v1 }
0x1a12   :  { %4679 = vmatprep.subr.mxu0 %v4901_v1  ;;  %4676 = vmatprep.mubr.msk.f32.mxu1 %vm4902_vm2, %v4901_v1 }
0x1a14   :  { %4672 = vmatmul.mubr.msk.f32.vlgmr.msra.gmra.mxu0 %vm400_vm3, %v3339_v63 }
0x1a15   :  { %4681 = vmatprep.mubr.msk.f32.mxu0 %vm4902_vm2, %v4901_v1 }
0x1acc   :  { %v3180_v2 = vpop.f32.mrf.mxu1 }
0x1ace   :  { %v4658_v3 = vpop.f32.mrf.mxu1 }
0x1ad0   :  { %v3256_v4 = vpop.f32.mrf.mxu0  ;;  %v3334_v5 = vpop.f32.mrf.mxu1 }
0x1ad1   :  { %v3416_v6 = vmul.f32 0.35355338, %v3334_v5 }
0x1ad2   :  { %v4663_v7 = vpop.f32.mrf.mxu0  ;;  %v4668_v8 = vpop.f32.mrf.mxu1 }
0x1ad3   :  { %v3418_v10 = vadd.f32 %v5577_v53, %v3416_v6 }
0x1ad4   :  { %v3412_v13 = vpop.f32.mrf.mxu0 }
0x1ad5   :  { %v3417_v15 = vmul.f32 0.35355338, %v3412_v13  ;;  %v3420_v16 = vsel %vm400_vm3, %v3418_v10, -inf  ;;  %v4238_v13 = vld [vmem:[%s5846_s14 + $0x38] sm:$0xff] }
0x1ad6   :  { %3421 = vmax.xlane.f32.xlu0 %v3420_v16  ;;  %v4673_v17 = vpop.f32.mrf.mxu0  ;;  %v4236_v16 = vld [vmem:[%s5846_s14 + $0x28] sm:$0xff] }
0x1ad7   :  { %v3419_v18 = vadd.f32 %v5577_v53, %v3417_v15  ;;  %v4237_v15 = vld [vmem:[%s5846_s14 + $0x30] sm:$0xff]  ;;  %v4235_v17 = vld [vmem:[%s5846_s14 + $0x20] sm:$0xff]  ;;  %s4169_s14 = sshll.u32 %s4917_s2, 4  ;;  %s4170_s14 = int_to_ptr.vmem [resolvable:$true] %s4169_s14 }
0x1ad8   :  { %s4879_s5 = scalar_lea.vmem %s4170_s14, 16  ;;  %p4884_p1 = scmp.lt.s32.totalorder %s4170_s14, %s4170_s14 }
0x1ad9   :  { %v3423_v19 = vsel %vm400_vm3, %v3419_v18, -inf  ;;  %p4880_p0 = scmp.ne.s32.totalorder %s4170_s14, %s4879_s5 }
0x1ada   :  { %3424 = vmax.xlane.f32.xlu1 %v3423_v19 }
0x1aeb   :  { %3518 = vrot.lane.b32.xlu1 %v5514_v9, %s5896_s0 }
0x1aef   :  { %3596 = vrot.lane.b32.xlu1 %v5615_v26, %s5897_s6 }
0x1af3   :  { %3598 = vrot.lane.b32.xlu1 %v5617_v28, %s5897_s6 }
0x1af7   :  { %3606 = vrot.lane.b32.xlu1 %v3256_v4, %s5898_s3 }
0x1b5f   :  { %v3422_v20 = vpop.xlane.xlu0 %3421 }
0x1b60   :  { %v3426_v21 = vsub.f32 %v3418_v10, %v3422_v20 }
0x1b62   :  { %v3428_v12 = vmul.f32 1.442695, %v3426_v21 }
0x1b63   :  { %v3425_v22 = vpop.xlane.xlu1 %3424 }
0x1b64   :  { %4854 = vpow2.f32 %v3428_v12  ;;  %v3427_v53 = vsub.f32 %v3419_v18, %v3425_v22 }
0x1b66   :  { %v3430_v23 = vmul.f32 1.442695, %v3427_v53 }
0x1b67   :  { %v3519_v24 = vpop.permute.xlu1 %3518 }
0x1b68   :  { %4856 = vpow2.f32 %v3430_v23  ;;  %4680 = vmatpush3.msra.mxu0 %v3519_v24  ;;  %v4289_v23 = vld [vmem:[%s5844_s12 + $0x1] ss:$0 sm:$0xff]  ;;  %s4883_s12 = scalar_lea.vmem %s4170_s14, 32 }
0x1b69   :  { %4695 = vmatprep.subr.mxu0 %v4238_v13  ;;  %p4885_p2 = scmp.lt.s32.totalorder %s4883_s12, %s4879_s5 }
0x1b6b   :  { %v3597_v45 = vpop.permute.xlu1 %3596  ;;  %p4886_p3 = por %p4885_p2, %p4884_p1 }
0x1b6c   :  { %v3618_v47 = vsel %vm400_vm3, %v5570_v48, %v3597_v45  ;;  %v4288_v48 = vld [vmem:[%s5843_s11 + $0x1] ss:$0 sm:$0xff]  ;;  %v4243_v45 = vld [vmem:[%s5848_s16 + $0x98] sm:$0xff] }
0x1b6d   :  { %p4887_p4 = pnand %p4886_p3, %p4880_p0 }
0x1b6f   :  { %v3599_v46 = vpop.permute.xlu1 %3598 }
0x1b70   :  { %v3619_v54 = vsel %vm400_vm3, %v5572_v50, %v3599_v46  ;;  %v4242_v46 = vld [vmem:[%s5848_s16 + $0x90] sm:$0xff] }
0x1b71   :  { %v4855_v27 = vpop.eup %4854 }
0x1b72   :  { %v3432_v9 = vsel %vm400_vm3, %v4855_v27, 0.0 }
0x1b73   :  { %3433 = vadd.xlane.f32.xlu0 %v3432_v9  ;;  %v3607_v14 = vpop.permute.xlu1 %3606 }
0x1b74   :  { %v3621_v51 = vsel %vm1758_vm5, %v3619_v54, %v3607_v14  ;;  %v4291_v14 = vld [vmem:[%s5847_s15 + $0x1] ss:$0 sm:$0xff] }
0x1b75   :  { %v4857_v26 = vpop.eup %4856 }
0x1b76   :  { %v3435_v29 = vsel %vm400_vm3, %v4857_v26, 0.0 }
0x1b77   :  { %3436 = vadd.xlane.f32.xlu0 %v3435_v29 }
0x1b8d   :  { %3442 = vrot.lane.b32.xlu0 %v5516_v11, %s5896_s0  ;;  %v4231_v11 = vld [vmem:[%s5842_s10 + $0x38] sm:$0xff] }
0x1b91   :  { %3604 = vrot.lane.b32.xlu0 %v3180_v2, %s5898_s3 }
0x1bfc   :  { %v3434_v28 = vpop.xlane.xlu0 %3433 }
0x1bfd   :  { %4858 = vrcp.f32 %v3434_v28 }
0x1c00   :  { %v3437_v30 = vpop.xlane.xlu0 %3436 }
0x1c01   :  { %4860 = vrcp.f32 %v3437_v30 }
0x1c04   :  { %v3443_v31 = vpop.permute.xlu0 %3442 }
0x1c05   :  { %4675 = vmatpush3.msra.mxu1 %v3443_v31 }
0x1c06   :  { %4684 = vmatprep.subr.mxu1 %v4231_v11 }
0x1c08   :  { %v3605_v25 = vpop.permute.xlu0 %3604 }
0x1c09   :  { %v3620_v49 = vsel %vm1758_vm5, %v3618_v47, %v3605_v25  ;;  %v4241_v25 = vld [vmem:[%s5848_s16 + $0x88] sm:$0xff]  ;;  %v4240_v47 = vld [vmem:[%s5848_s16 + $0x80] sm:$0xff] }
0x1c0a   :  { %v4859_v41 = vpop.eup %4858 }
0x1c0b   :  { %v3440_v32 = vmul.f32 %v4859_v41, %v4855_v27  ;;  %v4290_v27 = vld [vmem:[%s5845_s13 + $0x1] ss:$0 sm:$0xff]  ;;  %v4255_v41 = vld [vmem:[%s5848_s16 + $0xf8] sm:$0xff] }
0x1c0d   :  { %4677 = vmatmul.mubr.msk.f32.vlgmr.msra.gmra.mxu1 %vm400_vm3, %v3440_v32  ;;  %v4254_v32 = vld [vmem:[%s5848_s16 + $0xf0] sm:$0xff] }
0x1c0e   :  { %v4861_v0 = vpop.eup %4860  ;;  %4685 = vmatpush3.msra.mxu1 %v4231_v11  ;;  %v4251_v11 = vld [vmem:[%s5848_s16 + $0xd8] sm:$0xff] }
0x1c0f   :  { %v3441_v33 = vmul.f32 %v4861_v0, %v4857_v26  ;;  %4686 = vmatprep.subr.mxu1 %v4230_v34  ;;  %v4253_v0 = vld [vmem:[%s5848_s16 + $0xe8] sm:$0xff] }
0x1c10   :  { %4687 = vmatpush3.msra.mxu1 %v4230_v34  ;;  %v4250_v34 = vld [vmem:[%s5848_s16 + $0xd0] sm:$0xff] }
0x1c11   :  { %4682 = vmatmul.mubr.msk.f32.vlgmr.msra.gmra.mxu0 %vm400_vm3, %v3441_v33  ;;  %4688 = vmatprep.subr.mxu1 %v4229_v36  ;;  %v4252_v33 = vld [vmem:[%s5848_s16 + $0xe0] sm:$0xff] }
0x1c12   :  { %4689 = vmatpush3.msra.mxu1 %v4229_v36  ;;  %4696 = vmatpush3.msra.mxu0 %v4238_v13  ;;  %v4249_v36 = vld [vmem:[%s5848_s16 + $0xc8] sm:$0xff] }
0x1c13   :  { %4690 = vmatprep.subr.mxu1 %v4228_v39  ;;  %4697 = vmatprep.subr.mxu0 %v4237_v15 }
0x1c14   :  { %4691 = vmatpush3.msra.mxu1 %v4228_v39  ;;  %4698 = vmatpush3.msra.mxu0 %v4237_v15  ;;  %v4248_v39 = vld [vmem:[%s5848_s16 + $0xc0] sm:$0xff] }
0x1c15   :  { %4699 = vmatprep.subr.mxu0 %v4236_v16  ;;  %4706 = vmatprep.subr.mxu1 %v4255_v41 }
0x1c16   :  { %4700 = vmatpush3.msra.mxu0 %v4236_v16 }
0x1c17   :  { %4701 = vmatprep.subr.mxu0 %v4235_v17 }
0x1c18   :  { %4702 = vmatpush3.msra.mxu0 %v4235_v17 }
0x1c19   :  { %4741 = vmatprep.subr.mxu0 %v4901_v1 }
0x1ccd   :  { %v3514_v40 = vpop.f32.mrf.mxu1 }
0x1cce   :  { %3612 = vrot.lane.b32.xlu0 %v3514_v40, %s5899_s7  ;;  %v4247_v40 = vld [vmem:[%s5848_s16 + $0xb8] sm:$0xff] }
0x1ccf   :  { %v4678_v42 = vpop.f32.mrf.mxu1 }
0x1cd0   :  { %v4246_v42 = vld [vmem:[%s5848_s16 + $0xb0] sm:$0xff] }
0x1cd1   :  { %v3590_v43 = vpop.f32.mrf.mxu0 }
0x1cd2   :  { %3614 = vrot.lane.b32.xlu1 %v3590_v43, %s5899_s7  ;;  %v4245_v43 = vld [vmem:[%s5848_s16 + $0xa8] sm:$0xff] }
0x1cd3   :  { %v4683_v44 = vpop.f32.mrf.mxu0 }
0x1cd4   :  { %v4244_v44 = vld [vmem:[%s5848_s16 + $0xa0] sm:$0xff] }
0x1d40   :  { %v3613_v52 = vpop.permute.xlu0 %3612 }
0x1d41   :  { %v3622_v35 = vsel %vm1761_vm4, %v3620_v49, %v3613_v52 }
0x1d42   :  { %4692 = vmatprep.mubr.msk.f32.mxu1 %vm187_vm1, %v3622_v35 }
0x1d44   :  { %v3615_v55 = vpop.permute.xlu1 %3614 }
0x1d45   :  { %v3623_v56 = vsel %vm1761_vm4, %v3621_v51, %v3615_v55 }
0x1d46   :  { %4693 = vmatmul.mubr.msk.f32.vlgmr.msra.gmra.mxu1 %vm187_vm1, %v3623_v56 }
0x1d47   :  { %4707 = vmatpush3.msra.mxu1 %v4255_v41  ;;  %v4297_v41 = vld [vmem:[%s5850_s18] ss:$0 sm:$0xff] }
0x1d48   :  { %4708 = vmatprep.subr.mxu1 %v4254_v32 }
0x1d49   :  { %4709 = vmatpush3.msra.mxu1 %v4254_v32 }
0x1d4a   :  { %4710 = vmatprep.subr.mxu1 %v4253_v0 }
0x1d4b   :  { %4711 = vmatpush3.msra.mxu1 %v4253_v0 }
0x1d4c   :  { %4712 = vmatprep.subr.mxu1 %v4252_v33 }
0x1d4d   :  { %4713 = vmatpush3.msra.mxu1 %v4252_v33 }
0x1d4e   :  { %4714 = vmatprep.subr.mxu1 %v4251_v11 }
0x1d4f   :  { %4715 = vmatpush3.msra.mxu1 %v4251_v11  ;;  %v4298_v11 = vld [vmem:[%s5851_s19] ss:$0 sm:$0xff] }
0x1d50   :  { %4716 = vmatprep.subr.mxu1 %v4250_v34 }
0x1d51   :  { %4717 = vmatpush3.msra.mxu1 %v4250_v34 }
0x1d52   :  { %4718 = vmatprep.subr.mxu1 %v4249_v36 }
0x1d53   :  { %4719 = vmatpush3.msra.mxu1 %v4249_v36 }
0x1d54   :  { %4720 = vmatprep.subr.mxu1 %v4248_v39 }
0x1d55   :  { %4721 = vmatpush3.msra.mxu1 %v4248_v39 }
0x1d56   :  { %4722 = vmatprep.subr.mxu1 %v4247_v40 }
0x1d57   :  { %4723 = vmatpush3.msra.mxu1 %v4247_v40 }
0x1d58   :  { %4724 = vmatprep.subr.mxu1 %v4246_v42 }
0x1d59   :  { %4725 = vmatpush3.msra.mxu1 %v4246_v42 }
0x1d5a   :  { %4726 = vmatprep.subr.mxu1 %v4245_v43 }
0x1d5b   :  { %4727 = vmatpush3.msra.mxu1 %v4245_v43 }
0x1d5c   :  { %4728 = vmatprep.subr.mxu1 %v4244_v44 }
0x1d5d   :  { %4729 = vmatpush3.msra.mxu1 %v4244_v44 }
0x1d5e   :  { %4730 = vmatprep.subr.mxu1 %v4243_v45 }
0x1d5f   :  { %4731 = vmatpush3.msra.mxu1 %v4243_v45 }
0x1d60   :  { %4732 = vmatprep.subr.mxu1 %v4242_v46 }
0x1d61   :  { %4733 = vmatpush3.msra.mxu1 %v4242_v46 }
0x1d62   :  { %4734 = vmatprep.subr.mxu1 %v4241_v25 }
0x1d63   :  { %4735 = vmatpush3.msra.mxu1 %v4241_v25 }
0x1d64   :  { %4736 = vmatprep.subr.mxu1 %v4240_v47 }
0x1d65   :  { %4737 = vmatpush3.msra.mxu1 %v4240_v47 }
0x1e06   :  { %v4694_v57 = vpop.f32.mrf.mxu1 }
0x1e07   :  { %v3706_v58 = vadd.f32 %v4694_v57, %v5475_v60 }
0x1e08   :  { %v3696_v59 = vpop.f32.mrf.mxu1 }
0x1e09   :  { %v5701_v61 = vadd.f32 %v4288_v48, %v3706_v58  ;;  %v3705_v62 = vadd.f32 %v3696_v59, %v5478_v38 }
0x1e0b   :  { %v5704_v50 = vadd.f32 %v4288_v48, %v3705_v62  ;;  %v3718_v37 = vsel %vm187_vm1, %v5701_v61, 0.0 }
0x1e0c   :  { %3719 = vadd.xlane.f32.xlu1 %v3718_v37 }
0x1e0d   :  { %v3715_v63 = vsel %vm187_vm1, %v5704_v50, 0.0 }
0x1e0e   :  { %3716 = vadd.xlane.f32.xlu0 %v3715_v63 }
0x1e95   :  { %v3720_v2 = vpop.xlane.xlu1 %3719 }
0x1e96   :  { %v3722_v3 = vmul.f32 0.03125, %v3720_v2 }
0x1e97   :  { %v3717_v4 = vpop.xlane.xlu0 %3716 }
0x1e98   :  { %v3721_v5 = vmul.f32 0.03125, %v3717_v4  ;;  %v3724_v60 = vsub.f32 %v5701_v61, %v3722_v3  ;;  %v4296_v4 = vld [vmem:[%s5849_s17 + $0x1] ss:$0 sm:$0xff] }
0x1e9a   :  { %v3723_v6 = vsub.f32 %v5704_v50, %v3721_v5  ;;  %v3726_v8 = vmul.f32 %v3724_v60, %v3724_v60 }
0x1e9c   :  { %v3725_v7 = vmul.f32 %v3723_v6, %v3723_v6  ;;  %v3730_v10 = vsel %vm187_vm1, %v3726_v8, 0.0 }
0x1e9e   :  { %v3727_v38 = vsel %vm187_vm1, %v3725_v7, 0.0 }
0x1e9f   :  { %3728 = vadd.xlane.f32.xlu0 %v3727_v38 }
0x1ea3   :  { %3731 = vadd.xlane.f32.xlu0 %v3730_v10 }
0x1f28   :  { %v3729_v18 = vpop.xlane.xlu0 %3728 }
0x1f29   :  { %v3733_v19 = vmul.f32 0.03125, %v3729_v18 }
0x1f2b   :  { %v3735_v20 = vadd.f32 1e-05, %v3733_v19 }
0x1f2c   :  { %v3732_v21 = vpop.xlane.xlu0 %3731 }
0x1f2d   :  { %4862 = vrsqrt.f32 %v3735_v20  ;;  %v3734_v12 = vmul.f32 0.03125, %v3732_v21 }
0x1f2f   :  { %v3736_v22 = vadd.f32 1e-05, %v3734_v12 }
0x1f31   :  { %4864 = vrsqrt.f32 %v3736_v22 }
0x1f3a   :  { %v4863_v53 = vpop.eup %4862 }
0x1f3b   :  { %v3739_v24 = vmul.f32 %v4863_v53, %v3723_v6 }
0x1f3d   :  { %v3747_v9 = vmul.f32 %v4289_v23, %v3739_v24  ;;  %v3998_v24 = vld [vmem:[%s5852_s20 + $0x8] sm:$0xff] }
0x1f3e   :  { %v4865_v26 = vpop.eup %4864 }
0x1f3f   :  { %v3740_v29 = vmul.f32 %v4865_v26, %v3724_v60  ;;  %v3755_v28 = vadd.f32 %v4290_v27, %v3747_v9 }
0x1f41   :  { %v3748_v30 = vmul.f32 %v4289_v23, %v3740_v29  ;;  %4703 = vmatprep.mubr.msk.f32.mxu0 %vm187_vm1, %v3755_v28  ;;  %v3999_v23 = vld [vmem:[%s5852_s20 + $0x10] sm:$0xff] }
0x1f43   :  { %v3756_v31 = vadd.f32 %v4290_v27, %v3748_v30  ;;  %v3997_v27 = vld [vmem:[%s5852_s20] sm:$0xff] }
0x1f45   :  { %4704 = vmatmul.mubr.msk.f32.vlgmr.msra.gmra.mxu0 %vm187_vm1, %v3756_v31 }
0x1f46   :  { %4749 = vmatprep.mubr.msk.f32.mxu0 %vm4902_vm2, %v4901_v1 }
0x2005   :  { %v4705_v49 = vpop.f32.mrf.mxu0 }
0x2006   :  { %v3841_v52 = vadd.f32 %v4705_v49, %v4291_v14  ;;  %v4084_v49 = vld [vmem:[%s5853_s21] sm:$0x1] }
0x2007   :  { %v3835_v35 = vpop.f32.mrf.mxu0 }
0x2008   :  { %v4295_v54 = vmul.f32 -1.702, %v3841_v52  ;;  %v3836_v51 = vadd.f32 %v4291_v14, %v3835_v35 }
0x200a   :  { %v3850_v55 = vmul.f32 1.442695, %v4295_v54  ;;  %v4294_v56 = vmul.f32 -1.702, %v3836_v51 }
0x200c   :  { %4866 = vpow2.f32 %v3850_v55  ;;  %v3848_v48 = vmul.f32 1.442695, %v4294_v56 }
0x200e   :  { %4868 = vpow2.f32 %v3848_v48 }
0x2019   :  { %v4867_v57 = vpop.eup %4866 }
0x201a   :  { %v3853_v58 = vadd.f32 1.0, %v4867_v57 }
0x201b   :  { %v4869_v59 = vpop.eup %4868 }
0x201c   :  { %v3852_v62 = vadd.f32 1.0, %v4869_v59  ;;  %4870 = vrcp.f32 %v3853_v58 }
0x201e   :  { %4872 = vrcp.f32 %v3852_v62 }
0x2029   :  { %v4871_v37 = vpop.eup %4870 }
0x202a   :  { %v3859_v3 = vmul.f32 %v4871_v37, %v3841_v52 }
0x202b   :  { %v4873_v63 = vpop.eup %4872 }
0x202c   :  { %v3858_v2 = vmul.f32 %v4873_v63, %v3836_v51 }
0x202e   :  { %4738 = vmatprep.mubr.f32.mxu1 %v3858_v2 }
0x202f   :  { %4739 = vmatmul.mubr.f32.vlgmr.msra.gmra.mxu1 %v3859_v3 }
0x20ef   :  { %v4740_v5 = vpop.f32.mrf.mxu1 }
0x20f0   :  { %v3938_v60 = vadd.f32 %v4740_v5, %v4296_v4 }
0x20f1   :  { %v3932_v6 = vpop.f32.mrf.mxu1 }
0x20f2   :  { %v3942_v7 = vadd.f32 %v3938_v60, %v5701_v61  ;;  %v3933_v38 = vadd.f32 %v4296_v4, %v3932_v6 }
0x20f4   :  { %v3947_v8 = vrot.slane %v3942_v7, 7  ;;  %v3941_v10 = vadd.f32 %v3933_v38, %v5704_v50  ;;  %v4000_v50 = vld [vmem:[%s5852_s20 + $0x18] sm:$0xff] }
0x20f5   :  { %4742 = vmatpush3.msra.mxu0 %v4000_v50 }
0x20f6   :  { %v3949_v13 = vsel %vm3948_vm6, %v3947_v8, %v3941_v10  ;;  %4743 = vmatprep.subr.mxu0 %v4901_v1 }
0x20f7   :  { %v3952_v15 = vsel %vm3951_vm7, %v3949_v13, 0.0  ;;  %4744 = vmatpush3.msra.mxu0 %v3999_v23 }
0x20f8   :  { %3953 = vadd.xlane.f32.xlu0 %v3952_v15  ;;  %4745 = vmatprep.subr.mxu0 %v4901_v1 }
0x20f9   :  { %4746 = vmatpush3.msra.mxu0 %v3998_v24 }
0x20fa   :  { %4747 = vmatprep.subr.mxu0 %v4901_v1 }
0x20fb   :  { %4748 = vmatpush3.msra.mxu0 %v3997_v27 }
0x20fc   :  { %4752 = vmatprep.subr.mxu0 %v4901_v1 }
0x2181   :  { %v3954_v16 = vpop.xlane.xlu0 %3953 }
0x2182   :  { %v3955_v17 = vmul.f32 0.03125, %v3954_v16 }
0x2184   :  { %v3957_v18 = vrot.slane %v3955_v17, 1  ;;  %v3960_v19 = vsub.f32 %v3941_v10, %v3955_v17 }
0x2186   :  { %v3961_v20 = vsub.f32 %v3942_v7, %v3957_v18  ;;  %v3962_v12 = vmul.f32 %v3960_v19, %v3960_v19 }
0x2188   :  { %v3963_v21 = vmul.f32 %v3961_v20, %v3961_v20 }
0x218a   :  { %v3966_v22 = vrot.slane %v3963_v21, 7 }
0x218c   :  { %v3967_v61 = vsel %vm3948_vm6, %v3966_v22, %v3962_v12 }
0x218d   :  { %v3969_v53 = vsel %vm3951_vm7, %v3967_v61, 0.0 }
0x218e   :  { %3970 = vadd.xlane.f32.xlu1 %v3969_v53 }
0x2217   :  { %v3971_v9 = vpop.xlane.xlu1 %3970 }
0x2218   :  { %v3972_v26 = vmul.f32 0.03125, %v3971_v9 }
0x221a   :  { %v3973_v29 = vadd.f32 1e-05, %v3972_v26 }
0x221c   :  { %4874 = vrsqrt.f32 %v3973_v29 }
0x2229   :  { %v4875_v28 = vpop.eup %4874 }
0x222a   :  { %v3976_v30 = vrot.slane %v4875_v28, 1  ;;  %v3979_v31 = vmul.f32 %v4875_v28, %v3960_v19 }
0x222c   :  { %v3980_v32 = vmul.f32 %v3976_v30, %v3961_v20  ;;  %v3987_v0 = vmul.f32 %v4297_v41, %v3979_v31 }
0x222e   :  { %v3988_v33 = vmul.f32 %v4297_v41, %v3980_v32  ;;  %v3995_v36 = vadd.f32 %v4298_v11, %v3987_v0 }
0x2230   :  { %v3996_v34 = vadd.f32 %v4298_v11, %v3988_v33 }
0x2232   :  { %v4003_v39 = vrot.slane %v3996_v34, 7 }
0x2234   :  { %v4004_v40 = vsel %vm3948_vm6, %v4003_v39, %v3995_v36 }
0x2235   :  { %4750 = vmatmul.mubr.msk.f32.vlgmr.msra.gmra.mxu0 %vm187_vm1, %v4004_v40 }
0x2236   :  { %4754 = vmatprep.mubr.msk.f32.mxu0 %vm4902_vm2, %v4901_v1 }
0x22f5   :  { %v4073_v42 = vpop.f32.mrf.mxu0 }
0x22f6   :  { %v4077_v43 = vmul.f32 %v4073_v42, %v4073_v42 }
0x22f7   :  { %v4751_v44 = vpop.f32.mrf.mxu0 }
0x22f8   :  { %v4078_v45 = vsel %vm3951_vm7, %v4077_v43, 0.0 }
0x22f9   :  { %4079 = vadd.xlane.f32.xlu0 %v4078_v45 }
0x2382   :  { %v4080_v46 = vpop.xlane.xlu0 %4079 }
0x2383   :  { %v4081_v25 = vmax.f32 %v4080_v46, 1e-24 }
0x2385   :  { %4876 = vrsqrt.f32 %v4081_v25 }
0x2392   :  { %v4877_v47 = vpop.eup %4876 }
0x2393   :  { %v4083_v14 = vmul.f32 %v4877_v47, %v4073_v42 }
0x2395   :  { %4753 = vmatpush3.xpose.msk.msra.mxu0 %vm187_vm1, %v4083_v14 }
0x2398   :  { %4755 = vmatmul.mubr.msk.f32.vlgmr.msra.gmra.mxu0 %vm187_vm1, %v4084_v49 }
0x2458   :  { %v4157_v1 = vpop.f32.mrf.mxu0 }
0x2459   :  { %4162 = vst.msk [vmem:[#allocation2] sm:$0x1] %vm4161_vm8, %v4157_v1 }
0x245a   :  { %v4756_v52 = vpop.f32.mrf.mxu0 }
0x245b   :  { %4890 = shalt.err (!%p4887_p4)
}
0x245c   :  { %4172 = dma.vmem_to_hbm [thread:$0]  %s4170_s14, 16, %s5854_s22, [#allocation3]  }
0x245d   :  { %4899 = dma.done.wait [#allocation3], 16  }
0x245e   :  { %4900 = vsyncadd [#allocation3], 4294967280 }
0x245f   :  { %4176 = vsyncpa [#allocation3], 1 }

</bundles_post_ra>
